<compile_context>
chip_gen: v6e
topology: v6e:2x2x1
jax: 0.10.0
libtpu: 0.0.40
codegen_flags: <defaults>
</compile_context>

<pallas_src>
import jax
import jax.numpy as jnp
from jax.experimental import pallas as pl
from jax.experimental.pallas import tpu as pltpu

BN_EPS = 1e-5


def _round_up(v, m):
    return ((v + m - 1) // m) * m


def _vmem_limit_bytes():
    # v7x: 64 MiB VMEM per TensorCore -> leave headroom; v5e/v6e: 128 MiB.
    try:
        cap = getattr(pltpu.get_tpu_info(), "vmem_capacity_bytes", None)
    except Exception:
        cap = None
    if cap is not None and cap <= 80 * 1024 * 1024:
        return 36 * 1024 * 1024
    return 48 * 1024 * 1024


# ---------------------------------------------------------------------------
# Kernel bodies
# ---------------------------------------------------------------------------
def _im2col_matmul_stats(src_ref, w_ref, slab_ref, z_ref, s_ref):
    """3x3 conv of one pre-padded sample as one lane-dense MXU matmul.

    src_ref  : (1, H+2, W+2, CP)  padded input (matmul dtype, e.g. bf16)
    w_ref    : (9*CP, CP)         im2col weight slab (matmul dtype)
    slab_ref : (H*W, 9*CP)        im2col scratch (matmul dtype)
    z_ref    : (1, H*W, CP)       f32 conv output
    s_ref    : (1, 2, CP)         f32 per-sample [sum, sum-of-squares]
    """
    _, Hp, Wp, CP = src_ref.shape
    H, W = Hp - 2, Wp - 2
    HW = H * W

    # Fill the im2col slab with 9 strided copies (no concat / astype temps).
    k = 0
    for dy in range(3):
        for dx in range(3):
            slab_ref[:, k * CP:(k + 1) * CP] = (
                src_ref[0, dy:dy + H, dx:dx + W, :].reshape(HW, CP))
            k += 1

    z = jnp.dot(slab_ref[...], w_ref[...], preferred_element_type=jnp.float32)
    z_ref[0] = z
    # Single-pass per-sample stats (reduced across samples in the wrapper).
    s_ref[0, 0:1, :] = jnp.sum(z, axis=0, keepdims=True)
    s_ref[0, 1:2, :] = jnp.sum(z * z, axis=0, keepdims=True)


def _conv1_kernel(xp_ref, w_ref, z_ref, s_ref, slab_ref):
    """Pass 1: conv1 + BN1 statistics (input is pre-padded in HBM)."""
    _im2col_matmul_stats(xp_ref, w_ref, slab_ref, z_ref, s_ref)


def _conv2_kernel(z1_ref, sc_ref, sh_ref, a_ref, w_ref, z_ref, s_ref,
                  pad_ref, slab_ref):
    """Pass 2: BN1 (precomputed scale/shift) + PReLU + conv2 + BN2 stats."""
    _, Hp, Wp, CP = pad_ref.shape
    H, W = Hp - 2, Wp - 2

    # Zero only the halo of the padded scratch (interior is overwritten below).
    # Done every step: the grid axis is "parallel", so step 0 is not guaranteed
    # to run on every core; 4 thin strips are cheap.
    zero_row = jnp.zeros((1, 1, Wp, CP), pad_ref.dtype)
    zero_col = jnp.zeros((1, Hp, 1, CP), pad_ref.dtype)
    pad_ref[:, 0:1, :, :] = zero_row
    pad_ref[:, Hp - 1:Hp, :, :] = zero_row
    pad_ref[:, :, 0:1, :] = zero_col
    pad_ref[:, :, Wp - 1:Wp, :] = zero_col

    y1 = z1_ref[0] * sc_ref[...] + sh_ref[...]          # BN1 (f32)
    y1 = jnp.where(y1 >= 0.0, y1, a_ref[...] * y1)      # PReLU (f32)
    # Lane-dense CP-wide write (padded lanes are exactly zero by construction).
    pad_ref[0, 1:H + 1, 1:W + 1, :] = y1.astype(pad_ref.dtype).reshape(H, W, CP)

    _im2col_matmul_stats(pad_ref, w_ref, slab_ref, z_ref, s_ref)


def _bn_residual_kernel(z2_ref, sc_ref, sh_ref, x_ref, o_ref):
    """Pass 3: BN2 (precomputed scale/shift) + residual add, lane-dense f32."""
    o_ref[0] = z2_ref[0] * sc_ref[...] + sh_ref[...] + x_ref[0]


# ---------------------------------------------------------------------------
# Parameters / wrapper
# ---------------------------------------------------------------------------
def init_params(key, channels):
    """Deterministic synthetic parameters matching nn.Module shapes/defaults."""
    k1, k2 = jax.random.split(key)
    fan_in = channels * 3 * 3
    bound = (1.0 / fan_in) ** 0.5            # Conv2d kaiming_uniform(a=sqrt(5))
    return {
        "w1": jax.random.uniform(k1, (channels, channels, 3, 3), jnp.float32,
                                 -bound, bound),                     # OIHW
        "w2": jax.random.uniform(k2, (channels, channels, 3, 3), jnp.float32,
                                 -bound, bound),                     # OIHW
        "bn1_gamma": jnp.ones((channels,), jnp.float32),
        "bn1_beta": jnp.zeros((channels,), jnp.float32),
        "prelu1_alpha": jnp.full((channels,), 0.25, jnp.float32),    # PReLU
        "bn2_gamma": jnp.ones((channels,), jnp.float32),
        "bn2_beta": jnp.zeros((channels,), jnp.float32),
    }


def _bn_affine(stats, gamma_p, beta_p, m):
    """Fold batch stats + affine params into per-channel scale/shift (f32)."""
    tot = jnp.sum(stats, axis=0)                       # (2, CP)
    mean = tot[0] / m
    var = jnp.maximum(tot[1] / m - mean * mean, 0.0)   # biased, clamped
    scale = jax.lax.rsqrt(var + BN_EPS) * gamma_p.reshape(-1)
    shift = beta_p.reshape(-1) - mean * scale
    return scale.reshape(1, -1), shift.reshape(1, -1)


def residual_block(x_nchw, params, *, matmul_dtype=jnp.bfloat16):
    """x_nchw: (N, C, H, W) float32, as in PyTorch. Returns (N, C, H, W).

    matmul_dtype=bfloat16 (default) runs both 3x3 convs natively on the MXU;
    all BN / PReLU / residual math stays f32.  Use jnp.float32 for tighter
    parity with the PyTorch f32 module.
    """
    N, C, H, W = x_nchw.shape
    CP = _round_up(C, 128)                   # lane-dense channel count
    HW, M = H * W, N * H * W
    Hp, Wp = H + 2, W + 2
    vmem_limit = _vmem_limit_bytes()

    # TODO(synk): hoist the NCHW<->NHWC transposes and final channel slice to
    # model boundaries when stacking many residual blocks back to back.
    x_nhwc = jnp.transpose(x_nchw, (0, 2, 3, 1)).astype(jnp.float32)
    # Conv input: spatially padded, channel-padded to CP lanes, matmul dtype.
    x_pad = jnp.pad(x_nhwc, ((0, 0), (1, 1), (1, 1), (0, CP - C))
                    ).astype(matmul_dtype)
    # Residual input: lane-dense (N, H*W, CP) f32 (exact f32 add).
    x_res = jnp.pad(x_nhwc.reshape(N, HW, C), ((0, 0), (0, 0), (0, CP - C)))

    def weight_slab(w_oihw):
        # OIHW -> HWIO, zero-pad in/out channels to CP, -> (9*CP, CP) slab.
        # K = 9*CP is 128-aligned; rows for padded input channels are zero.
        w = jnp.transpose(w_oihw, (2, 3, 1, 0))
        w = jnp.pad(w, ((0, 0), (0, 0), (0, CP - C), (0, CP - C)))
        return w.reshape(9 * CP, CP).astype(matmul_dtype)

    def chan_pad(v):
        return jnp.pad(v.astype(jnp.float32), (0, CP - C)).reshape(1, CP)

    w1 = weight_slab(params["w1"])
    w2 = weight_slab(params["w2"])
    g1, b1 = chan_pad(params["bn1_gamma"]), chan_pad(params["bn1_beta"])
    a1 = chan_pad(params["prelu1_alpha"])
    g2, b2 = chan_pad(params["bn2_gamma"]), chan_pad(params["bn2_beta"])

    conv_flops = 2 * M * (9 * CP) * CP
    itemsz = jnp.dtype(matmul_dtype).itemsize
    cparams = pltpu.CompilerParams(dimension_semantics=("parallel",),
                                   vmem_limit_bytes=vmem_limit)

    # ---- pass 1: conv1 + per-sample BN1 statistics --------------------------
    z1, st1 = pl.pallas_call(
        _conv1_kernel,
        grid=(N,),
        in_specs=[pl.BlockSpec((1, Hp, Wp, CP), lambda n: (n, 0, 0, 0)),
                  pl.BlockSpec((9 * CP, CP), lambda n: (0, 0))],
        out_specs=[pl.BlockSpec((1, HW, CP), lambda n: (n, 0, 0)),
                   pl.BlockSpec((1, 2, CP), lambda n: (n, 0, 0))],
        out_shape=[jax.ShapeDtypeStruct((N, HW, CP), jnp.float32),
                   jax.ShapeDtypeStruct((N, 2, CP), jnp.float32)],
        scratch_shapes=[pltpu.VMEM((HW, 9 * CP), matmul_dtype)],
        compiler_params=cparams,
        cost_estimate=pl.CostEstimate(
            flops=conv_flops, transcendentals=0,
            bytes_accessed=int(N * Hp * Wp * CP * itemsz
                               + 9 * CP * CP * itemsz + M * CP * 4)),
    )(x_pad, w1)

    sc1, sh1 = _bn_affine(st1, g1, b1, M)

    # ---- pass 2: BN1 + PReLU + conv2 + per-sample BN2 statistics ------------
    z2, st2 = pl.pallas_call(
        _conv2_kernel,
        grid=(N,),
        in_specs=[pl.BlockSpec((1, HW, CP), lambda n: (n, 0, 0)),
                  pl.BlockSpec((1, CP), lambda n: (0, 0)),
                  pl.BlockSpec((1, CP), lambda n: (0, 0)),
                  pl.BlockSpec((1, CP), lambda n: (0, 0)),
                  pl.BlockSpec((9 * CP, CP), lambda n: (0, 0))],
        out_specs=[pl.BlockSpec((1, HW, CP), lambda n: (n, 0, 0)),
                   pl.BlockSpec((1, 2, CP), lambda n: (n, 0, 0))],
        out_shape=[jax.ShapeDtypeStruct((N, HW, CP), jnp.float32),
                   jax.ShapeDtypeStruct((N, 2, CP), jnp.float32)],
        scratch_shapes=[pltpu.VMEM((1, Hp, Wp, CP), matmul_dtype),
                        pltpu.VMEM((HW, 9 * CP), matmul_dtype)],
        compiler_params=cparams,
        cost_estimate=pl.CostEstimate(
            flops=conv_flops + 4 * M * CP, transcendentals=0,
            bytes_accessed=int(2 * M * CP * 4 + 9 * CP * CP * itemsz)),
    )(z1, sc1, sh1, a1, w2)

    sc2, sh2 = _bn_affine(st2, g2, b2, M)

    # ---- pass 3: BN2 + residual add -----------------------------------------
    out_flat = pl.pallas_call(
        _bn_residual_kernel,
        grid=(N,),
        in_specs=[pl.BlockSpec((1, HW, CP), lambda n: (n, 0, 0)),
                  pl.BlockSpec((1, CP), lambda n: (0, 0)),
                  pl.BlockSpec((1, CP), lambda n: (0, 0)),
                  pl.BlockSpec((1, HW, CP), lambda n: (n, 0, 0))],
        out_specs=pl.BlockSpec((1, HW, CP), lambda n: (n, 0, 0)),
        out_shape=jax.ShapeDtypeStruct((N, HW, CP), jnp.float32),
        compiler_params=cparams,
        cost_estimate=pl.CostEstimate(
            flops=3 * M * CP, transcendentals=0,
            bytes_accessed=3 * M * CP * 4),
    )(z2, sc2, sh2, x_res)

    out = out_flat[:, :, :C].reshape(N, H, W, C)
    return jnp.transpose(out, (0, 3, 1, 2))                          # NCHW


# ---------------------------------------------------------------------------
# Pure-JAX reference (training-mode BN) and smoke test
# ---------------------------------------------------------------------------
def _reference(x_nchw, params):
    def conv(x, w):
        return jax.lax.conv_general_dilated(
            x, w, window_strides=(1, 1), padding=((1, 1), (1, 1)),
            dimension_numbers=("NCHW", "OIHW", "NCHW"),
            precision=jax.lax.Precision.HIGHEST)

    def bn(y, g, b):
        mean = jnp.mean(y, axis=(0, 2, 3), keepdims=True)
        var = jnp.mean((y - mean) ** 2, axis=(0, 2, 3), keepdims=True)
        return ((y - mean) * jax.lax.rsqrt(var + BN_EPS)
                * g.reshape(1, -1, 1, 1) + b.reshape(1, -1, 1, 1))

    y = bn(conv(x_nchw, params["w1"]), params["bn1_gamma"], params["bn1_beta"])
    a = params["prelu1_alpha"].reshape(1, -1, 1, 1)
    y = jnp.where(y >= 0.0, y, a * y)
    y = bn(conv(y, params["w2"]), params["bn2_gamma"], params["bn2_beta"])
    return y + x_nchw


if __name__ == "__main__":
    key = jax.random.PRNGKey(0)
    kx, kp = jax.random.split(key)

    N, C, H, W = 2, 4, 16, 16                    # in_channels = 4
    x = jax.random.normal(kx, (N, C, H, W), jnp.float32)
    params = init_params(kp, C)

    ref = _reference(x, params)

    # Default path: native bf16 MXU matmuls (BN/PReLU/residual in f32).
    out_bf16 = residual_block(x, params)
    jax.block_until_ready(out_bf16)
    assert out_bf16.shape == (N, C, H, W)
    err_bf16 = float(jnp.max(jnp.abs(out_bf16 - ref)))
    assert err_bf16 < 1e-1, f"bf16 path mismatch vs reference: {err_bf16}"

    # f32 matmul path for tighter parity with the PyTorch module.
    out_f32 = residual_block(x, params, matmul_dtype=jnp.float32)
    jax.block_until_ready(out_f32)
    err_f32 = float(jnp.max(jnp.abs(out_f32 - ref)))
    assert err_f32 < 2e-2, f"f32 path mismatch vs reference: {err_f32}"

    print("KERNEL_OK")
</pallas_src>

<mosaic_0001>
module attributes {stable_mosaic.version = 11 : i64} {
  func.func @_conv1_kernel(%arg0: i32, %arg1: memref<1x18x18x128xbf16, #tpu.memory_space<vmem>>, %arg2: memref<1152x128xbf16, #tpu.memory_space<vmem>>, %arg3: memref<1x256x128xf32, #tpu.memory_space<vmem>>, %arg4: memref<1x2x128xf32, #tpu.memory_space<vmem>>, %arg5: memref<256x1152xbf16, #tpu.memory_space<vmem>>) attributes {dimension_semantics = [#tpu.dimension_semantics<parallel>], iteration_bounds = array<i64: 2>, scalar_prefetch = 0 : i64, scratch_operands = 1 : i64, tpu.core_type = #tpu.core_type<tc>, window_params = [{transform_indices = @transform_0, window_bounds = array<i64: 1, 18, 18, 128>}, {pipeline_mode = #tpu.pipeline_mode<synchronous>, transform_indices = @transform_1, window_bounds = array<i64: 1152, 128>}, {transform_indices = @transform_2, window_bounds = array<i64: 1, 256, 128>}, {transform_indices = @transform_3, window_bounds = array<i64: 1, 2, 128>}]} {
    %c0 = arith.constant 0 : index
    %c0_0 = arith.constant 0 : index
    %c0_1 = arith.constant 0 : index
    %c0_2 = arith.constant 0 : index
    %0 = vector.load %arg1[%c0, %c0_0, %c0_1, %c0_2] : memref<1x18x18x128xbf16, #tpu.memory_space<vmem>>, vector<1x16x16x128xbf16>
    %1 = vector.shape_cast %0 : vector<1x16x16x128xbf16> to vector<16x16x128xbf16>
    %2 = vector.shape_cast %1 : vector<16x16x128xbf16> to vector<256x128xbf16>
    %c0_3 = arith.constant 0 : index
    %c0_4 = arith.constant 0 : index
    %3 = vector.load %arg5[%c0_3, %c0_4] : memref<256x1152xbf16, #tpu.memory_space<vmem>>, vector<256x128xbf16>
    tpu.vector_store %arg5[%c0_3, %c0_4], %2 {strides = array<i32>} : memref<256x1152xbf16, #tpu.memory_space<vmem>>, vector<256x128xbf16>,
    %c0_5 = arith.constant 0 : index
    %c0_6 = arith.constant 0 : index
    %c1 = arith.constant 1 : index
    %c0_7 = arith.constant 0 : index
    %4 = vector.load %arg1[%c0_5, %c0_6, %c1, %c0_7] : memref<1x18x18x128xbf16, #tpu.memory_space<vmem>>, vector<1x16x16x128xbf16>
    %5 = vector.shape_cast %4 : vector<1x16x16x128xbf16> to vector<16x16x128xbf16>
    %6 = vector.shape_cast %5 : vector<16x16x128xbf16> to vector<256x128xbf16>
    %c0_8 = arith.constant 0 : index
    %c128 = arith.constant 128 : index
    %7 = vector.load %arg5[%c0_8, %c128] : memref<256x1152xbf16, #tpu.memory_space<vmem>>, vector<256x128xbf16>
    tpu.vector_store %arg5[%c0_8, %c128], %6 {strides = array<i32>} : memref<256x1152xbf16, #tpu.memory_space<vmem>>, vector<256x128xbf16>,
    %c0_9 = arith.constant 0 : index
    %c0_10 = arith.constant 0 : index
    %c2 = arith.constant 2 : index
    %c0_11 = arith.constant 0 : index
    %8 = vector.load %arg1[%c0_9, %c0_10, %c2, %c0_11] : memref<1x18x18x128xbf16, #tpu.memory_space<vmem>>, vector<1x16x16x128xbf16>
    %9 = vector.shape_cast %8 : vector<1x16x16x128xbf16> to vector<16x16x128xbf16>
    %10 = vector.shape_cast %9 : vector<16x16x128xbf16> to vector<256x128xbf16>
    %c0_12 = arith.constant 0 : index
    %c256 = arith.constant 256 : index
    %11 = vector.load %arg5[%c0_12, %c256] : memref<256x1152xbf16, #tpu.memory_space<vmem>>, vector<256x128xbf16>
    tpu.vector_store %arg5[%c0_12, %c256], %10 {strides = array<i32>} : memref<256x1152xbf16, #tpu.memory_space<vmem>>, vector<256x128xbf16>,
    %c0_13 = arith.constant 0 : index
    %c1_14 = arith.constant 1 : index
    %c0_15 = arith.constant 0 : index
    %c0_16 = arith.constant 0 : index
    %12 = vector.load %arg1[%c0_13, %c1_14, %c0_15, %c0_16] : memref<1x18x18x128xbf16, #tpu.memory_space<vmem>>, vector<1x16x16x128xbf16>
    %13 = vector.shape_cast %12 : vector<1x16x16x128xbf16> to vector<16x16x128xbf16>
    %14 = vector.shape_cast %13 : vector<16x16x128xbf16> to vector<256x128xbf16>
    %c0_17 = arith.constant 0 : index
    %c384 = arith.constant 384 : index
    %15 = vector.load %arg5[%c0_17, %c384] : memref<256x1152xbf16, #tpu.memory_space<vmem>>, vector<256x128xbf16>
    tpu.vector_store %arg5[%c0_17, %c384], %14 {strides = array<i32>} : memref<256x1152xbf16, #tpu.memory_space<vmem>>, vector<256x128xbf16>,
    %c0_18 = arith.constant 0 : index
    %c1_19 = arith.constant 1 : index
    %c1_20 = arith.constant 1 : index
    %c0_21 = arith.constant 0 : index
    %16 = vector.load %arg1[%c0_18, %c1_19, %c1_20, %c0_21] : memref<1x18x18x128xbf16, #tpu.memory_space<vmem>>, vector<1x16x16x128xbf16>
    %17 = vector.shape_cast %16 : vector<1x16x16x128xbf16> to vector<16x16x128xbf16>
    %18 = vector.shape_cast %17 : vector<16x16x128xbf16> to vector<256x128xbf16>
    %c0_22 = arith.constant 0 : index
    %c512 = arith.constant 512 : index
    %19 = vector.load %arg5[%c0_22, %c512] : memref<256x1152xbf16, #tpu.memory_space<vmem>>, vector<256x128xbf16>
    tpu.vector_store %arg5[%c0_22, %c512], %18 {strides = array<i32>} : memref<256x1152xbf16, #tpu.memory_space<vmem>>, vector<256x128xbf16>,
    %c0_23 = arith.constant 0 : index
    %c1_24 = arith.constant 1 : index
    %c2_25 = arith.constant 2 : index
    %c0_26 = arith.constant 0 : index
    %20 = vector.load %arg1[%c0_23, %c1_24, %c2_25, %c0_26] : memref<1x18x18x128xbf16, #tpu.memory_space<vmem>>, vector<1x16x16x128xbf16>
    %21 = vector.shape_cast %20 : vector<1x16x16x128xbf16> to vector<16x16x128xbf16>
    %22 = vector.shape_cast %21 : vector<16x16x128xbf16> to vector<256x128xbf16>
    %c0_27 = arith.constant 0 : index
    %c640 = arith.constant 640 : index
    %23 = vector.load %arg5[%c0_27, %c640] : memref<256x1152xbf16, #tpu.memory_space<vmem>>, vector<256x128xbf16>
    tpu.vector_store %arg5[%c0_27, %c640], %22 {strides = array<i32>} : memref<256x1152xbf16, #tpu.memory_space<vmem>>, vector<256x128xbf16>,
    %c0_28 = arith.constant 0 : index
    %c2_29 = arith.constant 2 : index
    %c0_30 = arith.constant 0 : index
    %c0_31 = arith.constant 0 : index
    %24 = vector.load %arg1[%c0_28, %c2_29, %c0_30, %c0_31] : memref<1x18x18x128xbf16, #tpu.memory_space<vmem>>, vector<1x16x16x128xbf16>
    %25 = vector.shape_cast %24 : vector<1x16x16x128xbf16> to vector<16x16x128xbf16>
    %26 = vector.shape_cast %25 : vector<16x16x128xbf16> to vector<256x128xbf16>
    %c0_32 = arith.constant 0 : index
    %c768 = arith.constant 768 : index
    %27 = vector.load %arg5[%c0_32, %c768] : memref<256x1152xbf16, #tpu.memory_space<vmem>>, vector<256x128xbf16>
    tpu.vector_store %arg5[%c0_32, %c768], %26 {strides = array<i32>} : memref<256x1152xbf16, #tpu.memory_space<vmem>>, vector<256x128xbf16>,
    %c0_33 = arith.constant 0 : index
    %c2_34 = arith.constant 2 : index
    %c1_35 = arith.constant 1 : index
    %c0_36 = arith.constant 0 : index
    %28 = vector.load %arg1[%c0_33, %c2_34, %c1_35, %c0_36] : memref<1x18x18x128xbf16, #tpu.memory_space<vmem>>, vector<1x16x16x128xbf16>
    %29 = vector.shape_cast %28 : vector<1x16x16x128xbf16> to vector<16x16x128xbf16>
    %30 = vector.shape_cast %29 : vector<16x16x128xbf16> to vector<256x128xbf16>
    %c0_37 = arith.constant 0 : index
    %c896 = arith.constant 896 : index
    %31 = vector.load %arg5[%c0_37, %c896] : memref<256x1152xbf16, #tpu.memory_space<vmem>>, vector<256x128xbf16>
    tpu.vector_store %arg5[%c0_37, %c896], %30 {strides = array<i32>} : memref<256x1152xbf16, #tpu.memory_space<vmem>>, vector<256x128xbf16>,
    %c0_38 = arith.constant 0 : index
    %c2_39 = arith.constant 2 : index
    %c2_40 = arith.constant 2 : index
    %c0_41 = arith.constant 0 : index
    %32 = vector.load %arg1[%c0_38, %c2_39, %c2_40, %c0_41] : memref<1x18x18x128xbf16, #tpu.memory_space<vmem>>, vector<1x16x16x128xbf16>
    %33 = vector.shape_cast %32 : vector<1x16x16x128xbf16> to vector<16x16x128xbf16>
    %34 = vector.shape_cast %33 : vector<16x16x128xbf16> to vector<256x128xbf16>
    %c0_42 = arith.constant 0 : index
    %c1024 = arith.constant 1024 : index
    %35 = vector.load %arg5[%c0_42, %c1024] : memref<256x1152xbf16, #tpu.memory_space<vmem>>, vector<256x128xbf16>
    tpu.vector_store %arg5[%c0_42, %c1024], %34 {strides = array<i32>} : memref<256x1152xbf16, #tpu.memory_space<vmem>>, vector<256x128xbf16>,
    %c0_43 = arith.constant 0 : index
    %c0_44 = arith.constant 0 : index
    %36 = vector.load %arg5[%c0_43, %c0_44] : memref<256x1152xbf16, #tpu.memory_space<vmem>>, vector<256x1152xbf16>
    %c0_45 = arith.constant 0 : index
    %c0_46 = arith.constant 0 : index
    %37 = vector.load %arg2[%c0_45, %c0_46] : memref<1152x128xbf16, #tpu.memory_space<vmem>>, vector<1152x128xbf16>
    %cst = arith.constant dense<0.000000e+00> : vector<256x128xf32>
    %38 = tpu.matmul %36, %37, %cst {dimension_numbers = #tpu.dot_dimension_numbers<[1], [0], [0], [1], [0, 0, 1, 1], [], []>} : vector<256x1152xbf16>, vector<1152x128xbf16>, vector<256x128xf32> -> vector<256x128xf32>
    %c0_47 = arith.constant 0 : index
    %c0_48 = arith.constant 0 : index
    %c0_49 = arith.constant 0 : index
    %39 = vector.load %arg3[%c0_47, %c0_48, %c0_49] : memref<1x256x128xf32, #tpu.memory_space<vmem>>, vector<1x256x128xf32>
    %40 = vector.shape_cast %39 : vector<1x256x128xf32> to vector<256x128xf32>
    %41 = vector.shape_cast %38 : vector<256x128xf32> to vector<1x256x128xf32>
    tpu.vector_store %arg3[%c0_47, %c0_48, %c0_49], %41 {strides = array<i32>} : memref<1x256x128xf32, #tpu.memory_space<vmem>>, vector<1x256x128xf32>,
    %cst_50 = arith.constant dense<0.000000e+00> : vector<128xf32>
    %42 = vector.multi_reduction <add>, %38, %cst_50 [0] : vector<256x128xf32> to vector<128xf32>
    %43 = vector.shape_cast %42 : vector<128xf32> to vector<1x128xf32>
    %c0_51 = arith.constant 0 : index
    %c0_52 = arith.constant 0 : index
    %c0_53 = arith.constant 0 : index
    %44 = vector.load %arg4[%c0_51, %c0_52, %c0_53] : memref<1x2x128xf32, #tpu.memory_space<vmem>>, vector<1x1x128xf32>
    %45 = vector.shape_cast %44 : vector<1x1x128xf32> to vector<1x128xf32>
    %46 = vector.shape_cast %43 : vector<1x128xf32> to vector<1x1x128xf32>
    tpu.vector_store %arg4[%c0_51, %c0_52, %c0_53], %46 {strides = array<i32>} : memref<1x2x128xf32, #tpu.memory_space<vmem>>, vector<1x1x128xf32>,
    %47 = arith.mulf %38, %38 : vector<256x128xf32>
    %cst_54 = arith.constant dense<0.000000e+00> : vector<128xf32>
    %48 = vector.multi_reduction <add>, %47, %cst_54 [0] : vector<256x128xf32> to vector<128xf32>
    %49 = vector.shape_cast %48 : vector<128xf32> to vector<1x128xf32>
    %c0_55 = arith.constant 0 : index
    %c1_56 = arith.constant 1 : index
    %c0_57 = arith.constant 0 : index
    %50 = vector.load %arg4[%c0_55, %c1_56, %c0_57] : memref<1x2x128xf32, #tpu.memory_space<vmem>>, vector<1x1x128xf32>
    %51 = vector.shape_cast %50 : vector<1x1x128xf32> to vector<1x128xf32>
    %52 = vector.shape_cast %49 : vector<1x128xf32> to vector<1x1x128xf32>
    tpu.vector_store %arg4[%c0_55, %c1_56, %c0_57], %52 {strides = array<i32>} : memref<1x2x128xf32, #tpu.memory_space<vmem>>, vector<1x1x128xf32>,
    return
  }
  func.func @transform_0(%arg0: i32) -> (i32, i32, i32, i32) {
    %c0_i32 = arith.constant 0 : i32
    %c0_i32_0 = arith.constant 0 : i32
    %c0_i32_1 = arith.constant 0 : i32
    %c0_i32_2 = arith.constant 0 : i32
    return %arg0, %c0_i32, %c0_i32_0, %c0_i32_1 : i32, i32, i32, i32
  }
  func.func @transform_1(%arg0: i32) -> (i32, i32) {
    %c0_i32 = arith.constant 0 : i32
    %c0_i32_0 = arith.constant 0 : i32
    %c0_i32_1 = arith.constant 0 : i32
    return %c0_i32, %c0_i32_0 : i32, i32
  }
  func.func @transform_2(%arg0: i32) -> (i32, i32, i32) {
    %c0_i32 = arith.constant 0 : i32
    %c0_i32_0 = arith.constant 0 : i32
    %c0_i32_1 = arith.constant 0 : i32
    return %arg0, %c0_i32, %c0_i32_0 : i32, i32, i32
  }
  func.func @transform_3(%arg0: i32) -> (i32, i32, i32) {
    %c0_i32 = arith.constant 0 : i32
    %c0_i32_0 = arith.constant 0 : i32
    %c0_i32_1 = arith.constant 0 : i32
    return %arg0, %c0_i32, %c0_i32_0 : i32, i32, i32
  }
}

</mosaic_0001>

<bundles_post_ra>
// kernel: tpu_custom_call.1
= control target key start
LH: loop header
LB: loop body
LE: loop exit
PB: predicated region body
PF: predicated region fallthrough
CT: control target
= control target key end

     0   :  { %9 = vsyncpa [#allocation4], 0  ;;  %s8388_s0 = inlined_call_operand.vmem [shape: bf16[2,18,18,128], index: 0, kind: input, shape index: {}]   ;;  %s8389_s1 = inlined_call_operand.vmem [shape: bf16[1152,128], index: 1, kind: input, shape index: {}]   ;;  %s8390_s2 = inlined_call_operand.hbm [shape: f32[2,256,128], index: 2, kind: output, shape index: {0}]   ;;  %s8391_s3 = inlined_call_operand.hbm [shape: f32[2,2,128], index: 3, kind: output, shape index: {1}]  }
   0x1   :  { %11 = vsyncpa [#allocation4 + $0x1], 0 }
   0x2   :  { %12 = vsyncpa [#allocation6], 0 }
   0x3   :  { %14 = vsyncpa [#allocation6 + $0x1], 0  ;;  %s6742_s12 = smov 0   ;;  %s6744_s13 = smov 0  }
   0x4   :  { %s6746_s14 = smov 0   ;;  %s6748_s15 = smov 0  }
   0x5 LB: > { %s6763_s16 = sadd.s32 4294967295, %s6716_s15   ;;  %s5228_s17 = sadd.s32 4294967294, %s6716_s15   ;;  %s6716_s15 = sphi %s6748_s15, %s8423_s15   ;;  %s6712_s14 = sphi %s6746_s14, %s8422_s14   ;;  %s6708_s13 = sphi %s6744_s13, %s8421_s13   ;;  %s6704_s12 = sphi %s6742_s12, %s8420_s12  }
   0x6   : > { %s6767_s18 = sadd.s32 1, %s6716_s15   ;;  %s74_s19 = sadd.s32 1, %s6712_s14 }
   0x7   : > { %s71_s20 = ssub.s32 %s6716_s15, %s6767_s18  ;;  %p84_p0 = scmp.ne.s32.totalorder %s6712_s14, %s6708_s13 }
   0x8   : > { %p72_p1 = scmp.eq.s32.totalorder %s71_s20, 0  ;;  %p85_p2 = scmp.eq.s32.totalorder %s6763_s16, 1 }
   0x9   : > { %p90_p3 = scmp.ne.s32.totalorder %s6708_s13, %s6704_s12  ;;  %p91_p4 = scmp.eq.s32.totalorder %s5228_s17, 1 }
   0xa   : > { %s6778_s21 = scalar_select %p72_p1, %s6712_s14, %s74_s19  }
   0xb   : > { %p6780_p5 = por %p85_p2, %p84_p0  ;;  %p6784_p6 = por %p91_p4, %p90_p3 }
   0xc   : > { %p5231_p7 = scmp.ge.s32.totalorder %s6716_s15, 1  ;;  %p146_p8 = scmp.lt.s32.totalorder %s6716_s15, 3 }
   0xe   : > { %p147_p9 = pnand %p5231_p7, %p146_p8 }
  0x10   : > { %150 = sbr.rel (%p147_p9) target bundleno = 704 (0x2c0), region = 28 }
  0x15   : > { %v6346_v0 = vld [vmem:[%s8389_s1 + $0x78] sm:$0xff]   ;;  %p175_p10 = scmp.lt.s32.totalorder %s6763_s16, 1  ;;  %v6348_v2 = vld [vmem:[%s8389_s1 + $0x70] sm:$0xff]   ;;  %v6350_v4 = vld [vmem:[%s8389_s1 + $0x68] sm:$0xff]   ;;  %vm293_vm0 = vsmask.f32 3328 }
  0x16   : > { %v6347_v1 = vld [vmem:[%s8389_s1 + $0x38] sm:$0xff]   ;;  %5763 = vmatprep.subr.bf16.mxu0 %v6346_v0  ;;  %6283 = vmatprep.subr.bf16.mxu1 %v6346_v0  ;;  %v6349_v3 = vld [vmem:[%s8389_s1 + $0x30] sm:$0xff]   ;;  %v6351_v5 = vld [vmem:[%s8389_s1 + $0x28] sm:$0xff]   ;;  %vm294_vm1 = vsmask.f32 7440  ;;  %vm840_vm3 = vcmask 1042432  }
  0x17   : > { %5764 = vmatpush3.bf16.msra.mxu0 %v6347_v1  ;;  %6291 = vmatpush3.bf16.msra.mxu1 %v6347_v1  ;;  %s176_s7 = scalar_select %p175_p10, %s6763_s16, 1  ;;  %v6352_v6 = vld [vmem:[%s8389_s1 + $0x60] sm:$0xff]   ;;  %v6354_v8 = vld [vmem:[%s8389_s1 + $0x58] sm:$0xff]   ;;  %v6356_v10 = vld [vmem:[%s8389_s1 + $0x50] sm:$0xff]   ;;  %vm841_vm4 = vcmask 1046532  }
  0x18   : > { %5765 = vmatprep.subr.bf16.mxu0 %v6348_v2  ;;  %6284 = vmatprep.subr.bf16.mxu1 %v6348_v2  ;;  %v6353_v7 = vld [vmem:[%s8389_s1 + $0x20] sm:$0xff]   ;;  %v6355_v9 = vld [vmem:[%s8389_s1 + $0x18] sm:$0xff]   ;;  %v6357_v16 = vld [vmem:[%s8389_s1 + $0x10] sm:$0xff]   ;;  %s5762_s11 = sshll.u32 %s6763_s16, 12  ;;  %s6718_s27 = smov [#allocation3]  }
  0x19   : > { %s6299_s17 = smul.u32 216, %s176_s7  ;;  %v6358_v24 = vld [vmem:[%s8389_s1 + $0x48] sm:$0xff]   ;;  %v6360_v34 = vld [vmem:[%s8389_s1 + $0x40] sm:$0xff]   ;;  %vm6854_vm2 = vmor %vm293_vm0, %vm294_vm1  ;;  %s8324_s24 = scalar_lea.hbm %s8390_s2, %s5762_s11 }
  0x1a   : > { %v6359_v29 = vld [vmem:[%s8389_s1 + $0x8] sm:$0xff]   ;;  %v6361_v47 = vld [vmem:[%s8389_s1] sm:$0xff]   ;;  %v6368_v55 = vld [vmem:[%s8389_s1 + $0xf8] sm:$0xff]   ;;  %s6630_s29 = sshll.u32 %s6718_s27, 4  ;;  %s6631_s29 = int_to_ptr.vmem [resolvable:$false] %s6630_s29 }
  0x1b   : > { %5766 = vmatpush3.bf16.msra.mxu0 %v6349_v3  ;;  %6292 = vmatpush3.bf16.msra.mxu1 %v6349_v3  ;;  %s6822_s28 = scalar_lea.vmem %s8388_s0, %s6299_s17  ;;  %v6369_v57 = vld [vmem:[%s8389_s1 + $0x178] sm:$0xff]   ;;  %vm6997_vm5 = vmor %vm840_vm3, %vm841_vm4  ;;  %s6632_s30 = scalar_lea.vmem %s6631_s29, 8192 }
  0x1c   : > { %5767 = vmatprep.subr.bf16.mxu0 %v6350_v4  ;;  %6285 = vmatprep.subr.bf16.mxu1 %v6350_v4  ;;  %v181_v11 = vld [vmem:[%s6822_s28] sm:$0xf]  ;;  %v182_v12 = vld [vmem:[%s6822_s28 + $0x4] sm:$0xf]  ;;  %v247_v15 = vld [vmem:[%s6822_s28 + $0x8] sm:$0x1] }
  0x1d   : > { %v245_v13 = vld [vmem:[%s6822_s28] sm:$0xf]  ;;  %213 = vst [vmem:[#allocation2] sm:$0xf] %v181_v11  ;;  %214 = vst [vmem:[#allocation2 + $0x24] sm:$0xf] %v182_v12 }
  0x1e   : > { %v246_v14 = vld [vmem:[%s6822_s28 + $0x4] sm:$0xf]  ;;  %v297_v17 = vshrl.u32 %v245_v13, 16  ;;  %v300_v18 = vshll.u32 %v245_v13, 16  ;;  %v316_v21 = vshll.u32 %v247_v15, 16 }
  0x1f   : > { %5768 = vmatpush3.bf16.msra.mxu0 %v6351_v5  ;;  %6293 = vmatpush3.bf16.msra.mxu1 %v6351_v5  ;;  %v306_v19 = vshll.u32 %v246_v14, 16  ;;  %v310_v20 = vshrl.u32 %v246_v14, 16  ;;  %v205_v22 = vld [vmem:[%s6822_s28 + $0x90] sm:$0xf]  ;;  %v206_v23 = vld [vmem:[%s6822_s28 + $0x94] sm:$0xf] }
  0x20   : > { %5769 = vmatprep.subr.bf16.mxu0 %v6352_v6  ;;  %6286 = vmatprep.subr.bf16.mxu1 %v6352_v6  ;;  %v299_v25 = vrot.slane %v297_v17, 4  ;;  %v302_v26 = vrot.slane %v300_v18, 5  ;;  %237 = vst [vmem:[#allocation2 + $0x360] sm:$0xf] %v205_v22  ;;  %238 = vst [vmem:[#allocation2 + $0x384] sm:$0xf] %v206_v23 }
  0x21   : > { %v308_v27 = vrot.slane %v306_v19, 5  ;;  %v281_v28 = vld [vmem:[%s6822_s28 + $0x90] sm:$0xf]  ;;  %v312_v30 = vrot.slane %v310_v20, 4  ;;  %v318_v31 = vrot.slane %v316_v21, 5 }
  0x22   : > { %v282_v32 = vld [vmem:[%s6822_s28 + $0x94] sm:$0xf]  ;;  %v283_v33 = vld [vmem:[%s6822_s28 + $0x98] sm:$0x1]  ;;  %v303_v35 = vor.u32 %v302_v26, %v299_v25  ;;  %v585_v36 = vshrl.u32 %v281_v28, 16  ;;  %v588_v37 = vshll.u32 %v281_v28, 16 }
  0x23   : > { %5770 = vmatpush3.bf16.msra.mxu0 %v6353_v7  ;;  %6294 = vmatpush3.bf16.msra.mxu1 %v6353_v7  ;;  %v594_v38 = vshll.u32 %v282_v32, 16  ;;  %v313_v40 = vor.u32 %v312_v30, %v308_v27  ;;  %v598_v41 = vshrl.u32 %v282_v32, 16  ;;  %v604_v42 = vshll.u32 %v283_v33, 16  ;;  %v183_v59 = vld [vmem:[%s6822_s28 + $0xc] sm:$0xf]  ;;  %v6370_v28 = vld [vmem:[%s8389_s1 + $0xb8] sm:$0xff]  }
  0x24   : > { %5771 = vmatprep.subr.bf16.mxu0 %v6354_v8  ;;  %6287 = vmatprep.subr.bf16.mxu1 %v6354_v8  ;;  %v304_v43 = vrot.slane %v303_v35, 4  ;;  %v587_v44 = vrot.slane %v585_v36, 4  ;;  %v590_v45 = vrot.slane %v588_v37, 5  ;;  %v184_v60 = vld [vmem:[%s6822_s28 + $0x10] sm:$0xf] }
  0x25   : > { %v596_v46 = vrot.slane %v594_v38, 5  ;;  %v314_v48 = vrot.slane %v313_v40, 4  ;;  %v600_v49 = vrot.slane %v598_v41, 4  ;;  %v606_v54 = vrot.slane %v604_v42, 5  ;;  %215 = vst [vmem:[#allocation2 + $0x48] sm:$0xf] %v183_v59 }
  0x26   : > { %v309_v50 = vsel %vm6854_vm2, %v304_v43, %v308_v27  ;;  %v591_v51 = vor.u32 %v590_v45, %v587_v44  ;;  %216 = vst [vmem:[#allocation2 + $0x6c] sm:$0xf] %v184_v60  ;;  %v248_v62 = vld [vmem:[%s6822_s28 + $0xc] sm:$0xf]  ;;  %v249_v63 = vld [vmem:[%s6822_s28 + $0x10] sm:$0xf] }
  0x27   : > { %5772 = vmatpush3.bf16.msra.mxu0 %v6355_v9  ;;  %6295 = vmatpush3.bf16.msra.mxu1 %v6355_v9  ;;  %v319_v52 = vsel %vm6854_vm2, %v314_v48, %v318_v31  ;;  %712 = vst [vmem:[#allocation2 + $0x4] sm:$0xf] %v309_v50  ;;  %v601_v53 = vor.u32 %v600_v49, %v596_v46  ;;  %v250_v0 = vld [vmem:[%s6822_s28 + $0x14] sm:$0x1]  ;;  %v321_v2 = vshrl.u32 %v248_v62, 16  ;;  %v324_v3 = vshll.u32 %v248_v62, 16 }
  0x28   : > { %5773 = vmatprep.subr.bf16.mxu0 %v6356_v10  ;;  %6288 = vmatprep.subr.bf16.mxu1 %v6356_v10  ;;  %713 = vst [vmem:[#allocation2 + $0x28] sm:$0xf] %v319_v52  ;;  %v592_v56 = vrot.slane %v591_v51, 4  ;;  %v330_v4 = vshll.u32 %v249_v63, 16  ;;  %v207_v5 = vld [vmem:[%s6822_s28 + $0x9c] sm:$0xf] }
  0x29   : > { %v602_v58 = vrot.slane %v601_v53, 4  ;;  %v334_v6 = vshrl.u32 %v249_v63, 16  ;;  %v340_v7 = vshll.u32 %v250_v0, 16  ;;  %v208_v8 = vld [vmem:[%s6822_s28 + $0xa0] sm:$0xf]  ;;  %v6371_v10 = vld [vmem:[%s8389_s1 + $0x138] sm:$0xff]  }
  0x2a   : > { %v597_v61 = vsel %vm6854_vm2, %v592_v56, %v596_v46  ;;  %239 = vst [vmem:[#allocation2 + $0x3a8] sm:$0xf] %v207_v5  ;;  %v284_v9 = vld [vmem:[%s6822_s28 + $0x9c] sm:$0xf]  ;;  %v323_v11 = vrot.slane %v321_v2, 4  ;;  %v326_v12 = vrot.slane %v324_v3, 5 }
  0x2b   : > { %5774 = vmatpush3.bf16.msra.mxu0 %v6357_v16  ;;  %6296 = vmatpush3.bf16.msra.mxu1 %v6357_v16  ;;  %v607_v1 = vsel %vm6854_vm2, %v602_v58, %v606_v54  ;;  %736 = vst [vmem:[#allocation2 + $0x364] sm:$0xf] %v597_v61  ;;  %v332_v13 = vrot.slane %v330_v4, 5  ;;  %240 = vst [vmem:[#allocation2 + $0x3cc] sm:$0xf] %v208_v8  ;;  %v609_v15 = vshrl.u32 %v284_v9, 16 }
  0x2c   : > { %5775 = vmatprep.subr.bf16.mxu0 %v6358_v24  ;;  %6289 = vmatprep.subr.bf16.mxu1 %v6358_v24  ;;  %737 = vst [vmem:[#allocation2 + $0x388] sm:$0xf] %v607_v1  ;;  %v285_v14 = vld [vmem:[%s6822_s28 + $0xa0] sm:$0xf]  ;;  %v336_v16 = vrot.slane %v334_v6, 4  ;;  %v342_v17 = vrot.slane %v340_v7, 5  ;;  %v327_v22 = vor.u32 %v326_v12, %v323_v11 }
  0x2d   : > { %v286_v18 = vld [vmem:[%s6822_s28 + $0xa4] sm:$0x1]  ;;  %v612_v19 = vshll.u32 %v284_v9, 16  ;;  %v611_v23 = vrot.slane %v609_v15, 4  ;;  %v618_v26 = vshll.u32 %v285_v14, 16  ;;  %v622_v27 = vshrl.u32 %v285_v14, 16 }
  0x2e   : > { %v6362_v20 = vld [vmem:[#allocation2] ss:$36 sps:$4 sm:$0xff]   ;;  %v337_v24 = vor.u32 %v336_v16, %v332_v13  ;;  %v628_v30 = vshll.u32 %v286_v18, 16  ;;  %v6372_v31 = vld [vmem:[%s8389_s1 + $0xf0] sm:$0xff]   ;;  %v6380_v48 = vld [vmem:[%s8389_s1 + $0xe8] sm:$0xff]  }
  0x2f   : > { %5776 = vmatpush3.bf16.msra.mxu0 %v6359_v29  ;;  %6297 = vmatpush3.bf16.msra.mxu1 %v6359_v29  ;;  %v6364_v21 = vld [vmem:[#allocation2 + $0x4] ss:$36 sps:$4 sm:$0xff]   ;;  %v614_v25 = vrot.slane %v612_v19, 5  ;;  %v328_v29 = vrot.slane %v327_v22, 4  ;;  %v624_v35 = vrot.slane %v622_v27, 4  ;;  %v6383_v44 = vld [vmem:[%s8389_s1 + $0x170] sm:$0xff]  }
  0x30   : > { %5777 = vmatprep.subr.bf16.mxu0 %v6360_v34  ;;  %6290 = vmatprep.subr.bf16.mxu1 %v6360_v34  ;;  %v338_v32 = vrot.slane %v337_v24, 4  ;;  %v620_v34 = vrot.slane %v618_v26, 5  ;;  %v6365_v36 = vld [vmem:[#allocation2 + $0x360] ss:$36 sps:$4 sm:$0xff]   ;;  %v630_v40 = vrot.slane %v628_v30, 5  ;;  %v6373_v45 = vld [vmem:[%s8389_s1 + $0xb0] sm:$0xff]  }
  0x31   : > { %4189 = vmatprep.mubr.bf16.mxu0 %v6364_v21  ;;  %v615_v33 = vor.u32 %v614_v25, %v611_v23  ;;  %v333_v38 = vsel %vm6854_vm2, %v328_v29, %v332_v13  ;;  %v6385_v49 = vld [vmem:[%s8389_s1 + $0x130] sm:$0xff]   ;;  %v185_v50 = vld [vmem:[%s6822_s28 + $0x18] sm:$0xf]  ;;  %v186_v52 = vld [vmem:[%s6822_s28 + $0x1c] sm:$0xf] }
  0x32   : > { %v343_v41 = vsel %vm6854_vm2, %v338_v32, %v342_v17  ;;  %714 = vst [vmem:[#allocation2 + $0x4c] sm:$0xf] %v333_v38  ;;  %v625_v43 = vor.u32 %v624_v35, %v620_v34  ;;  %217 = vst [vmem:[#allocation2 + $0x90] sm:$0xf] %v185_v50  ;;  %v251_v53 = vld [vmem:[%s6822_s28 + $0x18] sm:$0xf] }
  0x33   : > { %5778 = vmatpush3.bf16.msra.mxu0 %v6361_v47  ;;  %6298 = vmatpush3.bf16.msra.mxu1 %v6361_v47  ;;  %v6367_v37 = vld [vmem:[#allocation2 + $0x364] ss:$36 sps:$4 sm:$0xff]   ;;  %v616_v42 = vrot.slane %v615_v33, 4  ;;  %715 = vst [vmem:[#allocation2 + $0x70] sm:$0xf] %v343_v41  ;;  %v345_v56 = vshrl.u32 %v251_v53, 16 }
  0x34   : > { %5875 = vmatprep.subr.bf16.mxu1 %v6368_v55  ;;  %5987 = vmatprep.subr.bf16.mxu0 %v6369_v57  ;;  %v626_v47 = vrot.slane %v625_v43, 4  ;;  %v252_v54 = vld [vmem:[%s6822_s28 + $0x1c] sm:$0xf]  ;;  %218 = vst [vmem:[#allocation2 + $0xb4] sm:$0xf] %v186_v52  ;;  %v348_v57 = vshll.u32 %v251_v53, 16 }
  0x35   : > { %4285 = vmatprep.mubr.bf16.mxu1 %v6367_v37  ;;  %v621_v46 = vsel %vm6854_vm2, %v616_v42, %v620_v34  ;;  %v253_v55 = vld [vmem:[%s6822_s28 + $0x20] sm:$0x1]  ;;  %v354_v58 = vshll.u32 %v252_v54, 16  ;;  %v358_v59 = vshrl.u32 %v252_v54, 16  ;;  %v6381_v60 = vld [vmem:[%s8389_s1 + $0xa8] sm:$0xff]   ;;  %v347_v1 = vrot.slane %v345_v56, 4 }
  0x36   : > { %4190 = vmatmul.mubr.bf16.vlgmr.msra.gmra.mxu0 %v6362_v20  ;;  %4286 = vmatmul.mubr.bf16.vlgmr.msra.gmra.mxu1 %v6365_v36  ;;  %738 = vst [vmem:[#allocation2 + $0x3ac] sm:$0xf] %v621_v46  ;;  %v631_v51 = vsel %vm6854_vm2, %v626_v47, %v630_v40  ;;  %v364_v61 = vshll.u32 %v253_v55, 16  ;;  %v209_v62 = vld [vmem:[%s6822_s28 + $0xa8] sm:$0xf]  ;;  %v6382_v0 = vld [vmem:[%s8389_s1 + $0xe0] sm:$0xff]  }
  0x37   : > { %5988 = vmatpush3.bf16.msra.mxu0 %v6371_v10  ;;  %5876 = vmatpush3.bf16.msra.mxu1 %v6370_v28  ;;  %739 = vst [vmem:[#allocation2 + $0x3d0] sm:$0xf] %v631_v51  ;;  %v210_v63 = vld [vmem:[%s6822_s28 + $0xac] sm:$0xf]  ;;  %v350_v2 = vrot.slane %v348_v57, 5  ;;  %v356_v3 = vrot.slane %v354_v58, 5 }
  0x38   : > { %5989 = vmatprep.subr.bf16.mxu0 %v6383_v44  ;;  %5877 = vmatprep.subr.bf16.mxu1 %v6372_v31  ;;  %v360_v4 = vrot.slane %v358_v59, 4  ;;  %241 = vst [vmem:[#allocation2 + $0x3f0] sm:$0xf] %v209_v62  ;;  %242 = vst [vmem:[#allocation2 + $0x414] sm:$0xf] %v210_v63  ;;  %v366_v7 = vrot.slane %v364_v61, 5 }
  0x39   : > { %v6378_v6 = vld [vmem:[#allocation2 + $0x48] ss:$36 sps:$4 sm:$0xff]   ;;  %v351_v8 = vor.u32 %v350_v2, %v347_v1  ;;  %v289_v12 = vld [vmem:[%s6822_s28 + $0xb0] sm:$0x1]  ;;  %v6384_v13 = vld [vmem:[%s8389_s1 + $0xa0] sm:$0xff]  }
  0x3a   : > { %v6374_v5 = vld [vmem:[#allocation2 + $0x4c] ss:$36 sps:$4 sm:$0xff]   ;;  %v361_v9 = vor.u32 %v360_v4, %v356_v3  ;;  %v287_v10 = vld [vmem:[%s6822_s28 + $0xa8] sm:$0xf]  ;;  %v652_v20 = vshll.u32 %v289_v12, 16  ;;  %v6392_v21 = vld [vmem:[%s8389_s1 + $0xd8] sm:$0xff]  }
  0x3b   : > { %5990 = vmatpush3.bf16.msra.mxu0 %v6385_v49  ;;  %5878 = vmatpush3.bf16.msra.mxu1 %v6373_v45  ;;  %v288_v11 = vld [vmem:[%s6822_s28 + $0xac] sm:$0xf]  ;;  %v633_v14 = vshrl.u32 %v287_v10, 16  ;;  %v636_v15 = vshll.u32 %v287_v10, 16  ;;  %v352_v18 = vrot.slane %v351_v8, 4  ;;  %v6393_v31 = vld [vmem:[%s8389_s1 + $0x98] sm:$0xff]  }
  0x3c   : > { %5879 = vmatprep.subr.bf16.mxu1 %v6380_v48  ;;  %4197 = vmatprep.mubr.bf16.mxu0 %v6374_v5  ;;  %v642_v16 = vshll.u32 %v288_v11, 16  ;;  %v646_v17 = vshrl.u32 %v288_v11, 16  ;;  %v362_v19 = vrot.slane %v361_v9, 4  ;;  %v6379_v23 = vld [vmem:[#allocation2 + $0x3a8] ss:$36 sps:$4 sm:$0xff]   ;;  %v654_v30 = vrot.slane %v652_v20, 5 }
  0x3d   : > { %v635_v24 = vrot.slane %v633_v14, 4  ;;  %v357_v25 = vsel %vm6854_vm2, %v352_v18, %v356_v3  ;;  %v638_v27 = vrot.slane %v636_v15, 5  ;;  %v6394_v33 = vld [vmem:[%s8389_s1 + $0xd0] sm:$0xff]   ;;  %v187_v35 = vld [vmem:[%s6822_s28 + $0x24] sm:$0xf]  ;;  %v6402_v59 = vld [vmem:[%s8389_s1 + $0xc8] sm:$0xff]  }
  0x3e   : > { %4198 = vmatmul.mubr.bf16.gmra.mxu0 %v6378_v6  ;;  %v6376_v22 = vld [vmem:[#allocation2 + $0x3ac] ss:$36 sps:$4 sm:$0xff]   ;;  %v367_v26 = vsel %vm6854_vm2, %v362_v19, %v366_v7  ;;  %v644_v28 = vrot.slane %v642_v16, 5  ;;  %716 = vst [vmem:[#allocation2 + $0x94] sm:$0xf] %v357_v25  ;;  %v648_v29 = vrot.slane %v646_v17, 4 }
  0x3f   : > { %5880 = vmatpush3.bf16.msra.mxu1 %v6381_v60  ;;  %4293 = vmatprep.mubr.bf16.mxu1 %v6376_v22  ;;  %717 = vst [vmem:[#allocation2 + $0xb8] sm:$0xf] %v367_v26  ;;  %v639_v32 = vor.u32 %v638_v27, %v635_v24  ;;  %v188_v36 = vld [vmem:[%s6822_s28 + $0x28] sm:$0xf]  ;;  %v254_v37 = vld [vmem:[%s6822_s28 + $0x24] sm:$0xf] }
  0x40   : > { %5881 = vmatprep.subr.bf16.mxu1 %v6382_v0  ;;  %4294 = vmatmul.mubr.bf16.gmra.mxu1 %v6379_v23  ;;  %v649_v34 = vor.u32 %v648_v29, %v644_v28  ;;  %219 = vst [vmem:[#allocation2 + $0xd8] sm:$0xf] %v187_v35  ;;  %220 = vst [vmem:[#allocation2 + $0xfc] sm:$0xf] %v188_v36  ;;  %v255_v40 = vld [vmem:[%s6822_s28 + $0x28] sm:$0xf] }
  0x41   : > { %v640_v38 = vrot.slane %v639_v32, 4  ;;  %v256_v41 = vld [vmem:[%s6822_s28 + $0x2c] sm:$0x1]  ;;  %v369_v42 = vshrl.u32 %v254_v37, 16  ;;  %v6395_v44 = vld [vmem:[%s8389_s1 + $0x90] sm:$0xff]   ;;  %v372_v45 = vshll.u32 %v254_v37, 16 }
  0x42   : > { %v650_v43 = vrot.slane %v649_v34, 4  ;;  %v378_v46 = vshll.u32 %v255_v40, 16  ;;  %v382_v47 = vshrl.u32 %v255_v40, 16  ;;  %v211_v48 = vld [vmem:[%s6822_s28 + $0xb4] sm:$0xf]  ;;  %v388_v51 = vshll.u32 %v256_v41, 16 }
  0x43   : > { %5882 = vmatpush3.bf16.msra.mxu1 %v6384_v13  ;;  %v645_v49 = vsel %vm6854_vm2, %v640_v38, %v644_v28  ;;  %v371_v50 = vrot.slane %v369_v42, 4  ;;  %v212_v52 = vld [vmem:[%s6822_s28 + $0xb8] sm:$0xf]  ;;  %243 = vst [vmem:[#allocation2 + $0x438] sm:$0xf] %v211_v48  ;;  %v374_v55 = vrot.slane %v372_v45, 5 }
  0x44   : > { %5883 = vmatprep.subr.bf16.mxu1 %v6392_v21  ;;  %v290_v53 = vld [vmem:[%s6822_s28 + $0xb4] sm:$0xf]  ;;  %v655_v54 = vsel %vm6854_vm2, %v650_v43, %v654_v30  ;;  %740 = vst [vmem:[#allocation2 + $0x3f4] sm:$0xf] %v645_v49  ;;  %v380_v56 = vrot.slane %v378_v46, 5  ;;  %v384_v57 = vrot.slane %v382_v47, 4 }
  0x45   : > { %244 = vst [vmem:[#allocation2 + $0x45c] sm:$0xf] %v212_v52  ;;  %v291_v58 = vld [vmem:[%s6822_s28 + $0xb8] sm:$0xf]  ;;  %741 = vst [vmem:[#allocation2 + $0x418] sm:$0xf] %v655_v54  ;;  %v375_v0 = vor.u32 %v374_v55, %v371_v50 }
  0x46   : > { %v6386_v60 = vld [vmem:[#allocation2 + $0x94] ss:$36 sps:$4 sm:$0xff]   ;;  %v390_v61 = vrot.slane %v388_v51, 5  ;;  %v657_v62 = vshrl.u32 %v290_v53, 16  ;;  %v385_v1 = vor.u32 %v384_v57, %v380_v56  ;;  %v292_v2 = vld [vmem:[%s6822_s28 + $0xbc] sm:$0x1] }
  0x47   : > { %5884 = vmatpush3.bf16.msra.mxu1 %v6393_v31  ;;  %v6390_v63 = vld [vmem:[#allocation2 + $0x90] ss:$36 sps:$4 sm:$0xff]   ;;  %v660_v3 = vshll.u32 %v290_v53, 16  ;;  %v666_v4 = vshll.u32 %v291_v58, 16  ;;  %4205 = vmatprep.mubr.bf16.mxu0 %v6386_v60  ;;  %v670_v6 = vshrl.u32 %v291_v58, 16  ;;  %v676_v7 = vshll.u32 %v292_v2, 16 }
  0x48   : > { %5885 = vmatprep.subr.bf16.mxu1 %v6394_v33  ;;  %v659_v5 = vrot.slane %v657_v62, 4  ;;  %v6403_v8 = vld [vmem:[%s8389_s1 + $0x168] sm:$0xff]   ;;  %4206 = vmatmul.mubr.bf16.gmra.mxu0 %v6390_v63  ;;  %v376_v9 = vrot.slane %v375_v0, 4  ;;  %v386_v10 = vrot.slane %v385_v1, 4  ;;  %v6391_v21 = vld [vmem:[#allocation2 + $0x3f0] ss:$36 sps:$4 sm:$0xff]  }
  0x49   : > { %v662_v11 = vrot.slane %v660_v3, 5  ;;  %v668_v12 = vrot.slane %v666_v4, 5  ;;  %v672_v13 = vrot.slane %v670_v6, 4  ;;  %5991 = vmatprep.subr.bf16.mxu0 %v6403_v8  ;;  %v6404_v17 = vld [vmem:[%s8389_s1 + $0x88] sm:$0xff]   ;;  %v678_v19 = vrot.slane %v676_v7, 5  ;;  %v6406_v26 = vld [vmem:[%s8389_s1 + $0xc0] sm:$0xff]  }
  0x4a   : > { %v381_v14 = vsel %vm6854_vm2, %v376_v9, %v380_v56  ;;  %v391_v15 = vsel %vm6854_vm2, %v386_v10, %v390_v61  ;;  %v6405_v24 = vld [vmem:[%s8389_s1 + $0x128] sm:$0xff]   ;;  %v6407_v28 = vld [vmem:[%s8389_s1 + $0x80] sm:$0xff]   ;;  %v189_v29 = vld [vmem:[%s6822_s28 + $0x30] sm:$0xf] }
  0x4b   : > { %5886 = vmatpush3.bf16.msra.mxu1 %v6395_v44  ;;  %v663_v16 = vor.u32 %v662_v11, %v659_v5  ;;  %718 = vst [vmem:[#allocation2 + $0xdc] sm:$0xf] %v381_v14  ;;  %719 = vst [vmem:[#allocation2 + $0x100] sm:$0xf] %v391_v15  ;;  %v673_v18 = vor.u32 %v672_v13, %v668_v12  ;;  %5992 = vmatpush3.bf16.msra.mxu0 %v6405_v24  ;;  %v190_v30 = vld [vmem:[%s6822_s28 + $0x34] sm:$0xf] }
  0x4c   : > { %5887 = vmatprep.subr.bf16.mxu1 %v6402_v59  ;;  %v6388_v20 = vld [vmem:[#allocation2 + $0x3f4] ss:$36 sps:$4 sm:$0xff]   ;;  %221 = vst [vmem:[#allocation2 + $0x120] sm:$0xf] %v189_v29  ;;  %222 = vst [vmem:[#allocation2 + $0x144] sm:$0xf] %v190_v30 }
  0x4d   : > { %v664_v22 = vrot.slane %v663_v16, 4  ;;  %v674_v23 = vrot.slane %v673_v18, 4  ;;  %4301 = vmatprep.mubr.bf16.mxu1 %v6388_v20  ;;  %v257_v31 = vld [vmem:[%s6822_s28 + $0x30] sm:$0xf]  ;;  %v258_v32 = vld [vmem:[%s6822_s28 + $0x34] sm:$0xf] }
  0x4e   : > { %4302 = vmatmul.mubr.bf16.gmra.mxu1 %v6391_v21  ;;  %v259_v33 = vld [vmem:[%s6822_s28 + $0x38] sm:$0x1]  ;;  %v393_v34 = vshrl.u32 %v257_v31, 16  ;;  %v396_v35 = vshll.u32 %v257_v31, 16  ;;  %v402_v36 = vshll.u32 %v258_v32, 16  ;;  %v406_v37 = vshrl.u32 %v258_v32, 16 }
  0x4f   : > { %5888 = vmatpush3.bf16.msra.mxu1 %v6404_v17  ;;  %v669_v25 = vsel %vm6854_vm2, %v664_v22, %v668_v12  ;;  %v679_v27 = vsel %vm6854_vm2, %v674_v23, %v678_v19  ;;  %v744_v38 = vld [vmem:[%s6822_s28] sm:$0xe]  ;;  %v412_v41 = vshll.u32 %v259_v33, 16  ;;  %v6400_v43 = vld [vmem:[#allocation2 + $0xd8] ss:$36 sps:$4 sm:$0xff]  }
  0x50   : > { %742 = vst [vmem:[#allocation2 + $0x43c] sm:$0xf] %v669_v25  ;;  %743 = vst [vmem:[#allocation2 + $0x460] sm:$0xf] %v679_v27  ;;  %5889 = vmatprep.subr.bf16.mxu1 %v6406_v26  ;;  %v5235_v42 = vrot.slane %v744_v38, 9  ;;  %v395_v44 = vrot.slane %v393_v34, 4 }
  0x51   : > { %v398_v45 = vrot.slane %v396_v35, 5  ;;  %v404_v46 = vrot.slane %v402_v36, 5  ;;  %v408_v47 = vrot.slane %v406_v37, 4  ;;  %v745_v49 = vld [vmem:[%s6822_s28 + $0x4] sm:$0xf]  ;;  %v6414_v51 = vld [vmem:[%s8389_s1 + $0x1f8] sm:$0xff]  }
  0x52   : > { %v6396_v40 = vld [vmem:[#allocation2 + $0xdc] ss:$36 sps:$4 sm:$0xff]   ;;  %v746_v50 = vld [vmem:[%s6822_s28 + $0x8] sm:$0x1]  ;;  %v414_v54 = vrot.slane %v412_v41, 5  ;;  %v845_v55 = vrot.slane %v745_v49, 5 }
  0x53   : > { %5890 = vmatpush3.bf16.msra.mxu1 %v6407_v28  ;;  %4213 = vmatprep.mubr.bf16.mxu0 %v6396_v40  ;;  %v399_v52 = vor.u32 %v398_v45, %v395_v44  ;;  %v409_v53 = vor.u32 %v408_v47, %v404_v46  ;;  %v5251_v56 = vld [vmem:[%s6822_s28 + $0xc] sm:$0xf]  ;;  %v5252_v57 = vld [vmem:[%s6822_s28 + $0x10] sm:$0xf]  ;;  %v848_v58 = vrot.slane %v746_v50, 5  ;;  %v6416_v4 = vld [vmem:[%s8389_s1 + $0x160] sm:$0xff]  }
  0x54   : > { %4214 = vmatmul.mubr.bf16.gmra.mxu0 %v6400_v43  ;;  %1052 = vst [vmem:[#allocation2 + $0xc] sm:$0xf] %v5251_v56  ;;  %1053 = vst [vmem:[#allocation2 + $0x30] sm:$0xf] %v5252_v57  ;;  %6099 = vmatprep.subr.bf16.mxu1 %v6414_v51  ;;  %v6401_v60 = vld [vmem:[#allocation2 + $0x438] ss:$36 sps:$4 sm:$0xff]   ;;  %v846_v62 = vsel %vm6997_vm5, %v5235_v42, %v845_v55 }
  0x55   : > { %v400_v61 = vrot.slane %v399_v52, 4  ;;  %v410_v63 = vrot.slane %v409_v53, 4  ;;  %v847_v0 = vrot.slane %v845_v55, 4  ;;  %987 = vst [vmem:[#allocation2 + $0x8] sm:$0xf] %v846_v62  ;;  %v6417_v5 = vld [vmem:[%s8389_s1 + $0x120] sm:$0xff]   ;;  %5993 = vmatprep.subr.bf16.mxu0 %v6416_v4 }
  0x56   : > { %v191_v6 = vld [vmem:[%s6822_s28 + $0x3c] sm:$0xf]  ;;  %v192_v7 = vld [vmem:[%s6822_s28 + $0x40] sm:$0xf]  ;;  %v262_v10 = vld [vmem:[%s6822_s28 + $0x44] sm:$0x1]  ;;  %5994 = vmatpush3.bf16.msra.mxu0 %v6417_v5 }
  0x57   : > { %v6398_v59 = vld [vmem:[#allocation2 + $0x43c] ss:$36 sps:$4 sm:$0xff]   ;;  %v405_v1 = vsel %vm6854_vm2, %v400_v61, %v404_v46  ;;  %v415_v2 = vsel %vm6854_vm2, %v410_v63, %v414_v54  ;;  %v849_v3 = vsel %vm6997_vm5, %v847_v0, %v848_v58  ;;  %223 = vst [vmem:[#allocation2 + $0x168] sm:$0xf] %v191_v6  ;;  %224 = vst [vmem:[#allocation2 + $0x18c] sm:$0xf] %v192_v7 }
  0x58   : > { %4309 = vmatprep.mubr.bf16.mxu1 %v6398_v59  ;;  %720 = vst [vmem:[#allocation2 + $0x124] sm:$0xf] %v405_v1  ;;  %721 = vst [vmem:[#allocation2 + $0x148] sm:$0xf] %v415_v2  ;;  %v260_v8 = vld [vmem:[%s6822_s28 + $0x3c] sm:$0xf] }
  0x59   : > { %4310 = vmatmul.mubr.bf16.gmra.mxu1 %v6401_v60  ;;  %988 = vst [vmem:[#allocation2 + $0x2c] sm:$0xf] %v849_v3  ;;  %v261_v9 = vld [vmem:[%s6822_s28 + $0x40] sm:$0xf]  ;;  %v417_v11 = vshrl.u32 %v260_v8, 16  ;;  %v420_v12 = vshll.u32 %v260_v8, 16 }
  0x5a   : > { %v426_v13 = vshll.u32 %v261_v9, 16  ;;  %v430_v14 = vshrl.u32 %v261_v9, 16  ;;  %v747_v15 = vld [vmem:[%s6822_s28 + $0xc] sm:$0xe]  ;;  %v436_v16 = vshll.u32 %v262_v10, 16  ;;  %v6430_v24 = vld [vmem:[%s8389_s1 + $0x158] sm:$0xff]  }
  0x5b   : > { %v748_v17 = vld [vmem:[%s6822_s28 + $0x10] sm:$0xf]  ;;  %v749_v18 = vld [vmem:[%s6822_s28 + $0x14] sm:$0x1]  ;;  %v5236_v19 = vrot.slane %v747_v15, 9  ;;  %v419_v20 = vrot.slane %v417_v11, 4  ;;  %5995 = vmatprep.subr.bf16.mxu0 %v6430_v24 }
  0x5c   : > { %v422_v21 = vrot.slane %v420_v12, 5  ;;  %v428_v22 = vrot.slane %v426_v13, 5  ;;  %v432_v23 = vrot.slane %v430_v14, 4  ;;  %v852_v25 = vrot.slane %v748_v17, 5  ;;  %v5253_v27 = vld [vmem:[%s6822_s28 + $0x18] sm:$0xf] }
  0x5d   : > { %v855_v26 = vrot.slane %v749_v18, 5  ;;  %v6415_v28 = vld [vmem:[%s8389_s1 + $0x1b8] sm:$0xff]   ;;  %1054 = vst [vmem:[#allocation2 + $0x54] sm:$0xf] %v5253_v27  ;;  %v193_v32 = vld [vmem:[%s6822_s28 + $0x48] sm:$0xf] }
  0x5e   : > { %v423_v29 = vor.u32 %v422_v21, %v419_v20  ;;  %v433_v30 = vor.u32 %v432_v23, %v428_v22  ;;  %v5254_v31 = vld [vmem:[%s6822_s28 + $0x1c] sm:$0xf]  ;;  %v438_v34 = vrot.slane %v436_v16, 5  ;;  %v853_v35 = vsel %vm6997_vm5, %v5236_v19, %v852_v25  ;;  %225 = vst [vmem:[#allocation2 + $0x1b0] sm:$0xf] %v193_v32  ;;  %v6431_v37 = vld [vmem:[%s8389_s1 + $0x1f0] sm:$0xff]  }
  0x5f   : > { %v6408_v33 = vld [vmem:[#allocation2 + $0x124] ss:$36 sps:$4 sm:$0xff]   ;;  %v854_v36 = vrot.slane %v852_v25, 4  ;;  %1055 = vst [vmem:[#allocation2 + $0x78] sm:$0xf] %v5254_v31  ;;  %v6432_v7 = vld [vmem:[%s8389_s1 + $0x118] sm:$0xff]  }
  0x60   : > { %v6410_v38 = vld [vmem:[#allocation2 + $0x8] ss:$36 sps:$4 sm:$0xff]   ;;  %v6413_v41 = vld [vmem:[#allocation2 + $0x120] ss:$36 sps:$4 sm:$0xff]   ;;  %989 = vst [vmem:[#allocation2 + $0x50] sm:$0xf] %v853_v35  ;;  %4221 = vmatprep.mubr.bf16.mxu0 %v6408_v33  ;;  %5996 = vmatpush3.bf16.msra.mxu0 %v6432_v7 }
  0x61   : > { %v6412_v40 = vld [vmem:[#allocation2 + $0xc] ss:$36 sps:$4 sm:$0xff]   ;;  %v424_v42 = vrot.slane %v423_v29, 4  ;;  %v434_v43 = vrot.slane %v433_v30, 4  ;;  %v856_v44 = vsel %vm6997_vm5, %v854_v36, %v855_v26  ;;  %v263_v46 = vld [vmem:[%s6822_s28 + $0x48] sm:$0xf]  ;;  %4222 = vmatmul.mubr.bf16.gmra.mxu0 %v6413_v41 }
  0x62   : > { %v194_v45 = vld [vmem:[%s6822_s28 + $0x4c] sm:$0xf]  ;;  %4350 = vmatprep.mubr.bf16.mxu1 %v6412_v40  ;;  %990 = vst [vmem:[#allocation2 + $0x74] sm:$0xf] %v856_v44  ;;  %v265_v49 = vld [vmem:[%s6822_s28 + $0x50] sm:$0x1] }
  0x63   : > { %226 = vst [vmem:[#allocation2 + $0x1d4] sm:$0xf] %v194_v45  ;;  %v264_v47 = vld [vmem:[%s6822_s28 + $0x4c] sm:$0xf]  ;;  %v441_v50 = vshrl.u32 %v263_v46, 16  ;;  %v444_v51 = vshll.u32 %v263_v46, 16  ;;  %4351 = vmatmul.mubr.bf16.vlgmr.msra.gmra.mxu1 %v6410_v38  ;;  %v429_v52 = vsel %vm6854_vm2, %v424_v42, %v428_v22  ;;  %v439_v53 = vsel %vm6854_vm2, %v434_v43, %v438_v34 }
  0x64   : > { %v450_v54 = vshll.u32 %v264_v47, 16  ;;  %v454_v55 = vshrl.u32 %v264_v47, 16  ;;  %v750_v56 = vld [vmem:[%s6822_s28 + $0x18] sm:$0xe]  ;;  %v751_v57 = vld [vmem:[%s6822_s28 + $0x1c] sm:$0xf]  ;;  %6100 = vmatpush3.bf16.msra.mxu1 %v6415_v28 }
  0x65   : > { %722 = vst [vmem:[#allocation2 + $0x16c] sm:$0xf] %v429_v52  ;;  %723 = vst [vmem:[#allocation2 + $0x190] sm:$0xf] %v439_v53  ;;  %v443_v58 = vrot.slane %v441_v50, 4  ;;  %v446_v59 = vrot.slane %v444_v51, 5  ;;  %6101 = vmatprep.subr.bf16.mxu1 %v6431_v37 }
  0x66   : > { %v460_v60 = vshll.u32 %v265_v49, 16  ;;  %v752_v61 = vld [vmem:[%s6822_s28 + $0x20] sm:$0x1]  ;;  %v5237_v62 = vrot.slane %v750_v56, 9  ;;  %v452_v63 = vrot.slane %v450_v54, 5  ;;  %v456_v0 = vrot.slane %v454_v55, 4 }
  0x67   : > { %v859_v1 = vrot.slane %v751_v57, 5  ;;  %v862_v2 = vrot.slane %v752_v61, 5  ;;  %v5255_v3 = vld [vmem:[%s6822_s28 + $0x24] sm:$0xf]  ;;  %v447_v4 = vor.u32 %v446_v59, %v443_v58  ;;  %v5256_v6 = vld [vmem:[%s6822_s28 + $0x28] sm:$0xf] }
  0x68   : > { %v462_v5 = vrot.slane %v460_v60, 5  ;;  %1056 = vst [vmem:[#allocation2 + $0x9c] sm:$0xf] %v5255_v3  ;;  %v457_v8 = vor.u32 %v456_v0, %v452_v63  ;;  %1057 = vst [vmem:[#allocation2 + $0xc0] sm:$0xf] %v5256_v6  ;;  %v6433_v12 = vld [vmem:[%s8389_s1 + $0x1b0] sm:$0xff]  }
  0x69   : > { %v860_v9 = vsel %vm6997_vm5, %v5237_v62, %v859_v1  ;;  %v861_v10 = vrot.slane %v859_v1, 4  ;;  %v448_v11 = vrot.slane %v447_v4, 4  ;;  %v6420_v13 = vld [vmem:[#allocation2 + $0x54] ss:$36 sps:$4 sm:$0xff]   ;;  %6102 = vmatpush3.bf16.msra.mxu1 %v6433_v12  ;;  %v6422_v20 = vld [vmem:[#allocation2 + $0x168] ss:$36 sps:$4 sm:$0xff]  }
  0x6a   : > { %991 = vst [vmem:[#allocation2 + $0x98] sm:$0xf] %v860_v9  ;;  %v6423_v14 = vld [vmem:[#allocation2 + $0x50] ss:$36 sps:$4 sm:$0xff]   ;;  %v458_v15 = vrot.slane %v457_v8, 4  ;;  %4358 = vmatprep.mubr.bf16.mxu1 %v6420_v13  ;;  %v6448_v8 = vld [vmem:[%s8389_s1 + $0x1e8] sm:$0xff]  }
  0x6b   : > { %v863_v16 = vsel %vm6997_vm5, %v861_v10, %v862_v2  ;;  %v453_v17 = vsel %vm6854_vm2, %v448_v11, %v452_v63  ;;  %4359 = vmatmul.mubr.bf16.gmra.mxu1 %v6423_v14  ;;  %v195_v21 = vld [vmem:[%s6822_s28 + $0x54] sm:$0xf]  ;;  %v196_v22 = vld [vmem:[%s6822_s28 + $0x58] sm:$0xf]  ;;  %v268_v25 = vld [vmem:[%s6822_s28 + $0x5c] sm:$0x1]  ;;  %6103 = vmatprep.subr.bf16.mxu1 %v6448_v8 }
  0x6c   : > { %992 = vst [vmem:[#allocation2 + $0xbc] sm:$0xf] %v863_v16  ;;  %v6418_v18 = vld [vmem:[#allocation2 + $0x16c] ss:$36 sps:$4 sm:$0xff]   ;;  %v463_v19 = vsel %vm6854_vm2, %v458_v15, %v462_v5  ;;  %724 = vst [vmem:[#allocation2 + $0x1b4] sm:$0xf] %v453_v17 }
  0x6d   : > { %725 = vst [vmem:[#allocation2 + $0x1d8] sm:$0xf] %v463_v19  ;;  %4229 = vmatprep.mubr.bf16.mxu0 %v6418_v18  ;;  %227 = vst [vmem:[#allocation2 + $0x1f8] sm:$0xf] %v195_v21  ;;  %v266_v23 = vld [vmem:[%s6822_s28 + $0x54] sm:$0xf] }
  0x6e   : > { %228 = vst [vmem:[#allocation2 + $0x21c] sm:$0xf] %v196_v22  ;;  %v267_v24 = vld [vmem:[%s6822_s28 + $0x58] sm:$0xf]  ;;  %4230 = vmatmul.mubr.bf16.gmra.mxu0 %v6422_v20  ;;  %v465_v26 = vshrl.u32 %v266_v23, 16  ;;  %v468_v27 = vshll.u32 %v266_v23, 16 }
  0x6f   : > { %v474_v28 = vshll.u32 %v267_v24, 16  ;;  %v478_v29 = vshrl.u32 %v267_v24, 16  ;;  %v753_v30 = vld [vmem:[%s6822_s28 + $0x24] sm:$0xe]  ;;  %v484_v31 = vshll.u32 %v268_v25, 16  ;;  %v6440_v49 = vld [vmem:[%s8389_s1 + $0x150] sm:$0xff]  }
  0x70   : > { %v754_v32 = vld [vmem:[%s6822_s28 + $0x28] sm:$0xf]  ;;  %v755_v33 = vld [vmem:[%s6822_s28 + $0x2c] sm:$0x1]  ;;  %v467_v34 = vrot.slane %v465_v26, 4  ;;  %v470_v35 = vrot.slane %v468_v27, 5  ;;  %5997 = vmatprep.subr.bf16.mxu0 %v6440_v49 }
  0x71   : > { %v476_v36 = vrot.slane %v474_v28, 5  ;;  %v480_v37 = vrot.slane %v478_v29, 4  ;;  %v5257_v38 = vld [vmem:[%s6822_s28 + $0x30] sm:$0xf]  ;;  %v6426_v40 = vld [vmem:[#allocation2 + $0x9c] ss:$36 sps:$4 sm:$0xff]  }
  0x72   : > { %v486_v42 = vrot.slane %v484_v31, 5  ;;  %1058 = vst [vmem:[#allocation2 + $0xe4] sm:$0xf] %v5257_v38  ;;  %v471_v43 = vor.u32 %v470_v35, %v467_v34  ;;  %v5238_v45 = vrot.slane %v753_v30, 9  ;;  %v866_v46 = vrot.slane %v754_v32, 5  ;;  %4366 = vmatprep.mubr.bf16.mxu1 %v6426_v40  ;;  %v6441_v57 = vld [vmem:[%s8389_s1 + $0x110] sm:$0xff]  }
  0x73   : > { %v6429_v41 = vld [vmem:[#allocation2 + $0x98] ss:$36 sps:$4 sm:$0xff]   ;;  %v481_v44 = vor.u32 %v480_v37, %v476_v36  ;;  %v5258_v47 = vld [vmem:[%s6822_s28 + $0x34] sm:$0xf]  ;;  %v869_v52 = vrot.slane %v755_v33, 5  ;;  %5998 = vmatpush3.bf16.msra.mxu0 %v6441_v57  ;;  %v6449_v26 = vld [vmem:[%s8389_s1 + $0x1a8] sm:$0xff]  }
  0x74   : > { %v6424_v50 = vld [vmem:[#allocation2 + $0x1b4] ss:$36 sps:$4 sm:$0xff]   ;;  %1059 = vst [vmem:[#allocation2 + $0x108] sm:$0xf] %v5258_v47  ;;  %4367 = vmatmul.mubr.bf16.gmra.mxu1 %v6429_v41  ;;  %v472_v53 = vrot.slane %v471_v43, 4  ;;  %v867_v55 = vsel %vm6997_vm5, %v5238_v45, %v866_v46  ;;  %v868_v56 = vrot.slane %v866_v46, 4 }
  0x75   : > { %v6428_v51 = vld [vmem:[#allocation2 + $0x1b0] ss:$36 sps:$4 sm:$0xff]   ;;  %v482_v54 = vrot.slane %v481_v44, 4  ;;  %4237 = vmatprep.mubr.bf16.mxu0 %v6424_v50  ;;  %993 = vst [vmem:[#allocation2 + $0xe0] sm:$0xf] %v867_v55  ;;  %v6456_v27 = vld [vmem:[%s8389_s1 + $0x148] sm:$0xff]   ;;  %6104 = vmatpush3.bf16.msra.mxu1 %v6449_v26 }
  0x76   : > { %4238 = vmatmul.mubr.bf16.gmra.mxu0 %v6428_v51  ;;  %v477_v58 = vsel %vm6854_vm2, %v472_v53, %v476_v36  ;;  %v870_v60 = vsel %vm6997_vm5, %v868_v56, %v869_v52  ;;  %v197_v61 = vld [vmem:[%s6822_s28 + $0x60] sm:$0xf]  ;;  %v198_v62 = vld [vmem:[%s6822_s28 + $0x64] sm:$0xf]  ;;  %v271_v1 = vld [vmem:[%s6822_s28 + $0x68] sm:$0x1]  ;;  %5999 = vmatprep.subr.bf16.mxu0 %v6456_v27 }
  0x77   : > { %v487_v59 = vsel %vm6854_vm2, %v482_v54, %v486_v42  ;;  %v269_v63 = vld [vmem:[%s6822_s28 + $0x60] sm:$0xf]  ;;  %726 = vst [vmem:[#allocation2 + $0x1fc] sm:$0xf] %v477_v58  ;;  %994 = vst [vmem:[#allocation2 + $0x104] sm:$0xf] %v870_v60 }
  0x78   : > { %727 = vst [vmem:[#allocation2 + $0x220] sm:$0xf] %v487_v59  ;;  %229 = vst [vmem:[#allocation2 + $0x240] sm:$0xf] %v197_v61  ;;  %v270_v0 = vld [vmem:[%s6822_s28 + $0x64] sm:$0xf] }
  0x79   : > { %230 = vst [vmem:[#allocation2 + $0x264] sm:$0xf] %v198_v62  ;;  %v489_v2 = vshrl.u32 %v269_v63, 16  ;;  %v492_v3 = vshll.u32 %v269_v63, 16  ;;  %v498_v4 = vshll.u32 %v270_v0, 16  ;;  %v502_v5 = vshrl.u32 %v270_v0, 16 }
  0x7a   : > { %v508_v6 = vshll.u32 %v271_v1, 16  ;;  %v756_v7 = vld [vmem:[%s6822_s28 + $0x30] sm:$0xe]  ;;  %v757_v11 = vld [vmem:[%s6822_s28 + $0x34] sm:$0xf]  ;;  %v6457_v8 = vld [vmem:[%s8389_s1 + $0x108] sm:$0xff]  }
  0x7b   : > { %v491_v9 = vrot.slane %v489_v2, 4  ;;  %v494_v10 = vrot.slane %v492_v3, 5  ;;  %v758_v12 = vld [vmem:[%s6822_s28 + $0x38] sm:$0x1]  ;;  %v500_v13 = vrot.slane %v498_v4, 5  ;;  %v504_v14 = vrot.slane %v502_v5, 4  ;;  %6000 = vmatpush3.bf16.msra.mxu0 %v6457_v8 }
  0x7c   : > { %v5239_v15 = vrot.slane %v756_v7, 9  ;;  %v5259_v16 = vld [vmem:[%s6822_s28 + $0x3c] sm:$0xf]  ;;  %v873_v18 = vrot.slane %v757_v11, 5  ;;  %v876_v19 = vrot.slane %v758_v12, 5  ;;  %v510_v22 = vrot.slane %v508_v6, 5 }
  0x7d   : > { %v495_v17 = vor.u32 %v494_v10, %v491_v9  ;;  %v5260_v20 = vld [vmem:[%s6822_s28 + $0x40] sm:$0xf]  ;;  %1060 = vst [vmem:[#allocation2 + $0x12c] sm:$0xf] %v5259_v16  ;;  %v505_v21 = vor.u32 %v504_v14, %v500_v13  ;;  %v6436_v30 = vld [vmem:[#allocation2 + $0xe4] ss:$36 sps:$4 sm:$0xff]  }
  0x7e   : > { %1061 = vst [vmem:[#allocation2 + $0x150] sm:$0xf] %v5260_v20  ;;  %v874_v24 = vsel %vm6997_vm5, %v5239_v15, %v873_v18  ;;  %v875_v25 = vrot.slane %v873_v18, 4  ;;  %v6438_v31 = vld [vmem:[#allocation2 + $0x1f8] ss:$36 sps:$4 sm:$0xff]   ;;  %4374 = vmatprep.mubr.bf16.mxu1 %v6436_v30 }
  0x7f   : > { %v496_v23 = vrot.slane %v495_v17, 4  ;;  %v6434_v28 = vld [vmem:[#allocation2 + $0x1fc] ss:$36 sps:$4 sm:$0xff]   ;;  %v506_v29 = vrot.slane %v505_v21, 4  ;;  %995 = vst [vmem:[#allocation2 + $0x128] sm:$0xf] %v874_v24 }
  0x80   : > { %v877_v33 = vsel %vm6997_vm5, %v875_v25, %v876_v19  ;;  %4245 = vmatprep.mubr.bf16.mxu0 %v6434_v28  ;;  %v6439_v34 = vld [vmem:[#allocation2 + $0xe0] ss:$36 sps:$4 sm:$0xff]   ;;  %v199_v36 = vld [vmem:[%s6822_s28 + $0x6c] sm:$0xf]  ;;  %v200_v37 = vld [vmem:[%s6822_s28 + $0x70] sm:$0xf] }
  0x81   : > { %v501_v32 = vsel %vm6854_vm2, %v496_v23, %v500_v13  ;;  %v511_v35 = vsel %vm6854_vm2, %v506_v29, %v510_v22  ;;  %996 = vst [vmem:[#allocation2 + $0x14c] sm:$0xf] %v877_v33  ;;  %4246 = vmatmul.mubr.bf16.gmra.mxu0 %v6438_v31  ;;  %231 = vst [vmem:[#allocation2 + $0x288] sm:$0xf] %v199_v36  ;;  %v272_v38 = vld [vmem:[%s6822_s28 + $0x6c] sm:$0xf]  ;;  %4375 = vmatmul.mubr.bf16.gmra.mxu1 %v6439_v34 }
  0x82   : > { %728 = vst [vmem:[#allocation2 + $0x244] sm:$0xf] %v501_v32  ;;  %729 = vst [vmem:[#allocation2 + $0x268] sm:$0xf] %v511_v35  ;;  %v273_v40 = vld [vmem:[%s6822_s28 + $0x70] sm:$0xf] }
  0x83   : > { %232 = vst [vmem:[#allocation2 + $0x2ac] sm:$0xf] %v200_v37  ;;  %v274_v41 = vld [vmem:[%s6822_s28 + $0x74] sm:$0x1]  ;;  %v513_v42 = vshrl.u32 %v272_v38, 16  ;;  %v516_v43 = vshll.u32 %v272_v38, 16 }
  0x84   : > { %v522_v44 = vshll.u32 %v273_v40, 16  ;;  %v526_v45 = vshrl.u32 %v273_v40, 16  ;;  %v759_v46 = vld [vmem:[%s6822_s28 + $0x3c] sm:$0xe]  ;;  %v532_v47 = vshll.u32 %v274_v41, 16  ;;  %v6464_v22 = vld [vmem:[%s8389_s1 + $0x1e0] sm:$0xff]  }
  0x85   : > { %v760_v49 = vld [vmem:[%s6822_s28 + $0x40] sm:$0xf]  ;;  %v761_v50 = vld [vmem:[%s6822_s28 + $0x44] sm:$0x1]  ;;  %v5240_v51 = vrot.slane %v759_v46, 9  ;;  %v515_v52 = vrot.slane %v513_v42, 4  ;;  %6105 = vmatprep.subr.bf16.mxu1 %v6464_v22 }
  0x86   : > { %v518_v53 = vrot.slane %v516_v43, 5  ;;  %v524_v54 = vrot.slane %v522_v44, 5  ;;  %v528_v55 = vrot.slane %v526_v45, 4  ;;  %v5261_v56 = vld [vmem:[%s6822_s28 + $0x48] sm:$0xf]  ;;  %v880_v57 = vrot.slane %v760_v49, 5 }
  0x87   : > { %v883_v58 = vrot.slane %v761_v50, 5  ;;  %v5262_v59 = vld [vmem:[%s6822_s28 + $0x4c] sm:$0xf]  ;;  %1062 = vst [vmem:[#allocation2 + $0x174] sm:$0xf] %v5261_v56  ;;  %v534_v63 = vrot.slane %v532_v47, 5 }
  0x88   : > { %v519_v60 = vor.u32 %v518_v53, %v515_v52  ;;  %v529_v61 = vor.u32 %v528_v55, %v524_v54  ;;  %1063 = vst [vmem:[#allocation2 + $0x198] sm:$0xf] %v5262_v59  ;;  %v6444_v62 = vld [vmem:[#allocation2 + $0x12c] ss:$36 sps:$4 sm:$0xff]   ;;  %v881_v0 = vsel %vm6997_vm5, %v5240_v51, %v880_v57  ;;  %v882_v1 = vrot.slane %v880_v57, 4  ;;  %v6465_v36 = vld [vmem:[%s8389_s1 + $0x1a0] sm:$0xff]  }
  0x89   : > { %v6442_v2 = vld [vmem:[#allocation2 + $0x244] ss:$36 sps:$4 sm:$0xff]   ;;  %997 = vst [vmem:[#allocation2 + $0x170] sm:$0xf] %v881_v0  ;;  %4382 = vmatprep.mubr.bf16.mxu1 %v6444_v62  ;;  %v201_v10 = vld [vmem:[%s6822_s28 + $0x78] sm:$0xf]  ;;  %6106 = vmatpush3.bf16.msra.mxu1 %v6465_v36 }
  0x8a   : > { %v6446_v3 = vld [vmem:[#allocation2 + $0x240] ss:$36 sps:$4 sm:$0xff]   ;;  %v520_v4 = vrot.slane %v519_v60, 4  ;;  %v6447_v5 = vld [vmem:[#allocation2 + $0x128] ss:$36 sps:$4 sm:$0xff]   ;;  %v530_v6 = vrot.slane %v529_v61, 4  ;;  %v884_v7 = vsel %vm6997_vm5, %v882_v1, %v883_v58  ;;  %4253 = vmatprep.mubr.bf16.mxu0 %v6442_v2 }
  0x8b   : > { %998 = vst [vmem:[#allocation2 + $0x194] sm:$0xf] %v884_v7  ;;  %v202_v11 = vld [vmem:[%s6822_s28 + $0x7c] sm:$0xf]  ;;  %v275_v12 = vld [vmem:[%s6822_s28 + $0x78] sm:$0xf]  ;;  %4254 = vmatmul.mubr.bf16.gmra.mxu0 %v6446_v3  ;;  %4383 = vmatmul.mubr.bf16.gmra.mxu1 %v6447_v5 }
  0x8c   : > { %v525_v9 = vsel %vm6854_vm2, %v520_v4, %v524_v54  ;;  %v535_v13 = vsel %vm6854_vm2, %v530_v6, %v534_v63  ;;  %233 = vst [vmem:[#allocation2 + $0x2d0] sm:$0xf] %v201_v10  ;;  %234 = vst [vmem:[#allocation2 + $0x2f4] sm:$0xf] %v202_v11  ;;  %v276_v14 = vld [vmem:[%s6822_s28 + $0x7c] sm:$0xf] }
  0x8d   : > { %730 = vst [vmem:[#allocation2 + $0x28c] sm:$0xf] %v525_v9  ;;  %v277_v15 = vld [vmem:[%s6822_s28 + $0x80] sm:$0x1]  ;;  %v537_v16 = vshrl.u32 %v275_v12, 16  ;;  %v540_v17 = vshll.u32 %v275_v12, 16 }
  0x8e   : > { %731 = vst [vmem:[#allocation2 + $0x2b0] sm:$0xf] %v535_v13  ;;  %v546_v18 = vshll.u32 %v276_v14, 16  ;;  %v550_v19 = vshrl.u32 %v276_v14, 16  ;;  %v556_v20 = vshll.u32 %v277_v15, 16  ;;  %v6466_v45 = vld [vmem:[%s8389_s1 + $0x140] sm:$0xff]  }
  0x8f   : > { %v762_v21 = vld [vmem:[%s6822_s28 + $0x48] sm:$0xe]  ;;  %v539_v23 = vrot.slane %v537_v16, 4  ;;  %v542_v24 = vrot.slane %v540_v17, 5  ;;  %v763_v25 = vld [vmem:[%s6822_s28 + $0x4c] sm:$0xf]  ;;  %6001 = vmatprep.subr.bf16.mxu0 %v6466_v45 }
  0x90   : > { %v764_v26 = vld [vmem:[%s6822_s28 + $0x50] sm:$0x1]  ;;  %v548_v27 = vrot.slane %v546_v18, 5  ;;  %v552_v28 = vrot.slane %v550_v19, 4  ;;  %v558_v29 = vrot.slane %v556_v20, 5  ;;  %v5241_v30 = vrot.slane %v762_v21, 9 }
  0x91   : > { %v5263_v31 = vld [vmem:[%s6822_s28 + $0x54] sm:$0xf]  ;;  %v543_v32 = vor.u32 %v542_v24, %v539_v23  ;;  %v887_v33 = vrot.slane %v763_v25, 5  ;;  %v890_v34 = vrot.slane %v764_v26, 5  ;;  %v5264_v35 = vld [vmem:[%s6822_s28 + $0x58] sm:$0xf] }
  0x92   : > { %1064 = vst [vmem:[#allocation2 + $0x1bc] sm:$0xf] %v5263_v31  ;;  %v553_v37 = vor.u32 %v552_v28, %v548_v27  ;;  %1065 = vst [vmem:[#allocation2 + $0x1e0] sm:$0xf] %v5264_v35  ;;  %v6452_v38 = vld [vmem:[#allocation2 + $0x174] ss:$36 sps:$4 sm:$0xff]  }
  0x93   : > { %v6455_v40 = vld [vmem:[#allocation2 + $0x170] ss:$36 sps:$4 sm:$0xff]   ;;  %v544_v41 = vrot.slane %v543_v32, 4  ;;  %v888_v42 = vsel %vm6997_vm5, %v5241_v30, %v887_v33  ;;  %v889_v44 = vrot.slane %v887_v33, 4  ;;  %4390 = vmatprep.mubr.bf16.mxu1 %v6452_v38  ;;  %v6454_v47 = vld [vmem:[#allocation2 + $0x288] ss:$36 sps:$4 sm:$0xff]  }
  0x94   : > { %v554_v43 = vrot.slane %v553_v37, 4  ;;  %999 = vst [vmem:[#allocation2 + $0x1b8] sm:$0xf] %v888_v42  ;;  %4391 = vmatmul.mubr.bf16.gmra.mxu1 %v6455_v40  ;;  %v6467_v52 = vld [vmem:[%s8389_s1 + $0x100] sm:$0xff]   ;;  %v204_v54 = vld [vmem:[%s6822_s28 + $0x88] sm:$0xf] }
  0x95   : > { %v6450_v46 = vld [vmem:[#allocation2 + $0x28c] ss:$36 sps:$4 sm:$0xff]   ;;  %v549_v49 = vsel %vm6854_vm2, %v544_v41, %v548_v27  ;;  %v891_v51 = vsel %vm6997_vm5, %v889_v44, %v890_v34  ;;  %v203_v53 = vld [vmem:[%s6822_s28 + $0x84] sm:$0xf]  ;;  %v279_v56 = vld [vmem:[%s6822_s28 + $0x88] sm:$0xf]  ;;  %6002 = vmatpush3.bf16.msra.mxu0 %v6467_v52 }
  0x96   : > { %v559_v50 = vsel %vm6854_vm2, %v554_v43, %v558_v29  ;;  %732 = vst [vmem:[#allocation2 + $0x2d4] sm:$0xf] %v549_v49  ;;  %4261 = vmatprep.mubr.bf16.mxu0 %v6450_v46  ;;  %1000 = vst [vmem:[#allocation2 + $0x1dc] sm:$0xf] %v891_v51  ;;  %v278_v55 = vld [vmem:[%s6822_s28 + $0x84] sm:$0xf] }
  0x97   : > { %733 = vst [vmem:[#allocation2 + $0x2f8] sm:$0xf] %v559_v50  ;;  %4262 = vmatmul.mubr.bf16.gmra.mxu0 %v6454_v47  ;;  %235 = vst [vmem:[#allocation2 + $0x318] sm:$0xf] %v203_v53  ;;  %v280_v57 = vld [vmem:[%s6822_s28 + $0x8c] sm:$0x1] }
  0x98   : > { %236 = vst [vmem:[#allocation2 + $0x33c] sm:$0xf] %v204_v54  ;;  %v561_v58 = vshrl.u32 %v278_v55, 16  ;;  %v564_v59 = vshll.u32 %v278_v55, 16  ;;  %v570_v60 = vshll.u32 %v279_v56, 16  ;;  %v574_v61 = vshrl.u32 %v279_v56, 16 }
  0x99   : > { %v580_v62 = vshll.u32 %v280_v57, 16  ;;  %v765_v63 = vld [vmem:[%s6822_s28 + $0x54] sm:$0xe]  ;;  %v766_v0 = vld [vmem:[%s6822_s28 + $0x58] sm:$0xf] }
  0x9a   : > { %v6480_v1 = vld [vmem:[%s8389_s1 + $0x1d8] sm:$0xff]   ;;  %v563_v2 = vrot.slane %v561_v58, 4  ;;  %v566_v3 = vrot.slane %v564_v59, 5  ;;  %v572_v4 = vrot.slane %v570_v60, 5  ;;  %v576_v5 = vrot.slane %v574_v61, 4  ;;  %v6495_v37 = vld [vmem:[%s8389_s1 + $0x1d0] sm:$0xff]  }
  0x9b   : > { %v7188_v6 = vld [vmem:[%s8389_s1 + $0x238] sm:$0xff]   ;;  %v5242_v8 = vrot.slane %v765_v63, 9  ;;  %v894_v9 = vrot.slane %v766_v0, 5  ;;  %6107 = vmatprep.subr.bf16.mxu1 %v6480_v1  ;;  %v5265_v14 = vld [vmem:[%s6822_s28 + $0x60] sm:$0xf]  ;;  %v582_v17 = vrot.slane %v580_v62, 5 }
  0x9c   : > { %v767_v7 = vld [vmem:[%s6822_s28 + $0x5c] sm:$0x1]  ;;  %v567_v11 = vor.u32 %v566_v3, %v563_v2  ;;  %v577_v12 = vor.u32 %v576_v5, %v572_v4  ;;  %v5266_v15 = vld [vmem:[%s6822_s28 + $0x64] sm:$0xf]  ;;  %6235 = vmatprep.subr.bf16.mxu0 %v7188_v6  ;;  %1066 = vst [vmem:[#allocation2 + $0x204] sm:$0xf] %v5265_v14 }
  0x9d   : > { %v6482_v10 = vld [vmem:[%s8389_s1 + $0x198] sm:$0xff]   ;;  %v897_v13 = vrot.slane %v767_v7, 5  ;;  %v895_v18 = vsel %vm6997_vm5, %v5242_v8, %v894_v9  ;;  %v896_v19 = vrot.slane %v894_v9, 4  ;;  %1067 = vst [vmem:[#allocation2 + $0x228] sm:$0xf] %v5266_v15  ;;  %v6497_v3 = vld [vmem:[%s8389_s1 + $0x190] sm:$0xff]  }
  0x9e   : > { %v6458_v16 = vld [vmem:[#allocation2 + $0x2d4] ss:$36 sps:$4 sm:$0xff]   ;;  %6108 = vmatpush3.bf16.msra.mxu1 %v6482_v10  ;;  %v6460_v20 = vld [vmem:[#allocation2 + $0x1bc] ss:$36 sps:$4 sm:$0xff]   ;;  %1001 = vst [vmem:[#allocation2 + $0x200] sm:$0xf] %v895_v18 }
  0x9f   : > { %v6462_v21 = vld [vmem:[#allocation2 + $0x2d0] ss:$36 sps:$4 sm:$0xff]   ;;  %v6463_v22 = vld [vmem:[#allocation2 + $0x1b8] ss:$36 sps:$4 sm:$0xff]   ;;  %4269 = vmatprep.mubr.bf16.mxu0 %v6458_v16  ;;  %v568_v23 = vrot.slane %v567_v11, 4  ;;  %v578_v24 = vrot.slane %v577_v12, 4  ;;  %v898_v25 = vsel %vm6997_vm5, %v896_v19, %v897_v13  ;;  %4398 = vmatprep.mubr.bf16.mxu1 %v6460_v20 }
  0xa0   : > { %v768_v26 = vld [vmem:[%s6822_s28 + $0x60] sm:$0xe]  ;;  %v769_v27 = vld [vmem:[%s6822_s28 + $0x64] sm:$0xf]  ;;  %4270 = vmatmul.mubr.bf16.gmra.mxu0 %v6462_v21  ;;  %1002 = vst [vmem:[#allocation2 + $0x224] sm:$0xf] %v898_v25  ;;  %4399 = vmatmul.mubr.bf16.gmra.mxu1 %v6463_v22 }
  0xa1   : > { %v770_v28 = vld [vmem:[%s6822_s28 + $0x68] sm:$0x1]  ;;  %v5243_v29 = vrot.slane %v768_v26, 9  ;;  %v901_v30 = vrot.slane %v769_v27, 5  ;;  %v5267_v31 = vld [vmem:[%s6822_s28 + $0x6c] sm:$0xf]  ;;  %v573_v32 = vsel %vm6854_vm2, %v568_v23, %v572_v4  ;;  %v583_v33 = vsel %vm6854_vm2, %v578_v24, %v582_v17  ;;  %6109 = vmatprep.subr.bf16.mxu1 %v6495_v37 }
  0xa2   : > { %v904_v34 = vrot.slane %v770_v28, 5  ;;  %v5268_v35 = vld [vmem:[%s6822_s28 + $0x70] sm:$0xf]  ;;  %1068 = vst [vmem:[#allocation2 + $0x24c] sm:$0xf] %v5267_v31  ;;  %6110 = vmatpush3.bf16.msra.mxu1 %v6497_v3  ;;  %v6510_v20 = vld [vmem:[%s8389_s1 + $0x1c8] sm:$0xff]  }
  0xa3   : > { %v5283_v36 = vld [vmem:[%s6822_s28 + $0xc] sm:$0xf]  ;;  %734 = vst [vmem:[#allocation2 + $0x31c] sm:$0xf] %v573_v32  ;;  %735 = vst [vmem:[#allocation2 + $0x340] sm:$0xf] %v583_v33  ;;  %v902_v38 = vsel %vm6997_vm5, %v5243_v29, %v901_v30  ;;  %6111 = vmatprep.subr.bf16.mxu1 %v6510_v20 }
  0xa4   : > { %v903_v40 = vrot.slane %v901_v30, 4  ;;  %1069 = vst [vmem:[#allocation2 + $0x270] sm:$0xf] %v5268_v35  ;;  %v5284_v41 = vld [vmem:[%s6822_s28 + $0x10] sm:$0xf]  ;;  %v1133_v43 = vshrl.u32 %v5283_v36, 16 }
  0xa5   : > { %v5285_v42 = vld [vmem:[%s6822_s28 + $0x14] sm:$0x1]  ;;  %1003 = vst [vmem:[#allocation2 + $0x248] sm:$0xf] %v902_v38  ;;  %v1136_v44 = vshll.u32 %v5283_v36, 16  ;;  %v1142_v45 = vshll.u32 %v5284_v41, 16 }
  0xa6   : > { %v1146_v46 = vshrl.u32 %v5284_v41, 16  ;;  %v1152_v47 = vshll.u32 %v5285_v42, 16  ;;  %v5331_v49 = vld [vmem:[%s6822_s28 + $0xc] sm:$0xe]  ;;  %v905_v50 = vsel %vm6997_vm5, %v903_v40, %v904_v34  ;;  %v1135_v51 = vrot.slane %v1133_v43, 4 }
  0xa7   : > { %v5332_v52 = vld [vmem:[%s6822_s28 + $0x10] sm:$0xf]  ;;  %v5333_v53 = vld [vmem:[%s6822_s28 + $0x14] sm:$0x1]  ;;  %v5379_v54 = vrot.slane %v5331_v49, 9  ;;  %v1138_v55 = vrot.slane %v1136_v44, 5 }
  0xa8   : > { %1004 = vst [vmem:[#allocation2 + $0x26c] sm:$0xf] %v905_v50  ;;  %v1144_v56 = vrot.slane %v1142_v45, 5  ;;  %v1148_v57 = vrot.slane %v1146_v46, 4  ;;  %v1678_v58 = vrot.slane %v5332_v52, 5  ;;  %v1681_v59 = vrot.slane %v5333_v53, 5 }
  0xa9   : > { %v6470_v60 = vld [vmem:[#allocation2 + $0x204] ss:$36 sps:$4 sm:$0xff]   ;;  %v1139_v62 = vor.u32 %v1138_v55, %v1135_v51  ;;  %v1154_v0 = vrot.slane %v1152_v47, 5  ;;  %v6472_v8 = vld [vmem:[#allocation2 + $0x318] ss:$36 sps:$4 sm:$0xff]   ;;  %v6496_v49 = vld [vmem:[%s8389_s1 + $0x230] sm:$0xff]  }
  0xaa   : > { %v6473_v61 = vld [vmem:[#allocation2 + $0x200] ss:$36 sps:$4 sm:$0xff]   ;;  %v1149_v63 = vor.u32 %v1148_v57, %v1144_v56  ;;  %v1679_v1 = vsel %vm6997_vm5, %v5379_v54, %v1678_v58  ;;  %v1680_v2 = vrot.slane %v1678_v58, 4  ;;  %4406 = vmatprep.mubr.bf16.mxu1 %v6470_v60  ;;  %v771_v12 = vld [vmem:[%s6822_s28 + $0x6c] sm:$0xe] }
  0xab   : > { %v6468_v4 = vld [vmem:[#allocation2 + $0x31c] ss:$36 sps:$4 sm:$0xff]   ;;  %v1140_v5 = vrot.slane %v1139_v62, 4  ;;  %1820 = vst [vmem:[#allocation2 + $0x14] sm:$0xf] %v1679_v1  ;;  %4407 = vmatmul.mubr.bf16.gmra.mxu1 %v6473_v61  ;;  %v5244_v16 = vrot.slane %v771_v12, 9 }
  0xac   : > { %v1150_v7 = vrot.slane %v1149_v63, 4  ;;  %v1682_v9 = vsel %vm6997_vm5, %v1680_v2, %v1681_v59  ;;  %4277 = vmatprep.mubr.bf16.mxu0 %v6468_v4  ;;  %v772_v13 = vld [vmem:[%s6822_s28 + $0x70] sm:$0xf]  ;;  %v773_v17 = vld [vmem:[%s6822_s28 + $0x74] sm:$0x1]  ;;  %v6512_v60 = vld [vmem:[%s8389_s1 + $0x188] sm:$0xff]  }
  0xad   : > { %v1145_v10 = vsel %vm6854_vm2, %v1140_v5, %v1144_v56  ;;  %1821 = vst [vmem:[#allocation2 + $0x38] sm:$0xf] %v1682_v9  ;;  %4278 = vmatmul.mubr.bf16.gmra.mxu0 %v6472_v8  ;;  %v6474_v14 = vld [vmem:[#allocation2 + $0x24c] ss:$36 sps:$4 sm:$0xff]   ;;  %v908_v18 = vrot.slane %v772_v13, 5  ;;  %v911_v21 = vrot.slane %v773_v17, 5  ;;  %6112 = vmatpush3.bf16.msra.mxu1 %v6512_v60 }
  0xae   : > { %v1155_v11 = vsel %vm6854_vm2, %v1150_v7, %v1154_v0  ;;  %1548 = vst [vmem:[#allocation2 + $0x10] sm:$0xf] %v1145_v10  ;;  %v5269_v19 = vld [vmem:[%s6822_s28 + $0x78] sm:$0xf]  ;;  %4414 = vmatprep.mubr.bf16.mxu1 %v6474_v14  ;;  %v5270_v22 = vld [vmem:[%s6822_s28 + $0x7c] sm:$0xf] }
  0xaf   : > { %1549 = vst [vmem:[#allocation2 + $0x34] sm:$0xf] %v1155_v11  ;;  %v6479_v15 = vld [vmem:[#allocation2 + $0x248] ss:$36 sps:$4 sm:$0xff]   ;;  %1070 = vst [vmem:[#allocation2 + $0x294] sm:$0xf] %v5269_v19  ;;  %v909_v24 = vsel %vm6997_vm5, %v5244_v16, %v908_v18 }
  0xb0   : > { %v5286_v23 = vld [vmem:[%s6822_s28 + $0x18] sm:$0xf]  ;;  %v910_v25 = vrot.slane %v908_v18, 4  ;;  %1071 = vst [vmem:[#allocation2 + $0x2b8] sm:$0xf] %v5270_v22  ;;  %v6525_v1 = vld [vmem:[%s8389_s1 + $0x1c0] sm:$0xff]  }
  0xb1   : > { %v5287_v26 = vld [vmem:[%s6822_s28 + $0x1c] sm:$0xf]  ;;  %v5288_v27 = vld [vmem:[%s6822_s28 + $0x20] sm:$0x1]  ;;  %v1157_v28 = vshrl.u32 %v5286_v23, 16  ;;  %v1160_v29 = vshll.u32 %v5286_v23, 16  ;;  %6113 = vmatprep.subr.bf16.mxu1 %v6525_v1 }
  0xb2   : > { %1005 = vst [vmem:[#allocation2 + $0x290] sm:$0xf] %v909_v24  ;;  %v1166_v30 = vshll.u32 %v5287_v26, 16  ;;  %v1170_v31 = vshrl.u32 %v5287_v26, 16  ;;  %v1176_v32 = vshll.u32 %v5288_v27, 16  ;;  %v912_v34 = vsel %vm6997_vm5, %v910_v25, %v911_v21  ;;  %v6511_v8 = vld [vmem:[%s8389_s1 + $0x228] sm:$0xff]  }
  0xb3   : > { %v5334_v33 = vld [vmem:[%s6822_s28 + $0x18] sm:$0xe]  ;;  %v1159_v35 = vrot.slane %v1157_v28, 4  ;;  %v5335_v36 = vld [vmem:[%s6822_s28 + $0x1c] sm:$0xf]  ;;  %4415 = vmatmul.mubr.bf16.gmra.mxu1 %v6479_v15  ;;  %v1162_v40 = vrot.slane %v1160_v29, 5 }
  0xb4   : > { %v5336_v37 = vld [vmem:[%s6822_s28 + $0x20] sm:$0x1]  ;;  %v5380_v38 = vrot.slane %v5334_v33, 9  ;;  %1006 = vst [vmem:[#allocation2 + $0x2b4] sm:$0xf] %v912_v34  ;;  %v1168_v41 = vrot.slane %v1166_v30, 5 }
  0xb5   : > { %v1172_v42 = vrot.slane %v1170_v31, 4  ;;  %v1178_v43 = vrot.slane %v1176_v32, 5  ;;  %v774_v44 = vld [vmem:[%s6822_s28 + $0x78] sm:$0xe]  ;;  %v1685_v46 = vrot.slane %v5335_v36, 5  ;;  %v1688_v47 = vrot.slane %v5336_v37, 5 }
  0xb6   : > { %v6476_v45 = vld [vmem:[#allocation2 + $0x10] ss:$36 sps:$4 sm:$0xff]   ;;  %v1163_v51 = vor.u32 %v1162_v40, %v1159_v35  ;;  %v775_v53 = vld [vmem:[%s6822_s28 + $0x7c] sm:$0xf]  ;;  %v776_v54 = vld [vmem:[%s6822_s28 + $0x80] sm:$0x1] }
  0xb7   : > { %v6478_v50 = vld [vmem:[#allocation2 + $0x14] ss:$36 sps:$4 sm:$0xff]   ;;  %v1173_v52 = vor.u32 %v1172_v42, %v1168_v41  ;;  %v1686_v55 = vsel %vm6997_vm5, %v5380_v38, %v1685_v46  ;;  %v1687_v56 = vrot.slane %v1685_v46, 4  ;;  %v5245_v57 = vrot.slane %v774_v44, 9  ;;  %v5271_v59 = vld [vmem:[%s6822_s28 + $0x84] sm:$0xf] }
  0xb8   : > { %v915_v58 = vrot.slane %v775_v53, 5  ;;  %4511 = vmatprep.mubr.bf16.mxu0 %v6478_v50  ;;  %v1164_v61 = vrot.slane %v1163_v51, 4  ;;  %1822 = vst [vmem:[#allocation2 + $0x5c] sm:$0xf] %v1686_v55  ;;  %v918_v63 = vrot.slane %v776_v54, 5  ;;  %v6527_v30 = vld [vmem:[%s8389_s1 + $0x180] sm:$0xff]  }
  0xb9   : > { %v1174_v62 = vrot.slane %v1173_v52, 4  ;;  %v5272_v0 = vld [vmem:[%s6822_s28 + $0x88] sm:$0xf]  ;;  %1072 = vst [vmem:[#allocation2 + $0x2dc] sm:$0xf] %v5271_v59  ;;  %4512 = vmatmul.mubr.bf16.vlgmr.msra.gmra.mxu0 %v6476_v45  ;;  %v1689_v2 = vsel %vm6997_vm5, %v1687_v56, %v1688_v47  ;;  %v6526_v33 = vld [vmem:[%s8389_s1 + $0x220] sm:$0xff]   ;;  %6114 = vmatpush3.bf16.msra.mxu1 %v6527_v30 }
  0xba   : > { %v916_v3 = vsel %vm6997_vm5, %v5245_v57, %v915_v58  ;;  %v917_v4 = vrot.slane %v915_v58, 4  ;;  %1073 = vst [vmem:[#allocation2 + $0x300] sm:$0xf] %v5272_v0  ;;  %v5289_v5 = vld [vmem:[%s6822_s28 + $0x24] sm:$0xf]  ;;  %6236 = vmatpush3.bf16.msra.mxu0 %v7188_v6  ;;  %v1169_v9 = vsel %vm6854_vm2, %v1164_v61, %v1168_v41  ;;  %v6540_v40 = vld [vmem:[%s8389_s1 + $0x218] sm:$0xff]  }
  0xbb   : > { %v5290_v7 = vld [vmem:[%s6822_s28 + $0x28] sm:$0xf]  ;;  %v1179_v10 = vsel %vm6854_vm2, %v1174_v62, %v1178_v43  ;;  %1823 = vst [vmem:[#allocation2 + $0x80] sm:$0xf] %v1689_v2  ;;  %1007 = vst [vmem:[#allocation2 + $0x2d8] sm:$0xf] %v916_v3  ;;  %6237 = vmatprep.subr.bf16.mxu0 %v6496_v49 }
  0xbc   : > { %v5291_v11 = vld [vmem:[%s6822_s28 + $0x2c] sm:$0x1]  ;;  %v1181_v12 = vshrl.u32 %v5289_v5, 16  ;;  %v1184_v13 = vshll.u32 %v5289_v5, 16  ;;  %v5337_v14 = vld [vmem:[%s6822_s28 + $0x24] sm:$0xe]  ;;  %v919_v6 = vsel %vm6997_vm5, %v917_v4, %v918_v63 }
  0xbd   : > { %v6483_v15 = vld [vmem:[#allocation2 + $0x294] ss:$36 sps:$4 sm:$0xff]   ;;  %1550 = vst [vmem:[#allocation2 + $0x58] sm:$0xf] %v1169_v9  ;;  %1551 = vst [vmem:[#allocation2 + $0x7c] sm:$0xf] %v1179_v10 }
  0xbe   : > { %v6487_v16 = vld [vmem:[#allocation2 + $0x290] ss:$36 sps:$4 sm:$0xff]   ;;  %v1190_v17 = vshll.u32 %v5290_v7, 16  ;;  %1008 = vst [vmem:[#allocation2 + $0x2fc] sm:$0xf] %v919_v6  ;;  %v1183_v18 = vrot.slane %v1181_v12, 4  ;;  %4422 = vmatprep.mubr.bf16.mxu1 %v6483_v15  ;;  %6238 = vmatpush3.bf16.msra.mxu0 %v6496_v49 }
  0xbf   : > { %v1186_v19 = vrot.slane %v1184_v13, 5  ;;  %v1194_v20 = vshrl.u32 %v5290_v7, 16  ;;  %v1200_v21 = vshll.u32 %v5291_v11, 16  ;;  %v5338_v22 = vld [vmem:[%s6822_s28 + $0x28] sm:$0xf]  ;;  %v5381_v25 = vrot.slane %v5337_v14, 9  ;;  %4423 = vmatmul.mubr.bf16.gmra.mxu1 %v6487_v16  ;;  %6239 = vmatprep.subr.bf16.mxu0 %v6511_v8 }
  0xc0   : > { %v1192_v23 = vrot.slane %v1190_v17, 5  ;;  %v5339_v24 = vld [vmem:[%s6822_s28 + $0x2c] sm:$0x1]  ;;  %v1692_v26 = vrot.slane %v5338_v22, 5  ;;  %v777_v38 = vld [vmem:[%s6822_s28 + $0x84] sm:$0xe] }
  0xc1   : > { %v1187_v27 = vor.u32 %v1186_v19, %v1183_v18  ;;  %v1196_v28 = vrot.slane %v1194_v20, 4  ;;  %v1695_v29 = vrot.slane %v5339_v24, 5  ;;  %v1202_v36 = vrot.slane %v1200_v21, 5  ;;  %v6489_v45 = vld [vmem:[#allocation2 + $0x2dc] ss:$36 sps:$4 sm:$0xff]   ;;  %v6553_v0 = vld [vmem:[%s8389_s1 + $0x210] sm:$0xff]  }
  0xc2   : > { %v1693_v31 = vsel %vm6997_vm5, %v5381_v25, %v1692_v26  ;;  %v1694_v32 = vrot.slane %v1692_v26, 4  ;;  %v6485_v41 = vld [vmem:[#allocation2 + $0x5c] ss:$36 sps:$4 sm:$0xff]   ;;  %6240 = vmatpush3.bf16.msra.mxu0 %v6511_v8  ;;  %v5246_v46 = vrot.slane %v777_v38, 9  ;;  %v778_v50 = vld [vmem:[%s6822_s28 + $0x88] sm:$0xf]  ;;  %4430 = vmatprep.mubr.bf16.mxu1 %v6489_v45 }
  0xc3   : > { %v1188_v34 = vrot.slane %v1187_v27, 4  ;;  %v1197_v35 = vor.u32 %v1196_v28, %v1192_v23  ;;  %1824 = vst [vmem:[#allocation2 + $0xa4] sm:$0xf] %v1693_v31  ;;  %6241 = vmatprep.subr.bf16.mxu0 %v6526_v33  ;;  %4519 = vmatprep.mubr.bf16.mxu0 %v6485_v41  ;;  %v779_v51 = vld [vmem:[%s6822_s28 + $0x8c] sm:$0x1]  ;;  %v922_v52 = vrot.slane %v778_v50, 5 }
  0xc4   : > { %v1696_v37 = vsel %vm6997_vm5, %v1694_v32, %v1695_v29  ;;  %v6488_v44 = vld [vmem:[#allocation2 + $0x58] ss:$36 sps:$4 sm:$0xff]   ;;  %v925_v53 = vrot.slane %v779_v51, 5  ;;  %v5273_v54 = vld [vmem:[%s6822_s28 + $0x90] sm:$0xf]  ;;  %v6566_v15 = vld [vmem:[%s8389_s1 + $0x208] sm:$0xff]  }
  0xc5   : > { %v1193_v42 = vsel %vm6854_vm2, %v1188_v34, %v1192_v23  ;;  %v1198_v43 = vrot.slane %v1197_v35, 4  ;;  %1825 = vst [vmem:[#allocation2 + $0xc8] sm:$0xf] %v1696_v37  ;;  %v6493_v49 = vld [vmem:[#allocation2 + $0x2d8] ss:$36 sps:$4 sm:$0xff]   ;;  %4520 = vmatmul.mubr.bf16.gmra.mxu0 %v6488_v44  ;;  %v923_v59 = vsel %vm6997_vm5, %v5246_v46, %v922_v52  ;;  %v924_v60 = vrot.slane %v922_v52, 4 }
  0xc6   : > { %1552 = vst [vmem:[#allocation2 + $0xa0] sm:$0xf] %v1193_v42  ;;  %v5274_v55 = vld [vmem:[%s6822_s28 + $0x94] sm:$0xf]  ;;  %1074 = vst [vmem:[#allocation2 + $0x324] sm:$0xf] %v5273_v54  ;;  %6242 = vmatpush3.bf16.msra.mxu0 %v6526_v33 }
  0xc7   : > { %v1203_v47 = vsel %vm6854_vm2, %v1198_v43, %v1202_v36  ;;  %4431 = vmatmul.mubr.bf16.gmra.mxu1 %v6493_v49  ;;  %1075 = vst [vmem:[#allocation2 + $0x348] sm:$0xf] %v5274_v55  ;;  %v5292_v56 = vld [vmem:[%s6822_s28 + $0x30] sm:$0xf]  ;;  %v5293_v57 = vld [vmem:[%s6822_s28 + $0x34] sm:$0xf]  ;;  %6243 = vmatprep.subr.bf16.mxu0 %v6540_v40  ;;  %v926_v7 = vsel %vm6997_vm5, %v924_v60, %v925_v53 }
  0xc8   : > { %1553 = vst [vmem:[#allocation2 + $0xc4] sm:$0xf] %v1203_v47  ;;  %v5294_v58 = vld [vmem:[%s6822_s28 + $0x38] sm:$0x1]  ;;  %v1205_v61 = vshrl.u32 %v5292_v56, 16  ;;  %v1208_v62 = vshll.u32 %v5292_v56, 16 }
  0xc9   : > { %v5340_v63 = vld [vmem:[%s6822_s28 + $0x30] sm:$0xe]  ;;  %1009 = vst [vmem:[#allocation2 + $0x320] sm:$0xf] %v923_v59  ;;  %v1214_v1 = vshll.u32 %v5293_v57, 16  ;;  %v1218_v2 = vshrl.u32 %v5293_v57, 16 }
  0xca   : > { %v1224_v3 = vshll.u32 %v5294_v58, 16  ;;  %v5341_v4 = vld [vmem:[%s6822_s28 + $0x34] sm:$0xf]  ;;  %v5382_v5 = vrot.slane %v5340_v63, 9  ;;  %v1207_v8 = vrot.slane %v1205_v61, 4  ;;  %v1210_v9 = vrot.slane %v1208_v62, 5  ;;  %6244 = vmatpush3.bf16.msra.mxu0 %v6540_v40 }
  0xcb   : > { %v5342_v10 = vld [vmem:[%s6822_s28 + $0x38] sm:$0x1]  ;;  %v1699_v11 = vrot.slane %v5341_v4, 5  ;;  %1010 = vst [vmem:[#allocation2 + $0x344] sm:$0xf] %v926_v7  ;;  %v1216_v12 = vrot.slane %v1214_v1, 5  ;;  %6245 = vmatprep.subr.bf16.mxu0 %v6553_v0 }
  0xcc   : > { %v1220_v13 = vrot.slane %v1218_v2, 4  ;;  %v1702_v14 = vrot.slane %v5342_v10, 5  ;;  %v1211_v16 = vor.u32 %v1210_v9, %v1207_v8  ;;  %v1226_v6 = vrot.slane %v1224_v3, 5  ;;  %v780_v19 = vld [vmem:[%s6822_s28 + $0x90] sm:$0xe]  ;;  %v6579_v2 = vld [vmem:[%s8389_s1 + $0x200] sm:$0xff]  }
  0xcd   : > { %v1700_v17 = vsel %vm6997_vm5, %v5382_v5, %v1699_v11  ;;  %v1701_v18 = vrot.slane %v1699_v11, 4  ;;  %v781_v20 = vld [vmem:[%s6822_s28 + $0x94] sm:$0xf]  ;;  %v6491_v21 = vld [vmem:[#allocation2 + $0xa4] ss:$36 sps:$4 sm:$0xff]   ;;  %v5247_v24 = vrot.slane %v780_v19, 9 }
  0xce   : > { %v1221_v23 = vor.u32 %v1220_v13, %v1216_v12  ;;  %1826 = vst [vmem:[#allocation2 + $0xec] sm:$0xf] %v1700_v17  ;;  %v1212_v25 = vrot.slane %v1211_v16, 4  ;;  %v782_v27 = vld [vmem:[%s6822_s28 + $0x98] sm:$0x1]  ;;  %v929_v28 = vrot.slane %v781_v20, 5  ;;  %4527 = vmatprep.mubr.bf16.mxu0 %v6491_v21  ;;  %6246 = vmatpush3.bf16.msra.mxu0 %v6553_v0 }
  0xcf   : > { %v6494_v22 = vld [vmem:[#allocation2 + $0xa0] ss:$36 sps:$4 sm:$0xff]   ;;  %v1703_v26 = vsel %vm6997_vm5, %v1701_v18, %v1702_v14  ;;  %v5275_v29 = vld [vmem:[%s6822_s28 + $0x9c] sm:$0xf]  ;;  %v932_v31 = vrot.slane %v782_v27, 5  ;;  %6247 = vmatprep.subr.bf16.mxu0 %v6566_v15 }
  0xd0   : > { %v1222_v30 = vrot.slane %v1221_v23, 4  ;;  %1827 = vst [vmem:[#allocation2 + $0x110] sm:$0xf] %v1703_v26  ;;  %v5276_v32 = vld [vmem:[%s6822_s28 + $0xa0] sm:$0xf]  ;;  %4528 = vmatmul.mubr.bf16.gmra.mxu0 %v6494_v22  ;;  %v1217_v34 = vsel %vm6854_vm2, %v1212_v25, %v1216_v12  ;;  %v930_v35 = vsel %vm6997_vm5, %v5247_v24, %v929_v28  ;;  %v931_v36 = vrot.slane %v929_v28, 4 }
  0xd1   : > { %1076 = vst [vmem:[#allocation2 + $0x36c] sm:$0xf] %v5275_v29  ;;  %v5295_v33 = vld [vmem:[%s6822_s28 + $0x3c] sm:$0xf]  ;;  %1077 = vst [vmem:[#allocation2 + $0x390] sm:$0xf] %v5276_v32 }
  0xd2   : > { %v5296_v37 = vld [vmem:[%s6822_s28 + $0x40] sm:$0xf]  ;;  %v5297_v38 = vld [vmem:[%s6822_s28 + $0x44] sm:$0x1]  ;;  %v1227_v40 = vsel %vm6854_vm2, %v1222_v30, %v1226_v6  ;;  %1554 = vst [vmem:[#allocation2 + $0xe8] sm:$0xf] %v1217_v34  ;;  %v933_v47 = vsel %vm6997_vm5, %v931_v36, %v932_v31  ;;  %6248 = vmatpush3.bf16.msra.mxu0 %v6566_v15 }
  0xd3   : > { %1011 = vst [vmem:[#allocation2 + $0x368] sm:$0xf] %v930_v35  ;;  %v1229_v41 = vshrl.u32 %v5295_v33, 16  ;;  %v1232_v42 = vshll.u32 %v5295_v33, 16  ;;  %v1238_v43 = vshll.u32 %v5296_v37, 16  ;;  %v1242_v49 = vshrl.u32 %v5296_v37, 16  ;;  %6249 = vmatprep.subr.bf16.mxu0 %v6579_v2 }
  0xd4   : > { %v5343_v44 = vld [vmem:[%s6822_s28 + $0x3c] sm:$0xe]  ;;  %v6498_v45 = vld [vmem:[#allocation2 + $0x324] ss:$36 sps:$4 sm:$0xff]   ;;  %1555 = vst [vmem:[#allocation2 + $0x10c] sm:$0xf] %v1227_v40 }
  0xd5   : > { %v6502_v46 = vld [vmem:[#allocation2 + $0x320] ss:$36 sps:$4 sm:$0xff]   ;;  %1012 = vst [vmem:[#allocation2 + $0x38c] sm:$0xf] %v933_v47  ;;  %v1231_v50 = vrot.slane %v1229_v41, 4  ;;  %v1234_v51 = vrot.slane %v1232_v42, 5  ;;  %4438 = vmatprep.mubr.bf16.mxu1 %v6498_v45 }
  0xd6   : > { %v1240_v52 = vrot.slane %v1238_v43, 5  ;;  %v1248_v53 = vshll.u32 %v5297_v38, 16  ;;  %v5344_v54 = vld [vmem:[%s6822_s28 + $0x40] sm:$0xf]  ;;  %v1244_v55 = vrot.slane %v1242_v49, 4  ;;  %v5383_v57 = vrot.slane %v5343_v44, 9  ;;  %4439 = vmatmul.mubr.bf16.gmra.mxu1 %v6502_v46  ;;  %6250 = vmatpush3.bf16.msra.mxu0 %v6579_v2 }
  0xd7   : > { %v5345_v56 = vld [vmem:[%s6822_s28 + $0x44] sm:$0x1]  ;;  %v1706_v58 = vrot.slane %v5344_v54, 5  ;;  %v1235_v59 = vor.u32 %v1234_v51, %v1231_v50  ;;  %v783_v5 = vld [vmem:[%s6822_s28 + $0x9c] sm:$0xe] }
  0xd8   : > { %v1709_v60 = vrot.slane %v5345_v56, 5  ;;  %v1245_v61 = vor.u32 %v1244_v55, %v1240_v52  ;;  %v1250_v62 = vrot.slane %v1248_v53, 5  ;;  %v6500_v7 = vld [vmem:[#allocation2 + $0xec] ss:$36 sps:$4 sm:$0xff]   ;;  %v5248_v13 = vrot.slane %v783_v5, 9 }
  0xd9   : > { %v1707_v63 = vsel %vm6997_vm5, %v5383_v57, %v1706_v58  ;;  %v1708_v0 = vrot.slane %v1706_v58, 4  ;;  %v1236_v1 = vrot.slane %v1235_v59, 4  ;;  %v6504_v10 = vld [vmem:[#allocation2 + $0x36c] ss:$36 sps:$4 sm:$0xff]   ;;  %4535 = vmatprep.mubr.bf16.mxu0 %v6500_v7  ;;  %v784_v14 = vld [vmem:[%s6822_s28 + $0xa0] sm:$0xf] }
  0xda   : > { %1828 = vst [vmem:[#allocation2 + $0x134] sm:$0xf] %v1707_v63  ;;  %v1246_v3 = vrot.slane %v1245_v61, 4  ;;  %v785_v15 = vld [vmem:[%s6822_s28 + $0xa4] sm:$0x1]  ;;  %4446 = vmatprep.mubr.bf16.mxu1 %v6504_v10  ;;  %v936_v6 = vrot.slane %v784_v14, 5 }
  0xdb   : > { %v1710_v4 = vsel %vm6997_vm5, %v1708_v0, %v1709_v60  ;;  %v6503_v8 = vld [vmem:[#allocation2 + $0xe8] ss:$36 sps:$4 sm:$0xff]   ;;  %v1241_v9 = vsel %vm6854_vm2, %v1236_v1, %v1240_v52  ;;  %v939_v17 = vrot.slane %v785_v15, 5  ;;  %v5300_v21 = vld [vmem:[%s6822_s28 + $0x50] sm:$0x1] }
  0xdc   : > { %1829 = vst [vmem:[#allocation2 + $0x158] sm:$0xf] %v1710_v4  ;;  %v1251_v11 = vsel %vm6854_vm2, %v1246_v3, %v1250_v62  ;;  %1556 = vst [vmem:[#allocation2 + $0x130] sm:$0xf] %v1241_v9  ;;  %v6508_v12 = vld [vmem:[#allocation2 + $0x368] ss:$36 sps:$4 sm:$0xff]   ;;  %4536 = vmatmul.mubr.bf16.gmra.mxu0 %v6503_v8  ;;  %v937_v24 = vsel %vm6997_vm5, %v5248_v13, %v936_v6 }
  0xdd   : > { %1557 = vst [vmem:[#allocation2 + $0x154] sm:$0xf] %v1251_v11  ;;  %v5277_v16 = vld [vmem:[%s6822_s28 + $0xa8] sm:$0xf]  ;;  %v5278_v18 = vld [vmem:[%s6822_s28 + $0xac] sm:$0xf] }
  0xde   : > { %1078 = vst [vmem:[#allocation2 + $0x3b4] sm:$0xf] %v5277_v16  ;;  %v5298_v19 = vld [vmem:[%s6822_s28 + $0x48] sm:$0xf]  ;;  %4447 = vmatmul.mubr.bf16.gmra.mxu1 %v6508_v12  ;;  %1079 = vst [vmem:[#allocation2 + $0x3d8] sm:$0xf] %v5278_v18 }
  0xdf   : > { %v5299_v20 = vld [vmem:[%s6822_s28 + $0x4c] sm:$0xf]  ;;  %v1253_v22 = vshrl.u32 %v5298_v19, 16  ;;  %v1256_v23 = vshll.u32 %v5298_v19, 16  ;;  %v938_v25 = vrot.slane %v936_v6, 4  ;;  %v1272_v31 = vshll.u32 %v5300_v21, 16 }
  0xe0   : > { %v1262_v26 = vshll.u32 %v5299_v20, 16  ;;  %v1266_v27 = vshrl.u32 %v5299_v20, 16  ;;  %v5346_v28 = vld [vmem:[%s6822_s28 + $0x48] sm:$0xe]  ;;  %1013 = vst [vmem:[#allocation2 + $0x3b0] sm:$0xf] %v937_v24 }
  0xe1   : > { %v1255_v29 = vrot.slane %v1253_v22, 4  ;;  %v1258_v30 = vrot.slane %v1256_v23, 5  ;;  %v5347_v32 = vld [vmem:[%s6822_s28 + $0x4c] sm:$0xf]  ;;  %v5384_v33 = vrot.slane %v5346_v28, 9  ;;  %v940_v34 = vsel %vm6997_vm5, %v938_v25, %v939_v17 }
  0xe2   : > { %v1264_v35 = vrot.slane %v1262_v26, 5  ;;  %v1268_v36 = vrot.slane %v1266_v27, 4  ;;  %v5348_v37 = vld [vmem:[%s6822_s28 + $0x50] sm:$0x1]  ;;  %v1713_v38 = vrot.slane %v5347_v32, 5  ;;  %v1274_v41 = vrot.slane %v1272_v31, 5 }
  0xe3   : > { %1014 = vst [vmem:[#allocation2 + $0x3d4] sm:$0xf] %v940_v34  ;;  %v1259_v40 = vor.u32 %v1258_v30, %v1255_v29  ;;  %v1716_v42 = vrot.slane %v5348_v37, 5  ;;  %v786_v43 = vld [vmem:[%s6822_s28 + $0xa8] sm:$0xe] }
  0xe4   : > { %v6506_v44 = vld [vmem:[#allocation2 + $0x134] ss:$36 sps:$4 sm:$0xff]   ;;  %v1269_v46 = vor.u32 %v1268_v36, %v1264_v35  ;;  %v1714_v47 = vsel %vm6997_vm5, %v5384_v33, %v1713_v38  ;;  %v1715_v49 = vrot.slane %v1713_v38, 4  ;;  %v787_v51 = vld [vmem:[%s6822_s28 + $0xac] sm:$0xf]  ;;  %v5249_v53 = vrot.slane %v786_v43, 9 }
  0xe5   : > { %v6509_v45 = vld [vmem:[#allocation2 + $0x130] ss:$36 sps:$4 sm:$0xff]   ;;  %v1260_v50 = vrot.slane %v1259_v40, 4  ;;  %1830 = vst [vmem:[#allocation2 + $0x17c] sm:$0xf] %v1714_v47  ;;  %4543 = vmatprep.mubr.bf16.mxu0 %v6506_v44  ;;  %v943_v56 = vrot.slane %v787_v51, 5 }
  0xe6   : > { %v788_v52 = vld [vmem:[%s6822_s28 + $0xb0] sm:$0x1]  ;;  %v1270_v54 = vrot.slane %v1269_v46, 4  ;;  %v1717_v55 = vsel %vm6997_vm5, %v1715_v49, %v1716_v42  ;;  %v5279_v58 = vld [vmem:[%s6822_s28 + $0xb4] sm:$0xf]  ;;  %4544 = vmatmul.mubr.bf16.gmra.mxu0 %v6509_v45 }
  0xe7   : > { %v946_v57 = vrot.slane %v788_v52, 5  ;;  %v1265_v59 = vsel %vm6854_vm2, %v1260_v50, %v1264_v35  ;;  %1831 = vst [vmem:[#allocation2 + $0x1a0] sm:$0xf] %v1717_v55  ;;  %v5280_v60 = vld [vmem:[%s6822_s28 + $0xb8] sm:$0xf]  ;;  %v944_v0 = vsel %vm6997_vm5, %v5249_v53, %v943_v56  ;;  %v945_v1 = vrot.slane %v943_v56, 4 }
  0xe8   : > { %1080 = vst [vmem:[#allocation2 + $0x3fc] sm:$0xf] %v5279_v58  ;;  %v5301_v61 = vld [vmem:[%s6822_s28 + $0x54] sm:$0xf]  ;;  %v5302_v62 = vld [vmem:[%s6822_s28 + $0x58] sm:$0xf]  ;;  %v1275_v63 = vsel %vm6854_vm2, %v1270_v54, %v1274_v41 }
  0xe9   : > { %1558 = vst [vmem:[#allocation2 + $0x178] sm:$0xf] %v1265_v59  ;;  %1081 = vst [vmem:[#allocation2 + $0x420] sm:$0xf] %v5280_v60  ;;  %v5303_v2 = vld [vmem:[%s6822_s28 + $0x5c] sm:$0x1]  ;;  %v947_v12 = vsel %vm6997_vm5, %v945_v1, %v946_v57 }
  0xea   : > { %v1277_v3 = vshrl.u32 %v5301_v61, 16  ;;  %1559 = vst [vmem:[#allocation2 + $0x19c] sm:$0xf] %v1275_v63  ;;  %1015 = vst [vmem:[#allocation2 + $0x3f8] sm:$0xf] %v944_v0  ;;  %v1280_v4 = vshll.u32 %v5301_v61, 16 }
  0xeb   : > { %v1286_v5 = vshll.u32 %v5302_v62, 16  ;;  %v1290_v7 = vshrl.u32 %v5302_v62, 16  ;;  %v1296_v8 = vshll.u32 %v5303_v2, 16  ;;  %v5349_v9 = vld [vmem:[%s6822_s28 + $0x54] sm:$0xe] }
  0xec   : > { %v6513_v10 = vld [vmem:[#allocation2 + $0x3b4] ss:$36 sps:$4 sm:$0xff]   ;;  %v1279_v13 = vrot.slane %v1277_v3, 4  ;;  %1016 = vst [vmem:[#allocation2 + $0x41c] sm:$0xf] %v947_v12  ;;  %v1282_v14 = vrot.slane %v1280_v4, 5 }
  0xed   : > { %v6517_v11 = vld [vmem:[#allocation2 + $0x3b0] ss:$36 sps:$4 sm:$0xff]   ;;  %v1288_v15 = vrot.slane %v1286_v5, 5  ;;  %v1292_v16 = vrot.slane %v1290_v7, 4  ;;  %v5350_v6 = vld [vmem:[%s6822_s28 + $0x58] sm:$0xf]  ;;  %4454 = vmatprep.mubr.bf16.mxu1 %v6513_v10 }
  0xee   : > { %v5351_v17 = vld [vmem:[%s6822_s28 + $0x5c] sm:$0x1]  ;;  %v5385_v18 = vrot.slane %v5349_v9, 9  ;;  %v1720_v19 = vrot.slane %v5350_v6, 5  ;;  %4455 = vmatmul.mubr.bf16.gmra.mxu1 %v6517_v11  ;;  %v1283_v20 = vor.u32 %v1282_v14, %v1279_v13  ;;  %v1298_v22 = vrot.slane %v1296_v8, 5 }
  0xef   : > { %v1293_v21 = vor.u32 %v1292_v16, %v1288_v15  ;;  %v1723_v23 = vrot.slane %v5351_v17, 5  ;;  %v6515_v28 = vld [vmem:[#allocation2 + $0x17c] ss:$36 sps:$4 sm:$0xff]   ;;  %v789_v33 = vld [vmem:[%s6822_s28 + $0xb4] sm:$0xe] }
  0xf0   : > { %v1721_v24 = vsel %vm6997_vm5, %v5385_v18, %v1720_v19  ;;  %v1722_v25 = vrot.slane %v1720_v19, 4  ;;  %v1284_v26 = vrot.slane %v1283_v20, 4  ;;  %v790_v34 = vld [vmem:[%s6822_s28 + $0xb8] sm:$0xf]  ;;  %4551 = vmatprep.mubr.bf16.mxu0 %v6515_v28  ;;  %v6519_v36 = vld [vmem:[#allocation2 + $0x3fc] ss:$36 sps:$4 sm:$0xff]  }
  0xf1   : > { %v1294_v27 = vrot.slane %v1293_v21, 4  ;;  %1832 = vst [vmem:[#allocation2 + $0x1c4] sm:$0xf] %v1721_v24  ;;  %v6518_v29 = vld [vmem:[#allocation2 + $0x178] ss:$36 sps:$4 sm:$0xff]   ;;  %v5250_v38 = vrot.slane %v789_v33, 9  ;;  %4462 = vmatprep.mubr.bf16.mxu1 %v6519_v36 }
  0xf2   : > { %v1724_v30 = vsel %vm6997_vm5, %v1722_v25, %v1723_v23  ;;  %v1289_v31 = vsel %vm6854_vm2, %v1284_v26, %v1288_v15  ;;  %4552 = vmatmul.mubr.bf16.gmra.mxu0 %v6518_v29  ;;  %v791_v40 = vld [vmem:[%s6822_s28 + $0xbc] sm:$0x1]  ;;  %v950_v41 = vrot.slane %v790_v34, 5  ;;  %v5281_v42 = vld [vmem:[%s6822_s28 + $0xc0] sm:$0xf] }
  0xf3   : > { %v1299_v32 = vsel %vm6854_vm2, %v1294_v27, %v1298_v22  ;;  %1833 = vst [vmem:[#allocation2 + $0x1e8] sm:$0xf] %v1724_v30  ;;  %1560 = vst [vmem:[#allocation2 + $0x1c0] sm:$0xf] %v1289_v31  ;;  %v6523_v37 = vld [vmem:[#allocation2 + $0x3f8] ss:$36 sps:$4 sm:$0xff]  }
  0xf4   : > { %1561 = vst [vmem:[#allocation2 + $0x1e4] sm:$0xf] %v1299_v32  ;;  %v953_v44 = vrot.slane %v791_v40, 5  ;;  %v5282_v45 = vld [vmem:[%s6822_s28 + $0xc4] sm:$0xf]  ;;  %v951_v49 = vsel %vm6997_vm5, %v5250_v38, %v950_v41  ;;  %v952_v50 = vrot.slane %v950_v41, 4 }
  0xf5   : > { %1082 = vst [vmem:[#allocation2 + $0x444] sm:$0xf] %v5281_v42  ;;  %v5304_v46 = vld [vmem:[%s6822_s28 + $0x60] sm:$0xf]  ;;  %1083 = vst [vmem:[#allocation2 + $0x468] sm:$0xf] %v5282_v45 }
  0xf6   : > { %v5779_v35 = vpop.f32.mrf.mxu0  ;;  %4463 = vmatmul.mubr.bf16.gmra.mxu1 %v6523_v37  ;;  %v5305_v51 = vld [vmem:[%s6822_s28 + $0x64] sm:$0xf]  ;;  %v5306_v52 = vld [vmem:[%s6822_s28 + $0x68] sm:$0x1]  ;;  %v1301_v53 = vshrl.u32 %v5304_v46, 16  ;;  %v5851_v54 = vpop.f32.mrf.mxu1  ;;  %v1304_v55 = vshll.u32 %v5304_v46, 16  ;;  %v954_v61 = vsel %vm6997_vm5, %v952_v50, %v953_v44 }
  0xf7   : > { %1017 = vst [vmem:[#allocation2 + $0x440] sm:$0xf] %v951_v49  ;;  %v1310_v56 = vshll.u32 %v5305_v51, 16  ;;  %v1314_v57 = vshrl.u32 %v5305_v51, 16  ;;  %v1320_v58 = vshll.u32 %v5306_v52, 16 }
  0xf8   : > { %v5780_v43 = vpop.f32.mrf.mxu0  ;;  %v5352_v59 = vld [vmem:[%s6822_s28 + $0x60] sm:$0xe]  ;;  %v1303_v62 = vrot.slane %v1301_v53, 4  ;;  %v5353_v63 = vld [vmem:[%s6822_s28 + $0x64] sm:$0xf]  ;;  %v5852_v2 = vpop.f32.mrf.mxu1  ;;  %v1306_v3 = vrot.slane %v1304_v55, 5 }
  0xf9   : > { %v7412_v47 = vadd.f32 %v5780_v43, %v5779_v35  ;;  %v5354_v0 = vld [vmem:[%s6822_s28 + $0x68] sm:$0x1]  ;;  %v5386_v1 = vrot.slane %v5352_v59, 9  ;;  %1018 = vst [vmem:[#allocation2 + $0x464] sm:$0xf] %v954_v61  ;;  %v1312_v4 = vrot.slane %v1310_v56, 5  ;;  %v7426_v12 = vadd.f32 %v5852_v2, %v5851_v54 }
  0xfa   : > { %v7419_v60 = vpop.f32.mrf.mxu0  ;;  %v1316_v5 = vrot.slane %v1314_v57, 4  ;;  %v1322_v7 = vrot.slane %v1320_v58, 5  ;;  %v5307_v8 = vld [vmem:[%s6822_s28 + $0x6c] sm:$0xf]  ;;  %v6521_v9 = vld [vmem:[#allocation2 + $0x1c4] ss:$36 sps:$4 sm:$0xff]   ;;  %v1307_v14 = vor.u32 %v1306_v3, %v1303_v62  ;;  %v7430_v17 = vpop.f32.mrf.mxu1 }
  0xfb   : > { %v1727_v10 = vrot.slane %v5353_v63, 5  ;;  %v1730_v11 = vrot.slane %v5354_v0, 5  ;;  %v6524_v13 = vld [vmem:[#allocation2 + $0x1c0] ss:$36 sps:$4 sm:$0xff]   ;;  %v5308_v16 = vld [vmem:[%s6822_s28 + $0x70] sm:$0xf]  ;;  %4559 = vmatprep.mubr.bf16.mxu0 %v6521_v9 }
  0xfc   : > { %v1317_v15 = vor.u32 %v1316_v5, %v1312_v4  ;;  %v5309_v6 = vld [vmem:[%s6822_s28 + $0x74] sm:$0x1]  ;;  %v7432_v18 = vpop.f32.mrf.mxu0  ;;  %v1325_v21 = vshrl.u32 %v5307_v8, 16  ;;  %v1328_v22 = vshll.u32 %v5307_v8, 16  ;;  %v5355_v23 = vld [vmem:[%s6822_s28 + $0x6c] sm:$0xe]  ;;  %4560 = vmatmul.mubr.bf16.gmra.mxu0 %v6524_v13  ;;  %v7447_v41 = vpop.f32.mrf.mxu1 }
  0xfd   : > { %v1728_v19 = vsel %vm6997_vm5, %v5386_v1, %v1727_v10  ;;  %v1729_v20 = vrot.slane %v1727_v10, 4  ;;  %v1308_v24 = vrot.slane %v1307_v14, 4  ;;  %v1334_v26 = vshll.u32 %v5308_v16, 16  ;;  %v5356_v28 = vld [vmem:[%s6822_s28 + $0x70] sm:$0xf] }
  0xfe   : > { %v1318_v25 = vrot.slane %v1317_v15, 4  ;;  %1834 = vst [vmem:[#allocation2 + $0x20c] sm:$0xf] %v1728_v19  ;;  %v1338_v27 = vshrl.u32 %v5308_v16, 16  ;;  %v1327_v30 = vrot.slane %v1325_v21, 4  ;;  %v1330_v31 = vrot.slane %v1328_v22, 5  ;;  %v5785_v42 = vpop.f32.mrf.mxu0 }
  0xff   : > { %v1731_v29 = vsel %vm6997_vm5, %v1729_v20, %v1730_v11  ;;  %v1344_v32 = vshll.u32 %v5309_v6, 16  ;;  %v5357_v33 = vld [vmem:[%s6822_s28 + $0x74] sm:$0x1]  ;;  %v1313_v34 = vsel %vm6854_vm2, %v1308_v24, %v1312_v4  ;;  %v1336_v36 = vrot.slane %v1334_v26, 5  ;;  %v5395_v38 = vld [vmem:[%s6822_s28 + $0x18] sm:$0xf] }
 0x100   : > { %v1323_v35 = vsel %vm6854_vm2, %v1318_v25, %v1322_v7  ;;  %1835 = vst [vmem:[#allocation2 + $0x230] sm:$0xf] %v1731_v29  ;;  %v1340_v37 = vrot.slane %v1338_v27, 4  ;;  %v5396_v40 = vld [vmem:[%s6822_s28 + $0x1c] sm:$0xf]  ;;  %v1331_v45 = vor.u32 %v1330_v31, %v1327_v30  ;;  %v5387_v50 = vrot.slane %v5355_v23, 9  ;;  %v5786_v54 = vpop.f32.mrf.mxu0  ;;  %v5857_v1 = vpop.f32.mrf.mxu1 }
 0x101   : > { %v6528_v43 = vld [vmem:[#allocation2 + $0x444] ss:$36 sps:$4 sm:$0xff]   ;;  %1562 = vst [vmem:[#allocation2 + $0x208] sm:$0xf] %v1313_v34  ;;  %1563 = vst [vmem:[#allocation2 + $0x22c] sm:$0xf] %v1323_v35  ;;  %v7452_v59 = vadd.f32 %v5786_v54, %v5785_v42 }
 0x102   : > { %v6532_v44 = vld [vmem:[#allocation2 + $0x440] ss:$36 sps:$4 sm:$0xff]   ;;  %v1346_v46 = vrot.slane %v1344_v32, 5  ;;  %1885 = vst [vmem:[#allocation2 + $0x18] sm:$0xf] %v5395_v38  ;;  %v1341_v49 = vor.u32 %v1340_v37, %v1336_v36  ;;  %v1734_v51 = vrot.slane %v5356_v28, 5  ;;  %4470 = vmatprep.mubr.bf16.mxu1 %v6528_v43  ;;  %v7458_v7 = vpop.f32.mrf.mxu0  ;;  %v5858_v15 = vpop.f32.mrf.mxu1 }
 0x103   : > { %1886 = vst [vmem:[#allocation2 + $0x3c] sm:$0xf] %v5396_v40  ;;  %v1737_v52 = vrot.slane %v5357_v33, 5  ;;  %v5427_v53 = vld [vmem:[%s6822_s28 + $0x18] sm:$0xf]  ;;  %v1332_v55 = vrot.slane %v1331_v45, 4  ;;  %4471 = vmatmul.mubr.bf16.gmra.mxu1 %v6532_v44  ;;  %v7467_v26 = vadd.f32 %v5858_v15, %v5857_v1 }
 0x104   : > { %v5428_v56 = vld [vmem:[%s6822_s28 + $0x1c] sm:$0xf]  ;;  %v5429_v57 = vld [vmem:[%s6822_s28 + $0x20] sm:$0x1]  ;;  %v1966_v58 = vshrl.u32 %v5427_v53, 16  ;;  %v1342_v61 = vrot.slane %v1341_v49, 4  ;;  %v1735_v62 = vsel %vm6997_vm5, %v5387_v50, %v1734_v51  ;;  %v7469_v32 = vpop.f32.mrf.mxu0 }
 0x105   : > { %v1736_v63 = vrot.slane %v1734_v51, 4  ;;  %v1969_v0 = vshll.u32 %v5427_v53, 16  ;;  %v1337_v2 = vsel %vm6854_vm2, %v1332_v55, %v1336_v36  ;;  %1836 = vst [vmem:[#allocation2 + $0x254] sm:$0xf] %v1735_v62  ;;  %v1975_v4 = vshll.u32 %v5428_v56, 16  ;;  %v7477_v51 = vpop.f32.mrf.mxu1 }
 0x106   : > { %v1968_v3 = vrot.slane %v1966_v58, 4  ;;  %v1979_v5 = vshrl.u32 %v5428_v56, 16  ;;  %v1347_v8 = vsel %vm6854_vm2, %v1342_v61, %v1346_v46  ;;  %1564 = vst [vmem:[#allocation2 + $0x250] sm:$0xf] %v1337_v2  ;;  %v1985_v11 = vshll.u32 %v5429_v57, 16 }
 0x107   : > { %v1738_v9 = vsel %vm6997_vm5, %v1736_v63, %v1737_v52  ;;  %v1971_v10 = vrot.slane %v1969_v0, 5  ;;  %v5310_v13 = vld [vmem:[%s6822_s28 + $0x78] sm:$0xf]  ;;  %v5311_v14 = vld [vmem:[%s6822_s28 + $0x7c] sm:$0xf]  ;;  %v1977_v16 = vrot.slane %v1975_v4, 5 }
 0x108   : > { %1565 = vst [vmem:[#allocation2 + $0x274] sm:$0xf] %v1347_v8  ;;  %1837 = vst [vmem:[#allocation2 + $0x278] sm:$0xf] %v1738_v9  ;;  %v1981_v6 = vrot.slane %v1979_v5, 4  ;;  %v1349_v20 = vshrl.u32 %v5310_v13, 16  ;;  %v5791_v57 = vpop.f32.mrf.mxu0 }
 0x109   : > { %v5312_v19 = vld [vmem:[%s6822_s28 + $0x80] sm:$0x1]  ;;  %v1352_v21 = vshll.u32 %v5310_v13, 16  ;;  %v6530_v22 = vld [vmem:[#allocation2 + $0x20c] ss:$36 sps:$4 sm:$0xff]   ;;  %v1972_v23 = vor.u32 %v1971_v10, %v1968_v3  ;;  %v1987_v24 = vrot.slane %v1985_v11, 5  ;;  %v7491_v13 = vpop.f32.mrf.mxu1 }
 0x10a   : > { %v1358_v25 = vshll.u32 %v5311_v14, 16  ;;  %v6533_v27 = vld [vmem:[#allocation2 + $0x208] ss:$36 sps:$4 sm:$0xff]   ;;  %v1982_v28 = vor.u32 %v1981_v6, %v1977_v16  ;;  %v1351_v29 = vrot.slane %v1349_v20, 4  ;;  %v1362_v31 = vshrl.u32 %v5311_v14, 16  ;;  %4567 = vmatprep.mubr.bf16.mxu0 %v6530_v22  ;;  %v5792_v4 = vpop.f32.mrf.mxu0 }
 0x10b   : > { %v1354_v30 = vrot.slane %v1352_v21, 5  ;;  %v1973_v33 = vrot.slane %v1972_v23, 4  ;;  %v1368_v35 = vshll.u32 %v5312_v19, 16  ;;  %v5358_v36 = vld [vmem:[%s6822_s28 + $0x78] sm:$0xe]  ;;  %4568 = vmatmul.mubr.bf16.gmra.mxu0 %v6533_v27  ;;  %v7497_v20 = vadd.f32 %v5792_v4, %v5791_v57 }
 0x10c   : > { %v1360_v34 = vrot.slane %v1358_v25, 5  ;;  %v1983_v37 = vrot.slane %v1982_v28, 4  ;;  %v1364_v40 = vrot.slane %v1362_v31, 4  ;;  %v5359_v42 = vld [vmem:[%s6822_s28 + $0x7c] sm:$0xf]  ;;  %v5388_v46 = vrot.slane %v5358_v36, 9  ;;  %v7500_v27 = vpop.f32.mrf.mxu0 }
 0x10d   : > { %v1355_v38 = vor.u32 %v1354_v30, %v1351_v29  ;;  %v5360_v43 = vld [vmem:[%s6822_s28 + $0x80] sm:$0x1]  ;;  %v1978_v44 = vsel %vm6854_vm2, %v1973_v33, %v1977_v16  ;;  %v1370_v45 = vrot.slane %v1368_v35, 5  ;;  %v1741_v49 = vrot.slane %v5359_v42, 5  ;;  %v5397_v50 = vld [vmem:[%s6822_s28 + $0x24] sm:$0xf] }
 0x10e   : > { %v1988_v52 = vsel %vm6854_vm2, %v1983_v37, %v1987_v24  ;;  %2381 = vst [vmem:[#allocation2 + $0x1c] sm:$0xf] %v1978_v44  ;;  %v1365_v54 = vor.u32 %v1364_v40, %v1360_v34  ;;  %v1744_v55 = vrot.slane %v5360_v43, 5  ;;  %v5398_v56 = vld [vmem:[%s6822_s28 + $0x28] sm:$0xf]  ;;  %v5863_v40 = vpop.f32.mrf.mxu1 }
 0x10f   : > { %v1356_v53 = vrot.slane %v1355_v38, 4  ;;  %1887 = vst [vmem:[#allocation2 + $0x60] sm:$0xf] %v5397_v50  ;;  %v6534_v58 = vld [vmem:[#allocation2 + $0x254] ss:$36 sps:$4 sm:$0xff]   ;;  %v1742_v62 = vsel %vm6997_vm5, %v5388_v46, %v1741_v49  ;;  %v1743_v63 = vrot.slane %v1741_v49, 4 }
 0x110   : > { %2382 = vst [vmem:[#allocation2 + $0x40] sm:$0xf] %v1988_v52  ;;  %v6539_v61 = vld [vmem:[#allocation2 + $0x250] ss:$36 sps:$4 sm:$0xff]   ;;  %1888 = vst [vmem:[#allocation2 + $0x84] sm:$0xf] %v5398_v56  ;;  %4575 = vmatprep.mubr.bf16.mxu0 %v6534_v58 }
 0x111   : > { %v1361_v0 = vsel %vm6854_vm2, %v1356_v53, %v1360_v34  ;;  %v1366_v1 = vrot.slane %v1365_v54, 4  ;;  %1838 = vst [vmem:[#allocation2 + $0x29c] sm:$0xf] %v1742_v62  ;;  %v5430_v2 = vld [vmem:[%s6822_s28 + $0x24] sm:$0xf]  ;;  %v1745_v5 = vsel %vm6997_vm5, %v1743_v63, %v1744_v55  ;;  %v5864_v54 = vpop.f32.mrf.mxu1  ;;  %v7505_v55 = vpop.f32.mrf.mxu0 }
 0x112   : > { %v5431_v3 = vld [vmem:[%s6822_s28 + $0x28] sm:$0xf]  ;;  %1566 = vst [vmem:[#allocation2 + $0x298] sm:$0xf] %v1361_v0  ;;  %v5432_v8 = vld [vmem:[%s6822_s28 + $0x2c] sm:$0x1]  ;;  %v7512_v4 = vadd.f32 %v5864_v54, %v5863_v40 }
 0x113   : > { %v1990_v9 = vshrl.u32 %v5430_v2, 16  ;;  %v1993_v10 = vshll.u32 %v5430_v2, 16  ;;  %v1999_v11 = vshll.u32 %v5431_v3, 16  ;;  %v1371_v14 = vsel %vm6854_vm2, %v1366_v1, %v1370_v45  ;;  %1839 = vst [vmem:[#allocation2 + $0x2c0] sm:$0xf] %v1745_v5  ;;  %4576 = vmatmul.mubr.bf16.gmra.mxu0 %v6539_v61  ;;  %v7514_v5 = vpop.f32.mrf.mxu1 }
 0x114   : > { %v2003_v15 = vshrl.u32 %v5431_v3, 16  ;;  %v2009_v16 = vshll.u32 %v5432_v8, 16  ;;  %v5313_v6 = vld [vmem:[%s6822_s28 + $0x84] sm:$0xf]  ;;  %v5314_v19 = vld [vmem:[%s6822_s28 + $0x88] sm:$0xf] }
 0x115   : > { %1567 = vst [vmem:[#allocation2 + $0x2bc] sm:$0xf] %v1371_v14  ;;  %v1992_v21 = vrot.slane %v1990_v9, 4  ;;  %v1995_v22 = vrot.slane %v1993_v10, 5  ;;  %v2001_v23 = vrot.slane %v1999_v11, 5  ;;  %v1373_v25 = vshrl.u32 %v5313_v6, 16 }
 0x116   : > { %v5315_v24 = vld [vmem:[%s6822_s28 + $0x8c] sm:$0x1]  ;;  %v2005_v28 = vrot.slane %v2003_v15, 4  ;;  %v2011_v29 = vrot.slane %v2009_v16, 5  ;;  %v1376_v30 = vshll.u32 %v5313_v6, 16  ;;  %v1382_v31 = vshll.u32 %v5314_v19, 16 }
 0x117   : > { %v5361_v33 = vld [vmem:[%s6822_s28 + $0x84] sm:$0xe]  ;;  %v1996_v34 = vor.u32 %v1995_v22, %v1992_v21  ;;  %v1375_v35 = vrot.slane %v1373_v25, 4  ;;  %v1386_v36 = vshrl.u32 %v5314_v19, 16  ;;  %v1392_v37 = vshll.u32 %v5315_v24, 16  ;;  %v5797_v21 = vpop.f32.mrf.mxu0 }
 0x118   : > { %v5362_v38 = vld [vmem:[%s6822_s28 + $0x88] sm:$0xf]  ;;  %v6536_v42 = vld [vmem:[#allocation2 + $0x18] ss:$36 sps:$4 sm:$0xff]   ;;  %v2006_v44 = vor.u32 %v2005_v28, %v2001_v23  ;;  %v1378_v45 = vrot.slane %v1376_v30, 5  ;;  %v1384_v49 = vrot.slane %v1382_v31, 5  ;;  %v7524_v28 = vpop.f32.mrf.mxu1 }
 0x119   : > { %v6538_v43 = vld [vmem:[#allocation2 + $0x1c] ss:$36 sps:$4 sm:$0xff]   ;;  %v1997_v46 = vrot.slane %v1996_v34, 4  ;;  %v1388_v50 = vrot.slane %v1386_v36, 4  ;;  %v1394_v52 = vrot.slane %v1392_v37, 5  ;;  %v5389_v58 = vrot.slane %v5361_v33, 9 }
 0x11a   : > { %v5363_v53 = vld [vmem:[%s6822_s28 + $0x8c] sm:$0x1]  ;;  %4672 = vmatprep.mubr.bf16.mxu1 %v6538_v43  ;;  %v2007_v56 = vrot.slane %v2006_v44, 4  ;;  %v1379_v57 = vor.u32 %v1378_v45, %v1375_v35  ;;  %v1748_v61 = vrot.slane %v5362_v38, 5  ;;  %v5399_v62 = vld [vmem:[%s6822_s28 + $0x30] sm:$0xf] }
 0x11b   : > { %4673 = vmatmul.mubr.bf16.vlgmr.msra.gmra.mxu1 %v6536_v42  ;;  %v2002_v63 = vsel %vm6854_vm2, %v1997_v46, %v2001_v23  ;;  %v1389_v0 = vor.u32 %v1388_v50, %v1384_v49  ;;  %v1751_v1 = vrot.slane %v5363_v53, 5  ;;  %v5400_v2 = vld [vmem:[%s6822_s28 + $0x34] sm:$0xf]  ;;  %1889 = vst [vmem:[#allocation2 + $0xa8] sm:$0xf] %v5399_v62 }
 0x11c   : > { %v5433_v3 = vld [vmem:[%s6822_s28 + $0x30] sm:$0xf]  ;;  %v6541_v8 = vld [vmem:[#allocation2 + $0x29c] ss:$36 sps:$4 sm:$0xff]   ;;  %v2012_v9 = vsel %vm6854_vm2, %v2007_v56, %v2011_v29  ;;  %2383 = vst [vmem:[#allocation2 + $0x64] sm:$0xf] %v2002_v63  ;;  %v1749_v14 = vsel %vm6997_vm5, %v5389_v58, %v1748_v61 }
 0x11d   : > { %v6545_v10 = vld [vmem:[#allocation2 + $0x298] ss:$36 sps:$4 sm:$0xff]   ;;  %v1380_v11 = vrot.slane %v1379_v57, 4  ;;  %1890 = vst [vmem:[#allocation2 + $0xcc] sm:$0xf] %v5400_v2  ;;  %v1390_v15 = vrot.slane %v1389_v0, 4  ;;  %4583 = vmatprep.mubr.bf16.mxu0 %v6541_v8  ;;  %v5869_v57 = vpop.f32.mrf.mxu1 }
 0x11e   : > { %2384 = vst [vmem:[#allocation2 + $0x88] sm:$0xf] %v2012_v9  ;;  %v1750_v16 = vrot.slane %v1748_v61, 4  ;;  %1840 = vst [vmem:[#allocation2 + $0x2e4] sm:$0xf] %v1749_v14  ;;  %v2014_v23 = vshrl.u32 %v5433_v3, 16  ;;  %4584 = vmatmul.mubr.bf16.gmra.mxu0 %v6545_v10 }
 0x11f   : > { %v5434_v6 = vld [vmem:[%s6822_s28 + $0x34] sm:$0xf]  ;;  %v5435_v19 = vld [vmem:[%s6822_s28 + $0x38] sm:$0x1]  ;;  %v1385_v22 = vsel %vm6854_vm2, %v1380_v11, %v1384_v49  ;;  %v2017_v24 = vshll.u32 %v5433_v3, 16  ;;  %v1395_v29 = vsel %vm6854_vm2, %v1390_v15, %v1394_v52  ;;  %v5798_v49 = vpop.f32.mrf.mxu0  ;;  %v5870_v9 = vpop.f32.mrf.mxu1 }
 0x120   : > { %v2023_v25 = vshll.u32 %v5434_v6, 16  ;;  %1568 = vst [vmem:[#allocation2 + $0x2e0] sm:$0xf] %v1385_v22  ;;  %v1752_v30 = vsel %vm6997_vm5, %v1750_v16, %v1751_v1  ;;  %v2027_v31 = vshrl.u32 %v5434_v6, 16  ;;  %v2033_v33 = vshll.u32 %v5435_v19, 16 }
 0x121   : > { %v5316_v34 = vld [vmem:[%s6822_s28 + $0x90] sm:$0xf]  ;;  %1569 = vst [vmem:[#allocation2 + $0x304] sm:$0xf] %v1395_v29  ;;  %1841 = vst [vmem:[#allocation2 + $0x308] sm:$0xf] %v1752_v30  ;;  %v7535_v8 = vadd.f32 %v5798_v49, %v5797_v21  ;;  %v7538_v6 = vpop.f32.mrf.mxu0  ;;  %v7545_v21 = vpop.f32.mrf.mxu1 }
 0x122   : > { %v2016_v35 = vrot.slane %v2014_v23, 4  ;;  %v2019_v36 = vrot.slane %v2017_v24, 5  ;;  %v2025_v37 = vrot.slane %v2023_v25, 5  ;;  %v5317_v38 = vld [vmem:[%s6822_s28 + $0x94] sm:$0xf]  ;;  %v1397_v40 = vshrl.u32 %v5316_v34, 16 }
 0x123   : > { %v2029_v42 = vrot.slane %v2027_v31, 4  ;;  %v2035_v43 = vrot.slane %v2033_v33, 5  ;;  %v5318_v44 = vld [vmem:[%s6822_s28 + $0x98] sm:$0x1]  ;;  %v1400_v45 = vshll.u32 %v5316_v34, 16  ;;  %v1406_v46 = vshll.u32 %v5317_v38, 16 }
 0x124   : > { %v2020_v50 = vor.u32 %v2019_v36, %v2016_v35  ;;  %v1399_v52 = vrot.slane %v1397_v40, 4  ;;  %v1410_v53 = vshrl.u32 %v5317_v38, 16  ;;  %v1416_v54 = vshll.u32 %v5318_v44, 16  ;;  %v5364_v56 = vld [vmem:[%s6822_s28 + $0x90] sm:$0xe]  ;;  %8399 = vst [vmem:[#allocation10_spill] sm:$0xff] %v7545_v21 }
 0x125   : > { %v2030_v58 = vor.u32 %v2029_v42, %v2025_v37  ;;  %v1402_v61 = vrot.slane %v1400_v45, 5  ;;  %v1408_v62 = vrot.slane %v1406_v46, 5  ;;  %v5365_v63 = vld [vmem:[%s6822_s28 + $0x94] sm:$0xf]  ;;  %v5390_v0 = vrot.slane %v5364_v56, 9  ;;  %v7557_v46 = vpop.f32.mrf.mxu0  ;;  %v7562_v56 = vpop.f32.mrf.mxu1 }
 0x126   : > { %v6543_v1 = vld [vmem:[#allocation2 + $0x64] ss:$36 sps:$4 sm:$0xff]   ;;  %v2021_v3 = vrot.slane %v2020_v50, 4  ;;  %v1412_v14 = vrot.slane %v1410_v53, 4  ;;  %v1418_v15 = vrot.slane %v1416_v54, 5  ;;  %v1755_v22 = vrot.slane %v5365_v63, 5 }
 0x127   : > { %v6546_v2 = vld [vmem:[#allocation2 + $0x60] ss:$36 sps:$4 sm:$0xff]   ;;  %v2031_v10 = vrot.slane %v2030_v58, 4  ;;  %v1403_v11 = vor.u32 %v1402_v61, %v1399_v52  ;;  %v5366_v16 = vld [vmem:[%s6822_s28 + $0x98] sm:$0x1]  ;;  %4680 = vmatprep.mubr.bf16.mxu1 %v6543_v1  ;;  %v7543_v25 = vadd.f32 %v5870_v9, %v5869_v57  ;;  %8400 = vst [vmem:[#allocation11_spill] sm:$0xff] %v7562_v56 }
 0x128   : > { %v2026_v19 = vsel %vm6854_vm2, %v2021_v3, %v2025_v37  ;;  %v1758_v23 = vrot.slane %v5366_v16, 5  ;;  %v5401_v24 = vld [vmem:[%s6822_s28 + $0x3c] sm:$0xf]  ;;  %4681 = vmatmul.mubr.bf16.gmra.mxu1 %v6546_v2  ;;  %v6547_v29 = vld [vmem:[#allocation2 + $0x2e4] ss:$36 sps:$4 sm:$0xff]   ;;  %v1413_v34 = vor.u32 %v1412_v14, %v1408_v62  ;;  %v1756_v35 = vsel %vm6997_vm5, %v5390_v0, %v1755_v22 }
 0x129   : > { %8398 = vst [vmem:[#allocation9_spill] sm:$0xff] %v7543_v25  ;;  %v2036_v30 = vsel %vm6854_vm2, %v2031_v10, %v2035_v43  ;;  %2385 = vst [vmem:[#allocation2 + $0xac] sm:$0xf] %v2026_v19  ;;  %v6551_v31 = vld [vmem:[#allocation2 + $0x2e0] ss:$36 sps:$4 sm:$0xff]   ;;  %v1404_v33 = vrot.slane %v1403_v11, 4  ;;  %4591 = vmatprep.mubr.bf16.mxu0 %v6547_v29 }
 0x12a   : > { %1891 = vst [vmem:[#allocation2 + $0xf0] sm:$0xf] %v5401_v24  ;;  %2386 = vst [vmem:[#allocation2 + $0xd0] sm:$0xf] %v2036_v30  ;;  %v1757_v36 = vrot.slane %v1755_v22, 4  ;;  %v1414_v42 = vrot.slane %v1413_v34, 4  ;;  %4592 = vmatmul.mubr.bf16.gmra.mxu0 %v6551_v31  ;;  %v5891_v31 = vpop.f32.mrf.mxu1 }
 0x12b   : > { %v5402_v37 = vld [vmem:[%s6822_s28 + $0x40] sm:$0xf]  ;;  %v5436_v38 = vld [vmem:[%s6822_s28 + $0x3c] sm:$0xf]  ;;  %v1409_v40 = vsel %vm6854_vm2, %v1404_v33, %v1408_v62  ;;  %1842 = vst [vmem:[#allocation2 + $0x32c] sm:$0xf] %v1756_v35 }
 0x12c   : > { %1892 = vst [vmem:[#allocation2 + $0x114] sm:$0xf] %v5402_v37  ;;  %v5437_v43 = vld [vmem:[%s6822_s28 + $0x40] sm:$0xf]  ;;  %v5438_v44 = vld [vmem:[%s6822_s28 + $0x44] sm:$0x1]  ;;  %v1759_v49 = vsel %vm6997_vm5, %v1757_v36, %v1758_v23  ;;  %v1419_v57 = vsel %vm6854_vm2, %v1414_v42, %v1418_v15  ;;  %v5803_v15 = vpop.f32.mrf.mxu0 }
 0x12d   : > { %v2038_v45 = vshrl.u32 %v5436_v38, 16  ;;  %1570 = vst [vmem:[#allocation2 + $0x328] sm:$0xf] %v1409_v40  ;;  %v2041_v50 = vshll.u32 %v5436_v38, 16  ;;  %v2047_v52 = vshll.u32 %v5437_v43, 16  ;;  %v2051_v53 = vshrl.u32 %v5437_v43, 16 }
 0x12e   : > { %v5319_v54 = vld [vmem:[%s6822_s28 + $0x9c] sm:$0xf]  ;;  %1843 = vst [vmem:[#allocation2 + $0x350] sm:$0xf] %v1759_v49  ;;  %v2057_v61 = vshll.u32 %v5438_v44, 16  ;;  %v5804_v36 = vpop.f32.mrf.mxu0  ;;  %v5892_v44 = vpop.f32.mrf.mxu1 }
 0x12f   : > { %v2040_v58 = vrot.slane %v2038_v45, 4  ;;  %v5320_v62 = vld [vmem:[%s6822_s28 + $0xa0] sm:$0xf]  ;;  %v5321_v63 = vld [vmem:[%s6822_s28 + $0xa4] sm:$0x1]  ;;  %v2043_v0 = vrot.slane %v2041_v50, 5 }
 0x130   : > { %1571 = vst [vmem:[#allocation2 + $0x34c] sm:$0xf] %v1419_v57  ;;  %v2049_v1 = vrot.slane %v2047_v52, 5  ;;  %v2053_v2 = vrot.slane %v2051_v53, 4  ;;  %v1421_v3 = vshrl.u32 %v5319_v54, 16  ;;  %v2059_v10 = vrot.slane %v2057_v61, 5 }
 0x131   : > { %v5367_v9 = vld [vmem:[%s6822_s28 + $0x9c] sm:$0xe]  ;;  %v1424_v11 = vshll.u32 %v5319_v54, 16  ;;  %v1430_v14 = vshll.u32 %v5320_v62, 16  ;;  %v1434_v16 = vshrl.u32 %v5320_v62, 16  ;;  %v2044_v22 = vor.u32 %v2043_v0, %v2040_v58  ;;  %v7573_v54 = vpop.f32.mrf.mxu0 }
 0x132   : > { %v5368_v19 = vld [vmem:[%s6822_s28 + $0xa0] sm:$0xf]  ;;  %v2054_v23 = vor.u32 %v2053_v2, %v2049_v1  ;;  %v1423_v24 = vrot.slane %v1421_v3, 4  ;;  %v1440_v29 = vshll.u32 %v5321_v63, 16  ;;  %v5369_v30 = vld [vmem:[%s6822_s28 + $0xa4] sm:$0x1]  ;;  %v5894_v2 = vpop.f32.mrf.mxu1 }
 0x133   : > { %v6549_v33 = vld [vmem:[#allocation2 + $0xac] ss:$36 sps:$4 sm:$0xff]   ;;  %v1426_v35 = vrot.slane %v1424_v11, 5  ;;  %v2045_v37 = vrot.slane %v2044_v22, 4  ;;  %v1432_v40 = vrot.slane %v1430_v14, 5  ;;  %v1436_v42 = vrot.slane %v1434_v16, 4 }
 0x134   : > { %v6552_v34 = vld [vmem:[#allocation2 + $0xa8] ss:$36 sps:$4 sm:$0xff]   ;;  %v2055_v38 = vrot.slane %v2054_v23, 4  ;;  %4688 = vmatprep.mubr.bf16.mxu1 %v6549_v33  ;;  %v1442_v49 = vrot.slane %v1440_v29, 5  ;;  %v5391_v50 = vrot.slane %v5367_v9, 9  ;;  %v1762_v52 = vrot.slane %v5368_v19, 5  ;;  %v5895_v29 = vpop.f32.mrf.mxu1 }
 0x135   : > { %v5403_v43 = vld [vmem:[%s6822_s28 + $0x48] sm:$0xf]  ;;  %v1427_v45 = vor.u32 %v1426_v35, %v1423_v24  ;;  %v5404_v53 = vld [vmem:[%s6822_s28 + $0x4c] sm:$0xf]  ;;  %4689 = vmatmul.mubr.bf16.gmra.mxu1 %v6552_v34  ;;  %v2050_v57 = vsel %vm6854_vm2, %v2045_v37, %v2049_v1  ;;  %v1437_v61 = vor.u32 %v1436_v42, %v1432_v40  ;;  %v1765_v62 = vrot.slane %v5369_v30, 5  ;;  %v7588_v37 = vpop.f32.mrf.mxu0 }
 0x136   : > { %1893 = vst [vmem:[#allocation2 + $0x138] sm:$0xf] %v5403_v43  ;;  %v2060_v58 = vsel %vm6854_vm2, %v2055_v38, %v2059_v10  ;;  %1894 = vst [vmem:[#allocation2 + $0x15c] sm:$0xf] %v5404_v53  ;;  %v5439_v63 = vld [vmem:[%s6822_s28 + $0x48] sm:$0xf]  ;;  %v1763_v14 = vsel %vm6997_vm5, %v5391_v50, %v1762_v52  ;;  %v7583_v16 = vadd.f32 %v5804_v36, %v5803_v15 }
 0x137   : > { %v5440_v0 = vld [vmem:[%s6822_s28 + $0x4c] sm:$0xf]  ;;  %2387 = vst [vmem:[#allocation2 + $0xf4] sm:$0xf] %v2050_v57  ;;  %2388 = vst [vmem:[#allocation2 + $0x118] sm:$0xf] %v2060_v58  ;;  %v5893_v1 = vadd.f32 %v5892_v44, %v5891_v31 }
 0x138   : > { %v6554_v3 = vld [vmem:[#allocation2 + $0x32c] ss:$36 sps:$4 sm:$0xff]   ;;  %v1428_v11 = vrot.slane %v1427_v45, 4  ;;  %v1438_v19 = vrot.slane %v1437_v61, 4  ;;  %v1764_v10 = vrot.slane %v1762_v52, 4  ;;  %v2062_v23 = vshrl.u32 %v5439_v63, 16  ;;  %v5897_v52 = vpop.f32.mrf.mxu1 }
 0x139   : > { %v6558_v9 = vld [vmem:[#allocation2 + $0x328] ss:$36 sps:$4 sm:$0xff]   ;;  %1844 = vst [vmem:[#allocation2 + $0x374] sm:$0xf] %v1763_v14  ;;  %v5441_v22 = vld [vmem:[%s6822_s28 + $0x50] sm:$0x1]  ;;  %4599 = vmatprep.mubr.bf16.mxu0 %v6554_v3  ;;  %v5809_v14 = vpop.f32.mrf.mxu0 }
 0x13a   : > { %v2065_v24 = vshll.u32 %v5439_v63, 16  ;;  %v1433_v30 = vsel %vm6854_vm2, %v1428_v11, %v1432_v40  ;;  %v2071_v33 = vshll.u32 %v5440_v0, 16  ;;  %v2075_v34 = vshrl.u32 %v5440_v0, 16  ;;  %4600 = vmatmul.mubr.bf16.gmra.mxu0 %v6558_v9  ;;  %v5322_v42 = vld [vmem:[%s6822_s28 + $0xa8] sm:$0xf] }
 0x13b   : > { %v2081_v35 = vshll.u32 %v5441_v22, 16  ;;  %v1443_v15 = vsel %vm6854_vm2, %v1438_v19, %v1442_v49  ;;  %1572 = vst [vmem:[#allocation2 + $0x370] sm:$0xf] %v1433_v30  ;;  %v1766_v31 = vsel %vm6997_vm5, %v1764_v10, %v1765_v62  ;;  %v2064_v36 = vrot.slane %v2062_v23, 4  ;;  %v5323_v45 = vld [vmem:[%s6822_s28 + $0xac] sm:$0xf]  ;;  %v5898_v19 = vpop.f32.mrf.mxu1 }
 0x13c   : > { %v2067_v38 = vrot.slane %v2065_v24, 5  ;;  %1573 = vst [vmem:[#allocation2 + $0x394] sm:$0xf] %v1443_v15  ;;  %1845 = vst [vmem:[#allocation2 + $0x398] sm:$0xf] %v1766_v31  ;;  %v2073_v40 = vrot.slane %v2071_v33, 5  ;;  %v7600_v11 = vadd.f32 %v5893_v1, %v7412_v47  ;;  %v5784_v23 = vadd.f32 %v7432_v18, %v7419_v60 }
 0x13d   : > { %v2077_v43 = vrot.slane %v2075_v34, 4  ;;  %v2083_v44 = vrot.slane %v2081_v35, 5  ;;  %v1445_v50 = vshrl.u32 %v5322_v42, 16  ;;  %v5324_v57 = vld [vmem:[%s6822_s28 + $0xb0] sm:$0x1]  ;;  %v1448_v49 = vshll.u32 %v5322_v42, 16  ;;  %v5900_v47 = vpop.f32.mrf.mxu1 }
 0x13e   : > { %v2068_v53 = vor.u32 %v2067_v38, %v2064_v36  ;;  %v1454_v58 = vshll.u32 %v5323_v45, 16  ;;  %v1458_v61 = vshrl.u32 %v5323_v45, 16  ;;  %v1464_v0 = vshll.u32 %v5324_v57, 16  ;;  %v5370_v3 = vld [vmem:[%s6822_s28 + $0xa8] sm:$0xe]  ;;  %v5810_v36 = vpop.f32.mrf.mxu0 }
 0x13f   : > { %v2078_v63 = vor.u32 %v2077_v43, %v2073_v40  ;;  %v1447_v62 = vrot.slane %v1445_v50, 4  ;;  %v5371_v9 = vld [vmem:[%s6822_s28 + $0xac] sm:$0xf]  ;;  %v6556_v10 = vld [vmem:[#allocation2 + $0xf4] ss:$36 sps:$4 sm:$0xff]   ;;  %v1450_v24 = vrot.slane %v1448_v49, 5  ;;  %v5896_v30 = vadd.f32 %v5895_v29, %v5894_v2  ;;  %v5901_v49 = vpop.f32.mrf.mxu1 }
 0x140   : > { %v2069_v22 = vrot.slane %v2068_v53, 4  ;;  %v6559_v33 = vld [vmem:[#allocation2 + $0xf0] ss:$36 sps:$4 sm:$0xff]   ;;  %v1456_v35 = vrot.slane %v1454_v58, 5  ;;  %v1460_v15 = vrot.slane %v1458_v61, 4  ;;  %v1466_v31 = vrot.slane %v1464_v0, 5  ;;  %4696 = vmatprep.mubr.bf16.mxu1 %v6556_v10 }
 0x141   : > { %v2079_v34 = vrot.slane %v2078_v63, 4  ;;  %v1451_v38 = vor.u32 %v1450_v24, %v1447_v62  ;;  %v5372_v42 = vld [vmem:[%s6822_s28 + $0xb0] sm:$0x1]  ;;  %v5392_v43 = vrot.slane %v5370_v3, 9  ;;  %v1769_v60 = vrot.slane %v5371_v9, 5  ;;  %4697 = vmatmul.mubr.bf16.gmra.mxu1 %v6559_v33  ;;  %v7630_v33 = vpop.f32.mrf.mxu1 }
 0x142   : > { %v2074_v1 = vsel %vm6854_vm2, %v2069_v22, %v2073_v40  ;;  %v5405_v18 = vld [vmem:[%s6822_s28 + $0x54] sm:$0xf]  ;;  %v1461_v29 = vor.u32 %v1460_v15, %v1456_v35  ;;  %v1772_v45 = vrot.slane %v5372_v42, 5  ;;  %v5406_v50 = vld [vmem:[%s6822_s28 + $0x58] sm:$0xf]  ;;  %v7612_v57 = vadd.f32 %v5896_v30, %v5784_v23  ;;  %v7614_v40 = vpop.f32.mrf.mxu0 }
 0x143   : > { %v2084_v2 = vsel %vm6854_vm2, %v2079_v34, %v2083_v44  ;;  %2389 = vst [vmem:[#allocation2 + $0x13c] sm:$0xf] %v2074_v1  ;;  %1895 = vst [vmem:[#allocation2 + $0x180] sm:$0xf] %v5405_v18  ;;  %v5442_v53 = vld [vmem:[%s6822_s28 + $0x54] sm:$0xf]  ;;  %v1770_v44 = vsel %vm6997_vm5, %v5392_v43, %v1769_v60  ;;  %v7618_v62 = vadd.f32 %v5810_v36, %v5809_v14 }
 0x144   : > { %v6560_v58 = vld [vmem:[#allocation2 + $0x374] ss:$36 sps:$4 sm:$0xff]   ;;  %2390 = vst [vmem:[#allocation2 + $0x160] sm:$0xf] %v2084_v2  ;;  %v1452_v63 = vrot.slane %v1451_v38, 4  ;;  %v5899_v0 = vadd.f32 %v5898_v19, %v5897_v52  ;;  %v1462_v3 = vrot.slane %v1461_v29, 4  ;;  %v7624_v23 = vadd.f32 %v7469_v32, %v7458_v7  ;;  %v7626_v24 = vpop.f32.mrf.mxu0 }
 0x145   : > { %v6564_v61 = vld [vmem:[#allocation2 + $0x370] ss:$36 sps:$4 sm:$0xff]   ;;  %1896 = vst [vmem:[#allocation2 + $0x1a4] sm:$0xf] %v5406_v50  ;;  %v1771_v9 = vrot.slane %v1769_v60, 4  ;;  %v7628_v30 = vadd.f32 %v5901_v49, %v5900_v47  ;;  %4607 = vmatprep.mubr.bf16.mxu0 %v6560_v58  ;;  %v2086_v14 = vshrl.u32 %v5442_v53, 16 }
 0x146   : > { %1846 = vst [vmem:[#allocation2 + $0x3bc] sm:$0xf] %v1770_v44  ;;  %v5443_v10 = vld [vmem:[%s6822_s28 + $0x58] sm:$0xf]  ;;  %v5444_v22 = vld [vmem:[%s6822_s28 + $0x5c] sm:$0x1]  ;;  %v1457_v52 = vsel %vm6854_vm2, %v1452_v63, %v1456_v35  ;;  %4608 = vmatmul.mubr.bf16.gmra.mxu0 %v6564_v61  ;;  %v1467_v7 = vsel %vm6854_vm2, %v1462_v3, %v1466_v31  ;;  %v5815_v42 = vpop.f32.mrf.mxu0  ;;  %v7641_v35 = vpop.f32.mrf.mxu1 }
 0x147   : > { %v2089_v19 = vshll.u32 %v5442_v53, 16  ;;  %v2095_v34 = vshll.u32 %v5443_v10, 16  ;;  %v5325_v15 = vld [vmem:[%s6822_s28 + $0xb4] sm:$0xf]  ;;  %1574 = vst [vmem:[#allocation2 + $0x3b8] sm:$0xf] %v1457_v52  ;;  %v1773_v32 = vsel %vm6997_vm5, %v1771_v9, %v1772_v45 }
 0x148   : > { %v2099_v36 = vshrl.u32 %v5443_v10, 16  ;;  %v2105_v47 = vshll.u32 %v5444_v22, 16  ;;  %v5326_v1 = vld [vmem:[%s6822_s28 + $0xb8] sm:$0xf]  ;;  %v5327_v38 = vld [vmem:[%s6822_s28 + $0xbc] sm:$0x1]  ;;  %v5816_v58 = vpop.f32.mrf.mxu0 }
 0x149   : > { %1575 = vst [vmem:[#allocation2 + $0x3dc] sm:$0xf] %v1467_v7  ;;  %1847 = vst [vmem:[#allocation2 + $0x3e0] sm:$0xf] %v1773_v32  ;;  %v2088_v43 = vrot.slane %v2086_v14, 4  ;;  %v2091_v60 = vrot.slane %v2089_v19, 5  ;;  %v7648_v19 = vadd.f32 %v7505_v55, %v7500_v27  ;;  %v7655_v7 = vpop.f32.mrf.mxu1 }
 0x14a   : > { %v2097_v18 = vrot.slane %v2095_v34, 5  ;;  %v1469_v2 = vshrl.u32 %v5325_v15, 16  ;;  %v5373_v31 = vld [vmem:[%s6822_s28 + $0xb4] sm:$0xe]  ;;  %v2101_v29 = vrot.slane %v2099_v36, 4  ;;  %v2107_v50 = vrot.slane %v2105_v47, 5 }
 0x14b   : > { %v1472_v53 = vshll.u32 %v5325_v15, 16  ;;  %v1478_v45 = vshll.u32 %v5326_v1, 16  ;;  %v5374_v49 = vld [vmem:[%s6822_s28 + $0xb8] sm:$0xf]  ;;  %v2092_v61 = vor.u32 %v2091_v60, %v2088_v43  ;;  %v1482_v44 = vshrl.u32 %v5326_v1, 16  ;;  %v7653_v15 = vpop.f32.mrf.mxu0 }
 0x14c   : > { %v1471_v63 = vrot.slane %v1469_v2, 4  ;;  %v1488_v3 = vshll.u32 %v5327_v38, 16  ;;  %v5375_v9 = vld [vmem:[%s6822_s28 + $0xbc] sm:$0x1]  ;;  %v2102_v52 = vor.u32 %v2101_v29, %v2097_v18  ;;  %v7651_v34 = vadd.f32 %v5899_v0, %v7452_v59  ;;  %v5407_v38 = vld [vmem:[%s6822_s28 + $0x60] sm:$0xf] }
 0x14d   : > { %v6562_v10 = vld [vmem:[#allocation2 + $0x13c] ss:$36 sps:$4 sm:$0xff]   ;;  %v1474_v14 = vrot.slane %v1472_v53, 5  ;;  %v2093_v32 = vrot.slane %v2092_v61, 4  ;;  %v1480_v36 = vrot.slane %v1478_v45, 5  ;;  %v1484_v47 = vrot.slane %v1482_v44, 4  ;;  %v7667_v44 = vpop.f32.mrf.mxu0 }
 0x14e   : > { %v6565_v22 = vld [vmem:[#allocation2 + $0x138] ss:$36 sps:$4 sm:$0xff]   ;;  %v1490_v1 = vrot.slane %v1488_v3, 5  ;;  %4704 = vmatprep.mubr.bf16.mxu1 %v6562_v10  ;;  %v2103_v43 = vrot.slane %v2102_v52, 4  ;;  %v5393_v2 = vrot.slane %v5373_v31, 9  ;;  %v1776_v27 = vrot.slane %v5374_v49, 5  ;;  %v5907_v10 = vpop.f32.mrf.mxu1 }
 0x14f   : > { %v1475_v60 = vor.u32 %v1474_v14, %v1471_v63  ;;  %v5408_v55 = vld [vmem:[%s6822_s28 + $0x64] sm:$0xf]  ;;  %1897 = vst [vmem:[#allocation2 + $0x1c8] sm:$0xf] %v5407_v38  ;;  %4705 = vmatmul.mubr.bf16.gmra.mxu1 %v6565_v22  ;;  %v2098_v59 = vsel %vm6854_vm2, %v2093_v32, %v2097_v18  ;;  %v1485_v0 = vor.u32 %v1484_v47, %v1480_v36  ;;  %v1779_v29 = vrot.slane %v5375_v9, 5 }
 0x150   : > { %1898 = vst [vmem:[#allocation2 + $0x1ec] sm:$0xf] %v5408_v55  ;;  %v5445_v53 = vld [vmem:[%s6822_s28 + $0x60] sm:$0xf]  ;;  %v5446_v45 = vld [vmem:[%s6822_s28 + $0x64] sm:$0xf]  ;;  %v7665_v61 = vadd.f32 %v7628_v30, %v7624_v23  ;;  %v2108_v49 = vsel %vm6854_vm2, %v2103_v43, %v2107_v50  ;;  %v1777_v18 = vsel %vm6997_vm5, %v5393_v2, %v1776_v27  ;;  %v7673_v9 = vadd.f32 %v5816_v58, %v5815_v42 }
 0x151   : > { %v6567_v31 = vld [vmem:[#allocation2 + $0x3bc] ss:$36 sps:$4 sm:$0xff]   ;;  %2391 = vst [vmem:[#allocation2 + $0x184] sm:$0xf] %v2098_v59  ;;  %v1476_v3 = vrot.slane %v1475_v60, 4  ;;  %v1486_v22 = vrot.slane %v1485_v0, 4 }
 0x152   : > { %v6571_v63 = vld [vmem:[#allocation2 + $0x3b8] ss:$36 sps:$4 sm:$0xff]   ;;  %2392 = vst [vmem:[#allocation2 + $0x1a8] sm:$0xf] %v2108_v49  ;;  %v1778_v52 = vrot.slane %v1776_v27, 4  ;;  %v2110_v30 = vshrl.u32 %v5445_v53, 16  ;;  %4615 = vmatprep.mubr.bf16.mxu0 %v6567_v31  ;;  %v5821_v27 = vpop.f32.mrf.mxu0 }
 0x153   : > { %1848 = vst [vmem:[#allocation2 + $0x404] sm:$0xf] %v1777_v18  ;;  %v5447_v23 = vld [vmem:[%s6822_s28 + $0x68] sm:$0x1]  ;;  %v2113_v14 = vshll.u32 %v5445_v53, 16  ;;  %v1481_v50 = vsel %vm6854_vm2, %v1476_v3, %v1480_v36  ;;  %v2119_v32 = vshll.u32 %v5446_v45, 16  ;;  %4616 = vmatmul.mubr.bf16.gmra.mxu0 %v6571_v63  ;;  %v1491_v42 = vsel %vm6854_vm2, %v1486_v22, %v1490_v1 }
 0x154   : > { %v2123_v47 = vshrl.u32 %v5446_v45, 16  ;;  %v2129_v38 = vshll.u32 %v5447_v23, 16  ;;  %1576 = vst [vmem:[#allocation2 + $0x400] sm:$0xf] %v1481_v50  ;;  %v1780_v58 = vsel %vm6997_vm5, %v1778_v52, %v1779_v29  ;;  %v2112_v43 = vrot.slane %v2110_v30, 4  ;;  %v5909_v45 = vpop.f32.mrf.mxu1  ;;  %v5822_v29 = vpop.f32.mrf.mxu0 }
 0x155   : > { %v2115_v60 = vrot.slane %v2113_v14, 5  ;;  %v5328_v2 = vld [vmem:[%s6822_s28 + $0xc0] sm:$0xf]  ;;  %1577 = vst [vmem:[#allocation2 + $0x424] sm:$0xf] %v1491_v42  ;;  %v2121_v36 = vrot.slane %v2119_v32, 5  ;;  %v5905_v14 = vadd.f32 %v7641_v35, %v7630_v33  ;;  %v5908_v33 = vadd.f32 %v5907_v10, %v7655_v7 }
 0x156   : > { %1849 = vst [vmem:[#allocation2 + $0x428] sm:$0xf] %v1780_v58  ;;  %v2125_v55 = vrot.slane %v2123_v47, 4  ;;  %v2131_v59 = vrot.slane %v2129_v38, 5  ;;  %v5329_v0 = vld [vmem:[%s6822_s28 + $0xc4] sm:$0xf]  ;;  %v5910_v50 = vpop.f32.mrf.mxu1  ;;  %v7689_v58 = vpop.f32.mrf.mxu0 }
 0x157   : > { %v1493_v53 = vshrl.u32 %v5328_v2, 16  ;;  %v2116_v1 = vor.u32 %v2115_v60, %v2112_v43  ;;  %v5330_v31 = vld [vmem:[%s6822_s28 + $0xc8] sm:$0x1]  ;;  %v1496_v49 = vshll.u32 %v5328_v2, 16  ;;  %v1502_v63 = vshll.u32 %v5329_v0, 16 }
 0x158   : > { %v1506_v3 = vshrl.u32 %v5329_v0, 16  ;;  %v2126_v18 = vor.u32 %v2125_v55, %v2121_v36  ;;  %v1512_v52 = vshll.u32 %v5330_v31, 16  ;;  %v5376_v23 = vld [vmem:[%s6822_s28 + $0xc0] sm:$0xe]  ;;  %v5377_v30 = vld [vmem:[%s6822_s28 + $0xc4] sm:$0xf]  ;;  %v7693_v55 = vadd.f32 %v7557_v46, %v7538_v6  ;;  %v7699_v35 = vpop.f32.mrf.mxu1 }
 0x159   : > { %v1495_v22 = vrot.slane %v1493_v53, 4  ;;  %v2117_v32 = vrot.slane %v2116_v1, 4  ;;  %v1498_v47 = vrot.slane %v1496_v49, 5  ;;  %v1504_v38 = vrot.slane %v1502_v63, 5  ;;  %v6569_v43 = vld [vmem:[#allocation2 + $0x184] ss:$36 sps:$4 sm:$0xff]  }
 0x15a   : > { %v1508_v42 = vrot.slane %v1506_v3, 4  ;;  %v6572_v60 = vld [vmem:[#allocation2 + $0x180] ss:$36 sps:$4 sm:$0xff]   ;;  %v2127_v2 = vrot.slane %v2126_v18, 4  ;;  %v7696_v0 = vadd.f32 %v5905_v14, %v7497_v20  ;;  %v1514_v49 = vrot.slane %v1512_v52, 5  ;;  %v7705_v18 = vpop.f32.mrf.mxu0  ;;  %4712 = vmatprep.mubr.bf16.mxu1 %v6569_v43 }
 0x15b   : > { %v2122_v53 = vsel %vm6854_vm2, %v2117_v32, %v2121_v36  ;;  %v1499_v1 = vor.u32 %v1498_v47, %v1495_v22  ;;  %v5378_v63 = vld [vmem:[%s6822_s28 + $0xc8] sm:$0x1]  ;;  %v5409_v3 = vld [vmem:[%s6822_s28 + $0x6c] sm:$0xf]  ;;  %v5394_v6 = vrot.slane %v5376_v23, 9  ;;  %v1783_v46 = vrot.slane %v5377_v30, 5  ;;  %v5913_v36 = vpop.f32.mrf.mxu1  ;;  %4713 = vmatmul.mubr.bf16.gmra.mxu1 %v6572_v60 }
 0x15c   : > { %v1509_v31 = vor.u32 %v1508_v42, %v1504_v38  ;;  %v2132_v20 = vsel %vm6854_vm2, %v2127_v2, %v2131_v59  ;;  %2393 = vst [vmem:[#allocation2 + $0x1cc] sm:$0xf] %v2122_v53  ;;  %v1786_v7 = vrot.slane %v5378_v63, 5  ;;  %v5410_v10 = vld [vmem:[%s6822_s28 + $0x70] sm:$0xf]  ;;  %v7711_v32 = vadd.f32 %v5908_v33, %v7648_v19  ;;  %v5827_v33 = vpop.f32.mrf.mxu0 }
 0x15d   : > { %1899 = vst [vmem:[#allocation2 + $0x210] sm:$0xf] %v5409_v3  ;;  %v6573_v22 = vld [vmem:[#allocation2 + $0x404] ss:$36 sps:$4 sm:$0xff]   ;;  %2394 = vst [vmem:[#allocation2 + $0x1f0] sm:$0xf] %v2132_v20  ;;  %v7713_v59 = vadd.f32 %v5822_v29, %v5821_v27  ;;  %v5911_v23 = vadd.f32 %v5910_v50, %v5909_v45  ;;  %v1784_v47 = vsel %vm6997_vm5, %v5394_v6, %v1783_v46  ;;  %v5915_v53 = vpop.f32.mrf.mxu1 }
 0x15e   : > { %v6577_v52 = vld [vmem:[#allocation2 + $0x400] ss:$36 sps:$4 sm:$0xff]   ;;  %v1500_v14 = vrot.slane %v1499_v1, 4  ;;  %1900 = vst [vmem:[#allocation2 + $0x234] sm:$0xf] %v5410_v10  ;;  %v1510_v30 = vrot.slane %v1509_v31, 4  ;;  %v7721_v60 = vadd.f32 %v7588_v37, %v7573_v54  ;;  %4623 = vmatprep.mubr.bf16.mxu0 %v6573_v22  ;;  %v5828_v10 = vpop.f32.mrf.mxu0 }
 0x15f   : > { %v1785_v42 = vrot.slane %v1783_v46, 4  ;;  %v5448_v43 = vld [vmem:[%s6822_s28 + $0x6c] sm:$0xf]  ;;  %v5449_v2 = vld [vmem:[%s6822_s28 + $0x70] sm:$0xf]  ;;  %4624 = vmatmul.mubr.bf16.gmra.mxu0 %v6577_v52 }
 0x160   : > { %v1505_v19 = vsel %vm6854_vm2, %v1500_v14, %v1504_v38  ;;  %1850 = vst [vmem:[#allocation2 + $0x44c] sm:$0xf] %v1784_v47  ;;  %v5450_v27 = vld [vmem:[%s6822_s28 + $0x74] sm:$0x1]  ;;  %v2134_v45 = vshrl.u32 %v5448_v43, 16  ;;  %v2137_v29 = vshll.u32 %v5448_v43, 16  ;;  %v1515_v1 = vsel %vm6854_vm2, %v1510_v30, %v1514_v49 }
 0x161   : > { %v2143_v50 = vshll.u32 %v5449_v2, 16  ;;  %1578 = vst [vmem:[#allocation2 + $0x448] sm:$0xf] %v1505_v19  ;;  %v1787_v54 = vsel %vm6997_vm5, %v1785_v42, %v1786_v7  ;;  %v2147_v37 = vshrl.u32 %v5449_v2, 16  ;;  %v2153_v31 = vshll.u32 %v5450_v27, 16  ;;  %v5916_v7 = vpop.f32.mrf.mxu1 }
 0x162   : > { %v5411_v38 = vld [vmem:[%s6822_s28 + $0x78] sm:$0xf]  ;;  %v5412_v63 = vld [vmem:[%s6822_s28 + $0x7c] sm:$0xf]  ;;  %1579 = vst [vmem:[#allocation2 + $0x46c] sm:$0xf] %v1515_v1  ;;  %v7734_v49 = vadd.f32 %v5911_v23, %v7535_v8  ;;  %v5914_v47 = vadd.f32 %v5913_v36, %v7699_v35  ;;  %v7739_v42 = vadd.f32 %v5828_v10, %v5827_v33 }
 0x163   : > { %1851 = vst [vmem:[#allocation2 + $0x470] sm:$0xf] %v1787_v54  ;;  %v2136_v3 = vrot.slane %v2134_v45, 4  ;;  %v2139_v20 = vrot.slane %v2137_v29, 5  ;;  %v2145_v6 = vrot.slane %v2143_v50, 5  ;;  %v2149_v22 = vrot.slane %v2147_v37, 4  ;;  %v5830_v29 = vpop.f32.mrf.mxu0  ;;  %v5918_v50 = vpop.f32.mrf.mxu1 }
 0x164   : > { %1901 = vst [vmem:[#allocation2 + $0x258] sm:$0xf] %v5411_v38  ;;  %1902 = vst [vmem:[#allocation2 + $0x27c] sm:$0xf] %v5412_v63  ;;  %v5451_v46 = vld [vmem:[%s6822_s28 + $0x78] sm:$0xf]  ;;  %v7743_v37 = vadd.f32 %v5914_v47, %v7693_v55 }
 0x165   : > { %v2155_v52 = vrot.slane %v2153_v31, 5  ;;  %v5452_v14 = vld [vmem:[%s6822_s28 + $0x7c] sm:$0xf]  ;;  %v5453_v30 = vld [vmem:[%s6822_s28 + $0x80] sm:$0x1]  ;;  %v2140_v43 = vor.u32 %v2139_v20, %v2136_v3  ;;  %v2158_v2 = vshrl.u32 %v5451_v46, 16  ;;  %v2150_v1 = vor.u32 %v2149_v22, %v2145_v6  ;;  %v5919_v3 = vpop.f32.mrf.mxu1  ;;  %v5831_v25 = vpop.f32.mrf.mxu0 }
 0x166   : > { %v2161_v19 = vshll.u32 %v5451_v46, 16  ;;  %v2167_v27 = vshll.u32 %v5452_v14, 16  ;;  %v5475_v45 = vld [vmem:[%s6822_s28 + $0x18] sm:$0xe]  ;;  %v6575_v8 = vld [vmem:[#allocation2 + $0x1cc] ss:$36 sps:$4 sm:$0xff]   ;;  %v5917_v31 = vadd.f32 %v5916_v7, %v5915_v53 }
 0x167   : > { %v6578_v23 = vld [vmem:[#allocation2 + $0x1c8] ss:$36 sps:$4 sm:$0xff]   ;;  %v2171_v54 = vshrl.u32 %v5452_v14, 16  ;;  %v2141_v35 = vrot.slane %v2140_v43, 4  ;;  %v2160_v36 = vrot.slane %v2158_v2, 4  ;;  %4720 = vmatprep.mubr.bf16.mxu1 %v6575_v8  ;;  %v2151_v20 = vrot.slane %v2150_v1, 4 }
 0x168   : > { %v2163_v33 = vrot.slane %v2161_v19, 5  ;;  %v2169_v38 = vrot.slane %v2167_v27, 5  ;;  %v5476_v63 = vld [vmem:[%s6822_s28 + $0x1c] sm:$0xf]  ;;  %v2177_v10 = vshll.u32 %v5453_v30, 16  ;;  %v5523_v21 = vrot.slane %v5475_v45, 9  ;;  %4721 = vmatmul.mubr.bf16.gmra.mxu1 %v6578_v23  ;;  %v5921_v45 = vpop.f32.mrf.mxu1 }
 0x169   : > { %v2173_v46 = vrot.slane %v2171_v54, 4  ;;  %v5477_v56 = vld [vmem:[%s6822_s28 + $0x20] sm:$0x1]  ;;  %v2146_v55 = vsel %vm6854_vm2, %v2141_v35, %v2145_v6  ;;  %v2511_v53 = vrot.slane %v5476_v63, 5  ;;  %v5478_v14 = vld [vmem:[%s6822_s28 + $0x24] sm:$0xe]  ;;  %v2156_v43 = vsel %vm6854_vm2, %v2151_v20, %v2155_v52 }
 0x16a   : > { %v2164_v22 = vor.u32 %v2163_v33, %v2160_v36  ;;  %v2514_v7 = vrot.slane %v5477_v56, 5  ;;  %v6580_v47 = vld [vmem:[#allocation2 + $0x44c] ss:$36 sps:$4 sm:$0xff]   ;;  %2395 = vst [vmem:[#allocation2 + $0x214] sm:$0xf] %v2146_v55  ;;  %v2179_v19 = vrot.slane %v2177_v10, 5  ;;  %v7753_v27 = vadd.f32 %v5917_v31, %v7583_v16  ;;  %v5833_v33 = vpop.f32.mrf.mxu0  ;;  %v5922_v63 = vpop.f32.mrf.mxu1 }
 0x16b   : > { %v6584_v2 = vld [vmem:[#allocation2 + $0x448] ss:$36 sps:$4 sm:$0xff]   ;;  %v2174_v30 = vor.u32 %v2173_v46, %v2169_v38  ;;  %2396 = vst [vmem:[#allocation2 + $0x238] sm:$0xf] %v2156_v43  ;;  %v2512_v8 = vsel %vm6997_vm5, %v5523_v21, %v2511_v53  ;;  %v2513_v56 = vrot.slane %v2511_v53, 4  ;;  %v7759_v52 = vadd.f32 %v5831_v25, %v5830_v29  ;;  %4631 = vmatprep.mubr.bf16.mxu0 %v6580_v47 }
 0x16c   : > { %v2165_v6 = vrot.slane %v2164_v22, 4  ;;  %v5479_v23 = vld [vmem:[%s6822_s28 + $0x28] sm:$0xf]  ;;  %v5480_v1 = vld [vmem:[%s6822_s28 + $0x2c] sm:$0x1]  ;;  %v5524_v35 = vrot.slane %v5478_v14, 9  ;;  %4632 = vmatmul.mubr.bf16.gmra.mxu0 %v6584_v2  ;;  %v5920_v10 = vadd.f32 %v5919_v3, %v5918_v50  ;;  %v5923_v55 = vadd.f32 %v5922_v63, %v5921_v45  ;;  %v5834_v43 = vpop.f32.mrf.mxu0  ;;  %v5924_v2 = vpop.f32.mrf.mxu1 }
 0x16d   : > { %v2175_v54 = vrot.slane %v2174_v30, 4  ;;  %2653 = vst [vmem:[#allocation2 + $0x20] sm:$0xf] %v2512_v8  ;;  %v2518_v16 = vrot.slane %v5479_v23, 5  ;;  %v2521_v31 = vrot.slane %v5480_v1, 5  ;;  %v2515_v25 = vsel %vm6997_vm5, %v2513_v56, %v2514_v7 }
 0x16e   : > { %v5413_v36 = vld [vmem:[%s6822_s28 + $0x84] sm:$0xf]  ;;  %v2170_v21 = vsel %vm6854_vm2, %v2165_v6, %v2169_v38  ;;  %v5414_v29 = vld [vmem:[%s6822_s28 + $0x88] sm:$0xf]  ;;  %2654 = vst [vmem:[#allocation2 + $0x44] sm:$0xf] %v2515_v25  ;;  %v5814_v63 = vadd.f32 %v7626_v24, %v7614_v40  ;;  %v7790_v24 = vadd.f32 %v5923_v55, %v7618_v62 }
 0x16f   : > { %1903 = vst [vmem:[#allocation2 + $0x2a0] sm:$0xf] %v5413_v36  ;;  %v5454_v20 = vld [vmem:[%s6822_s28 + $0x84] sm:$0xf]  ;;  %v5455_v46 = vld [vmem:[%s6822_s28 + $0x88] sm:$0xf]  ;;  %v2180_v22 = vsel %vm6854_vm2, %v2175_v54, %v2179_v19  ;;  %v2519_v53 = vsel %vm6997_vm5, %v5524_v35, %v2518_v16  ;;  %v5836_v54 = vpop.f32.mrf.mxu0 }
 0x170   : > { %2397 = vst [vmem:[#allocation2 + $0x25c] sm:$0xf] %v2170_v21  ;;  %v2520_v38 = vrot.slane %v2518_v16, 4  ;;  %1904 = vst [vmem:[#allocation2 + $0x2c4] sm:$0xf] %v5414_v29  ;;  %v2182_v7 = vshrl.u32 %v5454_v20, 16  ;;  %v5925_v21 = vpop.f32.mrf.mxu1 }
 0x171   : > { %v5456_v14 = vld [vmem:[%s6822_s28 + $0x8c] sm:$0x1]  ;;  %v5481_v47 = vld [vmem:[%s6822_s28 + $0x30] sm:$0xe]  ;;  %2398 = vst [vmem:[#allocation2 + $0x280] sm:$0xf] %v2180_v22  ;;  %v7786_v22 = vadd.f32 %v5834_v43, %v5833_v33 }
 0x172   : > { %2655 = vst [vmem:[#allocation2 + $0x68] sm:$0xf] %v2519_v53  ;;  %v2185_v50 = vshll.u32 %v5454_v20, 16  ;;  %v2191_v3 = vshll.u32 %v5455_v46, 16  ;;  %v2195_v30 = vshrl.u32 %v5455_v46, 16  ;;  %v2201_v19 = vshll.u32 %v5456_v14, 16  ;;  %v5837_v53 = vpop.f32.mrf.mxu0 }
 0x173   : > { %v5482_v45 = vld [vmem:[%s6822_s28 + $0x34] sm:$0xf]  ;;  %v2522_v6 = vsel %vm6997_vm5, %v2520_v38, %v2521_v31  ;;  %v2184_v8 = vrot.slane %v2182_v7, 4  ;;  %v5483_v56 = vld [vmem:[%s6822_s28 + $0x38] sm:$0x1]  ;;  %v5525_v23 = vrot.slane %v5481_v47, 9  ;;  %v7784_v46 = vadd.f32 %v5920_v10, %v7721_v60 }
 0x174   : > { %v2525_v1 = vrot.slane %v5482_v45, 5  ;;  %2656 = vst [vmem:[#allocation2 + $0x8c] sm:$0xf] %v2522_v6  ;;  %v2187_v35 = vrot.slane %v2185_v50, 5  ;;  %v2193_v16 = vrot.slane %v2191_v3, 5  ;;  %v2197_v36 = vrot.slane %v2195_v30, 4  ;;  %v5839_v6 = vpop.f32.mrf.mxu0 }
 0x175   : > { %v6582_v25 = vld [vmem:[#allocation2 + $0x214] ss:$36 sps:$4 sm:$0xff]   ;;  %v2528_v7 = vrot.slane %v5483_v56, 5  ;;  %v5484_v40 = vld [vmem:[%s6822_s28 + $0x3c] sm:$0xe]  ;;  %v2203_v47 = vrot.slane %v2201_v19, 5  ;;  %v7794_v45 = vadd.f32 %v5837_v53, %v5836_v54  ;;  %v5926_v60 = vadd.f32 %v5925_v21, %v5924_v2  ;;  %v5927_v19 = vpop.f32.mrf.mxu1 }
 0x176   : > { %v6585_v29 = vld [vmem:[#allocation2 + $0x210] ss:$36 sps:$4 sm:$0xff]   ;;  %v2526_v31 = vsel %vm6997_vm5, %v5525_v23, %v2525_v1  ;;  %v2527_v20 = vrot.slane %v2525_v1, 4  ;;  %v2188_v38 = vor.u32 %v2187_v35, %v2184_v8  ;;  %v2198_v14 = vor.u32 %v2197_v36, %v2193_v16  ;;  %4728 = vmatprep.mubr.bf16.mxu1 %v6582_v25  ;;  %v5485_v50 = vld [vmem:[%s6822_s28 + $0x40] sm:$0xf]  ;;  %v5840_v35 = vpop.f32.mrf.mxu0 }
 0x177   : > { %2657 = vst [vmem:[#allocation2 + $0xb0] sm:$0xf] %v2526_v31  ;;  %v5486_v3 = vld [vmem:[%s6822_s28 + $0x44] sm:$0x1]  ;;  %v5526_v30 = vrot.slane %v5484_v40, 9  ;;  %4729 = vmatmul.mubr.bf16.gmra.mxu1 %v6585_v29  ;;  %v7798_v55 = vadd.f32 %v5926_v60, %v5814_v63  ;;  %v2532_v23 = vrot.slane %v5485_v50, 5  ;;  %v7806_v25 = vadd.f32 %v5840_v35, %v5839_v6  ;;  %v5928_v29 = vpop.f32.mrf.mxu1 }
 0x178   : > { %v6589_v33 = vld [vmem:[#allocation2 + $0x20] ss:$36 sps:$4 sm:$0xff]   ;;  %v2189_v10 = vrot.slane %v2188_v38, 4  ;;  %v2529_v43 = vsel %vm6997_vm5, %v2527_v20, %v2528_v7  ;;  %v2199_v62 = vrot.slane %v2198_v14, 4  ;;  %v6586_v56 = vld [vmem:[#allocation2 + $0x258] ss:$36 sps:$4 sm:$0xff]   ;;  %v5929_v38 = vadd.f32 %v5928_v29, %v5927_v19  ;;  %v5842_v14 = vpop.f32.mrf.mxu0 }
 0x179   : > { %v6588_v8 = vld [vmem:[#allocation2 + $0x25c] ss:$36 sps:$4 sm:$0xff]   ;;  %2658 = vst [vmem:[#allocation2 + $0xd4] sm:$0xf] %v2529_v43  ;;  %6251 = vmatprep.mubr.bf16.mxu0 %v6589_v33  ;;  %v2535_v1 = vrot.slane %v5486_v3, 5  ;;  %v2534_v31 = vrot.slane %v2532_v23, 4  ;;  %v5930_v50 = vpop.f32.mrf.mxu1 }
 0x17a   : > { %v2194_v2 = vsel %vm6854_vm2, %v2189_v10, %v2193_v16  ;;  %v5415_v54 = vld [vmem:[%s6822_s28 + $0x90] sm:$0xf]  ;;  %4736 = vmatprep.mubr.bf16.mxu1 %v6588_v8  ;;  %v2204_v21 = vsel %vm6854_vm2, %v2199_v62, %v2203_v47  ;;  %v5416_v63 = vld [vmem:[%s6822_s28 + $0x94] sm:$0xf]  ;;  %v2533_v16 = vsel %vm6997_vm5, %v5526_v30, %v2532_v23  ;;  %v5459_v7 = vld [vmem:[%s6822_s28 + $0x98] sm:$0x1]  ;;  %v5843_v43 = vpop.f32.mrf.mxu0 }
 0x17b   : > { %v6590_v36 = vld [vmem:[#allocation2 + $0x68] ss:$36 sps:$4 sm:$0xff]   ;;  %2399 = vst [vmem:[#allocation2 + $0x2a4] sm:$0xf] %v2194_v2  ;;  %1905 = vst [vmem:[#allocation2 + $0x2e8] sm:$0xf] %v5415_v54  ;;  %v2536_v3 = vsel %vm6997_vm5, %v2534_v31, %v2535_v1  ;;  %v7819_v2 = vadd.f32 %v5929_v38, %v7673_v9  ;;  %v7821_v23 = vadd.f32 %v5843_v43, %v5842_v14  ;;  %v5931_v54 = vpop.f32.mrf.mxu1 }
 0x17c   : > { %2400 = vst [vmem:[#allocation2 + $0x2c8] sm:$0xf] %v2204_v21  ;;  %1906 = vst [vmem:[#allocation2 + $0x30c] sm:$0xf] %v5416_v63  ;;  %v5457_v20 = vld [vmem:[%s6822_s28 + $0x90] sm:$0xf]  ;;  %6252 = vmatmul.mubr.bf16.vlgmr.msra.gmra.mxu0 %v6590_v36  ;;  %v5820_v21 = vadd.f32 %v7667_v44, %v7653_v15  ;;  %v5932_v63 = vadd.f32 %v5931_v54, %v5930_v50 }
 0x17d   : > { %v5458_v53 = vld [vmem:[%s6822_s28 + $0x94] sm:$0xf]  ;;  %2659 = vst [vmem:[#allocation2 + $0xf8] sm:$0xf] %v2533_v16  ;;  %v2206_v40 = vshrl.u32 %v5457_v20, 16  ;;  %v2209_v47 = vshll.u32 %v5457_v20, 16 }
 0x17e   : > { %v2215_v60 = vshll.u32 %v5458_v53, 16  ;;  %v2219_v30 = vshrl.u32 %v5458_v53, 16  ;;  %v2225_v33 = vshll.u32 %v5459_v7, 16  ;;  %v5487_v10 = vld [vmem:[%s6822_s28 + $0x48] sm:$0xe] }
 0x17f   : > { %2660 = vst [vmem:[#allocation2 + $0x11c] sm:$0xf] %v2536_v3  ;;  %v2208_v6 = vrot.slane %v2206_v40, 4  ;;  %v2211_v8 = vrot.slane %v2209_v47, 5  ;;  %v5488_v62 = vld [vmem:[%s6822_s28 + $0x4c] sm:$0xf]  ;;  %4737 = vmatmul.mubr.bf16.gmra.mxu1 %v6586_v56  ;;  %v7828_v40 = vadd.f32 %v5932_v63, %v5820_v21  ;;  %v5933_v56 = vpop.f32.mrf.mxu1 }
 0x180   : > { %v5489_v19 = vld [vmem:[%s6822_s28 + $0x50] sm:$0x1]  ;;  %v2217_v35 = vrot.slane %v2215_v60, 5  ;;  %v2221_v36 = vrot.slane %v2219_v30, 4  ;;  %v2227_v16 = vrot.slane %v2225_v33, 5  ;;  %v5527_v31 = vrot.slane %v5487_v10, 9  ;;  %v5845_v10 = vpop.f32.mrf.mxu0 }
 0x181   : > { %v6594_v1 = vld [vmem:[#allocation2 + $0xb0] ss:$36 sps:$4 sm:$0xff]   ;;  %v2212_v29 = vor.u32 %v2211_v8, %v2208_v6  ;;  %v2539_v20 = vrot.slane %v5488_v62, 5  ;;  %v2542_v38 = vrot.slane %v5489_v19, 5  ;;  %v5491_v14 = vld [vmem:[%s6822_s28 + $0x58] sm:$0xf]  ;;  %v5934_v43 = vpop.f32.mrf.mxu1 }
 0x182   : > { %v5490_v53 = vld [vmem:[%s6822_s28 + $0x54] sm:$0xe]  ;;  %6255 = vmatprep.mubr.bf16.mxu0 %v6594_v1  ;;  %v2222_v9 = vor.u32 %v2221_v36, %v2217_v35  ;;  %v5492_v7 = vld [vmem:[%s6822_s28 + $0x5c] sm:$0x1]  ;;  %v6591_v47 = vld [vmem:[#allocation2 + $0x2a0] ss:$36 sps:$4 sm:$0xff]   ;;  %v5935_v54 = vadd.f32 %v5934_v43, %v5933_v56 }
 0x183   : > { %v6593_v3 = vld [vmem:[#allocation2 + $0x2a4] ss:$36 sps:$4 sm:$0xff]   ;;  %v2213_v60 = vrot.slane %v2212_v29, 4  ;;  %v2540_v15 = vsel %vm6997_vm5, %v5527_v31, %v2539_v20  ;;  %v2541_v50 = vrot.slane %v2539_v20, 4  ;;  %v5528_v30 = vrot.slane %v5490_v53, 9  ;;  %v5936_v31 = vpop.f32.mrf.mxu1 }
 0x184   : > { %v2223_v44 = vrot.slane %v2222_v9, 4  ;;  %2661 = vst [vmem:[#allocation2 + $0x140] sm:$0xf] %v2540_v15  ;;  %v2546_v33 = vrot.slane %v5491_v14, 5  ;;  %4744 = vmatprep.mubr.bf16.mxu1 %v6593_v3  ;;  %v2549_v8 = vrot.slane %v5492_v7, 5 }
 0x185   : > { %v2218_v6 = vsel %vm6854_vm2, %v2213_v60, %v2217_v35  ;;  %v5417_v62 = vld [vmem:[%s6822_s28 + $0x9c] sm:$0xf]  ;;  %v5418_v19 = vld [vmem:[%s6822_s28 + $0xa0] sm:$0xf]  ;;  %v2543_v21 = vsel %vm6997_vm5, %v2541_v50, %v2542_v38  ;;  %v5846_v35 = vpop.f32.mrf.mxu0  ;;  %v7848_v38 = vadd.f32 %v5935_v54, %v7713_v59  ;;  %v5826_v59 = vadd.f32 %v7705_v18, %v7689_v58 }
 0x186   : > { %v6595_v1 = vld [vmem:[#allocation2 + $0xf8] ss:$36 sps:$4 sm:$0xff]   ;;  %v2228_v36 = vsel %vm6854_vm2, %v2223_v44, %v2227_v16  ;;  %2401 = vst [vmem:[#allocation2 + $0x2ec] sm:$0xf] %v2218_v6  ;;  %v2547_v63 = vsel %vm6997_vm5, %v5528_v30, %v2546_v33  ;;  %v2548_v29 = vrot.slane %v2546_v33, 4  ;;  %v7845_v9 = vadd.f32 %v5846_v35, %v5845_v10  ;;  %v5937_v44 = vpop.f32.mrf.mxu1 }
 0x187   : > { %1907 = vst [vmem:[#allocation2 + $0x330] sm:$0xf] %v5417_v62  ;;  %1908 = vst [vmem:[#allocation2 + $0x354] sm:$0xf] %v5418_v19  ;;  %v5460_v20 = vld [vmem:[%s6822_s28 + $0x9c] sm:$0xf]  ;;  %4745 = vmatmul.mubr.bf16.gmra.mxu1 %v6591_v47  ;;  %6256 = vmatmul.mubr.bf16.gmra.mxu0 %v6595_v1  ;;  %v5848_v15 = vpop.f32.mrf.mxu0  ;;  %v5938_v47 = vadd.f32 %v5937_v44, %v5936_v31 }
 0x188   : > { %2402 = vst [vmem:[#allocation2 + $0x310] sm:$0xf] %v2228_v36  ;;  %2662 = vst [vmem:[#allocation2 + $0x164] sm:$0xf] %v2543_v21  ;;  %v5461_v53 = vld [vmem:[%s6822_s28 + $0xa0] sm:$0xf]  ;;  %v2550_v14 = vsel %vm6997_vm5, %v2548_v29, %v2549_v8  ;;  %v5939_v1 = vpop.f32.mrf.mxu1 }
 0x189   : > { %2663 = vst [vmem:[#allocation2 + $0x188] sm:$0xf] %v2547_v63  ;;  %v5462_v16 = vld [vmem:[%s6822_s28 + $0xa4] sm:$0x1]  ;;  %v2230_v7 = vshrl.u32 %v5460_v20, 16  ;;  %v2233_v56 = vshll.u32 %v5460_v20, 16  ;;  %v5849_v54 = vpop.f32.mrf.mxu0  ;;  %v7862_v58 = vadd.f32 %v5938_v47, %v5826_v59 }
 0x18a   : > { %v2239_v3 = vshll.u32 %v5461_v53, 16  ;;  %v5493_v60 = vld [vmem:[%s6822_s28 + $0x60] sm:$0xe]  ;;  %2664 = vst [vmem:[#allocation2 + $0x1ac] sm:$0xf] %v2550_v14  ;;  %v2243_v50 = vshrl.u32 %v5461_v53, 16  ;;  %v7860_v14 = vadd.f32 %v5849_v54, %v5848_v15  ;;  %v5940_v18 = vpop.f32.mrf.mxu1 }
 0x18b   : > { %v2249_v30 = vshll.u32 %v5462_v16, 16  ;;  %v5494_v33 = vld [vmem:[%s6822_s28 + $0x64] sm:$0xf]  ;;  %v5495_v10 = vld [vmem:[%s6822_s28 + $0x68] sm:$0x1]  ;;  %v2232_v43 = vrot.slane %v2230_v7, 4  ;;  %v6003_v47 = vpop.f32.mrf.mxu0 }
 0x18c   : > { %v2235_v6 = vrot.slane %v2233_v56, 5  ;;  %v2241_v8 = vrot.slane %v2239_v3, 5  ;;  %v5529_v62 = vrot.slane %v5493_v60, 9  ;;  %v5496_v19 = vld [vmem:[%s6822_s28 + $0x6c] sm:$0xe]  ;;  %v2245_v36 = vrot.slane %v2243_v50, 4 }
 0x18d   : > { %v2251_v21 = vrot.slane %v2249_v30, 5  ;;  %v2553_v63 = vrot.slane %v5494_v33, 5  ;;  %v2556_v29 = vrot.slane %v5495_v10, 5  ;;  %v5497_v20 = vld [vmem:[%s6822_s28 + $0x70] sm:$0xf]  ;;  %v5530_v16 = vrot.slane %v5496_v19, 9  ;;  %v5942_v10 = vpop.f32.mrf.mxu1 }
 0x18e   : > { %v2236_v35 = vor.u32 %v2235_v6, %v2232_v43  ;;  %v5498_v53 = vld [vmem:[%s6822_s28 + $0x74] sm:$0x1]  ;;  %v2246_v31 = vor.u32 %v2245_v36, %v2241_v8  ;;  %v2560_v3 = vrot.slane %v5497_v20, 5  ;;  %v5419_v60 = vld [vmem:[%s6822_s28 + $0xa8] sm:$0xf]  ;;  %v5941_v33 = vadd.f32 %v5940_v18, %v5939_v1  ;;  %v6004_v20 = vpop.f32.mrf.mxu0 }
 0x18f   : > { %v2554_v7 = vsel %vm6997_vm5, %v5529_v62, %v2553_v63  ;;  %v2555_v56 = vrot.slane %v2553_v63, 4  ;;  %v6596_v44 = vld [vmem:[#allocation2 + $0x2e8] ss:$36 sps:$4 sm:$0xff]   ;;  %1909 = vst [vmem:[#allocation2 + $0x378] sm:$0xf] %v5419_v60  ;;  %v5943_v36 = vpop.f32.mrf.mxu1  ;;  %v2563_v63 = vrot.slane %v5498_v53, 5 }
 0x190   : > { %v6598_v50 = vld [vmem:[#allocation2 + $0x2ec] ss:$36 sps:$4 sm:$0xff]   ;;  %v2237_v30 = vrot.slane %v2236_v35, 4  ;;  %2665 = vst [vmem:[#allocation2 + $0x1d0] sm:$0xf] %v2554_v7  ;;  %v2561_v59 = vsel %vm6997_vm5, %v5530_v16, %v2560_v3  ;;  %v2247_v19 = vrot.slane %v2246_v31, 4  ;;  %v7874_v1 = vadd.f32 %v5941_v33, %v7739_v42 }
 0x191   : > { %v6599_v43 = vld [vmem:[#allocation2 + $0x140] ss:$36 sps:$4 sm:$0xff]   ;;  %v2557_v15 = vsel %vm6997_vm5, %v2555_v56, %v2556_v29  ;;  %4752 = vmatprep.mubr.bf16.mxu1 %v6598_v50  ;;  %v6600_v6 = vld [vmem:[#allocation2 + $0x188] ss:$36 sps:$4 sm:$0xff]   ;;  %v2562_v54 = vrot.slane %v2560_v3, 4  ;;  %v5944_v16 = vadd.f32 %v5943_v36, %v5942_v10  ;;  %v6005_v56 = vadd.f32 %v6004_v20, %v6003_v47  ;;  %v5945_v47 = vpop.f32.mrf.mxu1 }
 0x192   : > { %v2242_v62 = vsel %vm6854_vm2, %v2237_v30, %v2241_v8  ;;  %2666 = vst [vmem:[#allocation2 + $0x1f4] sm:$0xf] %v2557_v15  ;;  %2667 = vst [vmem:[#allocation2 + $0x218] sm:$0xf] %v2561_v59  ;;  %6259 = vmatprep.mubr.bf16.mxu0 %v6599_v43  ;;  %4753 = vmatmul.mubr.bf16.gmra.mxu1 %v6596_v44  ;;  %v5420_v29 = vld [vmem:[%s6822_s28 + $0xac] sm:$0xf]  ;;  %v2252_v8 = vsel %vm6854_vm2, %v2247_v19, %v2251_v21  ;;  %v6006_v30 = vpop.f32.mrf.mxu0 }
 0x193   : > { %2403 = vst [vmem:[#allocation2 + $0x334] sm:$0xf] %v2242_v62  ;;  %v5463_v35 = vld [vmem:[%s6822_s28 + $0xa8] sm:$0xf]  ;;  %6260 = vmatmul.mubr.bf16.gmra.mxu0 %v6600_v6  ;;  %1910 = vst [vmem:[#allocation2 + $0x39c] sm:$0xf] %v5420_v29  ;;  %v2564_v53 = vsel %vm6997_vm5, %v2562_v54, %v2563_v63  ;;  %v7888_v15 = vadd.f32 %v6005_v56, %v7600_v11  ;;  %v7891_v59 = vadd.f32 %v5944_v16, %v7759_v52 }
 0x194   : > { %v5464_v18 = vld [vmem:[%s6822_s28 + $0xac] sm:$0xf]  ;;  %v5465_v42 = vld [vmem:[%s6822_s28 + $0xb0] sm:$0x1]  ;;  %v2254_v31 = vshrl.u32 %v5463_v35, 16  ;;  %v2257_v7 = vshll.u32 %v5463_v35, 16  ;;  %v6007_v36 = vpop.f32.mrf.mxu0 }
 0x195   : > { %2404 = vst [vmem:[#allocation2 + $0x358] sm:$0xf] %v2252_v8  ;;  %v2263_v3 = vshll.u32 %v5464_v18, 16  ;;  %v2267_v60 = vshrl.u32 %v5464_v18, 16  ;;  %v2273_v44 = vshll.u32 %v5465_v42, 16  ;;  %v6008_v18 = vadd.f32 %v6007_v36, %v6006_v30  ;;  %v5946_v42 = vpop.f32.mrf.mxu1 }
 0x196   : > { %v5499_v50 = vld [vmem:[%s6822_s28 + $0x78] sm:$0xe]  ;;  %2668 = vst [vmem:[#allocation2 + $0x23c] sm:$0xf] %v2564_v53  ;;  %v2256_v21 = vrot.slane %v2254_v31, 4  ;;  %v2259_v33 = vrot.slane %v2257_v7, 5  ;;  %v5947_v7 = vadd.f32 %v5946_v42, %v5945_v47 }
 0x197   : > { %v5500_v10 = vld [vmem:[%s6822_s28 + $0x7c] sm:$0xf]  ;;  %v5501_v43 = vld [vmem:[%s6822_s28 + $0x80] sm:$0x1]  ;;  %v2265_v6 = vrot.slane %v2263_v3, 5  ;;  %v2269_v62 = vrot.slane %v2267_v60, 4  ;;  %v5948_v60 = vpop.f32.mrf.mxu1  ;;  %v7900_v30 = vadd.f32 %v6008_v18, %v7612_v57 }
 0x198   : > { %v2275_v19 = vrot.slane %v2273_v44, 5  ;;  %v5531_v54 = vrot.slane %v5499_v50, 9  ;;  %v2260_v63 = vor.u32 %v2259_v33, %v2256_v21  ;;  %v2567_v29 = vrot.slane %v5500_v10, 5  ;;  %v5502_v20 = vld [vmem:[%s6822_s28 + $0x84] sm:$0xe] }
 0x199   : > { %v2570_v35 = vrot.slane %v5501_v43, 5  ;;  %v5503_v8 = vld [vmem:[%s6822_s28 + $0x88] sm:$0xf]  ;;  %v6604_v11 = vld [vmem:[#allocation2 + $0x1d0] ss:$36 sps:$4 sm:$0xff]   ;;  %v2270_v31 = vor.u32 %v2269_v62, %v2265_v6  ;;  %v5532_v3 = vrot.slane %v5502_v20, 9  ;;  %v5949_v36 = vpop.f32.mrf.mxu1  ;;  %v6009_v20 = vpop.f32.mrf.mxu0 }
 0x19a   : > { %v2261_v52 = vrot.slane %v2260_v63, 4  ;;  %v2568_v16 = vsel %vm6997_vm5, %v5531_v54, %v2567_v29  ;;  %v2569_v56 = vrot.slane %v2567_v29, 4  ;;  %v5504_v53 = vld [vmem:[%s6822_s28 + $0x8c] sm:$0x1]  ;;  %6263 = vmatprep.mubr.bf16.mxu0 %v6604_v11  ;;  %v2574_v50 = vrot.slane %v5503_v8, 5 }
 0x19b   : > { %v2271_v44 = vrot.slane %v2270_v31, 4  ;;  %2669 = vst [vmem:[#allocation2 + $0x260] sm:$0xf] %v2568_v16  ;;  %v2577_v21 = vrot.slane %v5504_v53, 5  ;;  %v5421_v33 = vld [vmem:[%s6822_s28 + $0xb4] sm:$0xf]  ;;  %v7907_v54 = vadd.f32 %v5947_v7, %v7786_v22  ;;  %v5951_v42 = vpop.f32.mrf.mxu1  ;;  %v6010_v16 = vpop.f32.mrf.mxu0 }
 0x19c   : > { %v6601_v10 = vld [vmem:[#allocation2 + $0x330] ss:$36 sps:$4 sm:$0xff]   ;;  %v2266_v47 = vsel %vm6854_vm2, %v2261_v52, %v2265_v6  ;;  %v2571_v62 = vsel %vm6997_vm5, %v2569_v56, %v2570_v35  ;;  %1911 = vst [vmem:[#allocation2 + $0x3c0] sm:$0xf] %v5421_v33  ;;  %v2575_v6 = vsel %vm6997_vm5, %v5532_v3, %v2574_v50  ;;  %v2576_v29 = vrot.slane %v2574_v50, 4 }
 0x19d   : > { %v6603_v43 = vld [vmem:[#allocation2 + $0x334] ss:$36 sps:$4 sm:$0xff]   ;;  %v2276_v57 = vsel %vm6854_vm2, %v2271_v44, %v2275_v19  ;;  %2405 = vst [vmem:[#allocation2 + $0x37c] sm:$0xf] %v2266_v47  ;;  %2670 = vst [vmem:[#allocation2 + $0x284] sm:$0xf] %v2571_v62  ;;  %v5950_v35 = vadd.f32 %v5949_v36, %v5948_v60  ;;  %v6011_v44 = vadd.f32 %v6010_v16, %v6009_v20  ;;  %v6012_v36 = vpop.f32.mrf.mxu0 }
 0x19e   : > { %v6605_v63 = vld [vmem:[#allocation2 + $0x218] ss:$36 sps:$4 sm:$0xff]   ;;  %4760 = vmatprep.mubr.bf16.mxu1 %v6603_v43  ;;  %2406 = vst [vmem:[#allocation2 + $0x3a0] sm:$0xf] %v2276_v57  ;;  %2671 = vst [vmem:[#allocation2 + $0x2a8] sm:$0xf] %v2575_v6  ;;  %v2578_v19 = vsel %vm6997_vm5, %v2576_v29, %v2577_v21  ;;  %v5952_v21 = vpop.f32.mrf.mxu1 }
 0x19f   : > { %v5422_v8 = vld [vmem:[%s6822_s28 + $0xb8] sm:$0xf]  ;;  %v5466_v22 = vld [vmem:[%s6822_s28 + $0xb4] sm:$0xf]  ;;  %4761 = vmatmul.mubr.bf16.gmra.mxu1 %v6601_v10  ;;  %6264 = vmatmul.mubr.bf16.gmra.mxu0 %v6605_v63  ;;  %v5468_v11 = vld [vmem:[%s6822_s28 + $0xbc] sm:$0x1]  ;;  %v7922_v50 = vadd.f32 %v5950_v35, %v7794_v45  ;;  %v7929_v45 = vadd.f32 %v6011_v44, %v7651_v34  ;;  %v6013_v35 = vpop.f32.mrf.mxu0 }
 0x1a0   : > { %v5467_v18 = vld [vmem:[%s6822_s28 + $0xb8] sm:$0xf]  ;;  %1912 = vst [vmem:[#allocation2 + $0x3e4] sm:$0xf] %v5422_v8  ;;  %v2278_v31 = vshrl.u32 %v5466_v22, 16  ;;  %v2281_v7 = vshll.u32 %v5466_v22, 16  ;;  %v5954_v8 = vpop.f32.mrf.mxu1 }
 0x1a1   : > { %v2287_v52 = vshll.u32 %v5467_v18, 16  ;;  %2672 = vst [vmem:[#allocation2 + $0x2cc] sm:$0xf] %v2578_v19  ;;  %v2291_v56 = vshrl.u32 %v5467_v18, 16  ;;  %v2297_v53 = vshll.u32 %v5468_v11, 16  ;;  %v5953_v11 = vadd.f32 %v5952_v21, %v5951_v42 }
 0x1a2   : > { %v5505_v3 = vld [vmem:[%s6822_s28 + $0x90] sm:$0xe]  ;;  %v5506_v60 = vld [vmem:[%s6822_s28 + $0x94] sm:$0xf]  ;;  %v2280_v33 = vrot.slane %v2278_v31, 4  ;;  %v2283_v10 = vrot.slane %v2281_v7, 5 }
 0x1a3   : > { %v2289_v43 = vrot.slane %v2287_v52, 5  ;;  %v5507_v47 = vld [vmem:[%s6822_s28 + $0x98] sm:$0x1]  ;;  %v5533_v62 = vrot.slane %v5505_v3, 9  ;;  %v2293_v63 = vrot.slane %v2291_v56, 4  ;;  %v2299_v57 = vrot.slane %v2297_v53, 5  ;;  %v5955_v53 = vpop.f32.mrf.mxu1 }
 0x1a4   : > { %v2581_v6 = vrot.slane %v5506_v60, 5  ;;  %v2584_v29 = vrot.slane %v5507_v47, 5  ;;  %v2284_v22 = vor.u32 %v2283_v10, %v2280_v33  ;;  %v5508_v18 = vld [vmem:[%s6822_s28 + $0x9c] sm:$0xe]  ;;  %v5509_v20 = vld [vmem:[%s6822_s28 + $0xa0] sm:$0xf]  ;;  %v6014_v56 = vadd.f32 %v6013_v35, %v6012_v36 }
 0x1a5   : > { %v5510_v19 = vld [vmem:[%s6822_s28 + $0xa4] sm:$0x1]  ;;  %v2294_v7 = vor.u32 %v2293_v63, %v2289_v43  ;;  %v6606_v3 = vld [vmem:[#allocation2 + $0x378] ss:$36 sps:$4 sm:$0xff]   ;;  %v7934_v33 = vadd.f32 %v5953_v11, %v7806_v25  ;;  %v5956_v10 = vadd.f32 %v5955_v53, %v5954_v8  ;;  %v5534_v44 = vrot.slane %v5508_v18, 9 }
 0x1a6   : > { %v6609_v31 = vld [vmem:[#allocation2 + $0x260] ss:$36 sps:$4 sm:$0xff]   ;;  %v2582_v52 = vsel %vm6997_vm5, %v5533_v62, %v2581_v6  ;;  %v2583_v16 = vrot.slane %v2581_v6, 4  ;;  %v2285_v47 = vrot.slane %v2284_v22, 4  ;;  %v2588_v21 = vrot.slane %v5509_v20, 5  ;;  %v6015_v6 = vpop.f32.mrf.mxu0 }
 0x1a7   : > { %v6608_v60 = vld [vmem:[#allocation2 + $0x37c] ss:$36 sps:$4 sm:$0xff]   ;;  %2673 = vst [vmem:[#allocation2 + $0x2f0] sm:$0xf] %v2582_v52  ;;  %6267 = vmatprep.mubr.bf16.mxu0 %v6609_v31  ;;  %v2295_v34 = vrot.slane %v2294_v7, 4  ;;  %v2591_v63 = vrot.slane %v5510_v19, 5  ;;  %v7941_v25 = vadd.f32 %v6014_v56, %v7665_v61 }
 0x1a8   : > { %v2585_v42 = vsel %vm6997_vm5, %v2583_v16, %v2584_v29  ;;  %4768 = vmatprep.mubr.bf16.mxu1 %v6608_v60  ;;  %v6610_v62 = vld [vmem:[#allocation2 + $0x2a8] ss:$36 sps:$4 sm:$0xff]   ;;  %v2290_v36 = vsel %vm6854_vm2, %v2285_v47, %v2289_v43  ;;  %v7944_v29 = vadd.f32 %v5956_v10, %v7821_v23  ;;  %v2589_v43 = vsel %vm6997_vm5, %v5534_v44, %v2588_v21  ;;  %v5423_v18 = vld [vmem:[%s6822_s28 + $0xc0] sm:$0xf]  ;;  %v5424_v20 = vld [vmem:[%s6822_s28 + $0xc4] sm:$0xf]  ;;  %v6016_v35 = vpop.f32.mrf.mxu0 }
 0x1a9   : > { %2674 = vst [vmem:[#allocation2 + $0x314] sm:$0xf] %v2585_v42  ;;  %4769 = vmatmul.mubr.bf16.gmra.mxu1 %v6606_v3  ;;  %v2300_v8 = vsel %vm6854_vm2, %v2295_v34, %v2299_v57  ;;  %2407 = vst [vmem:[#allocation2 + $0x3c4] sm:$0xf] %v2290_v36  ;;  %v2590_v22 = vrot.slane %v2588_v21, 4  ;;  %6268 = vmatmul.mubr.bf16.gmra.mxu0 %v6610_v62  ;;  %v6017_v60 = vadd.f32 %v6016_v35, %v6015_v6  ;;  %v5957_v21 = vpop.f32.mrf.mxu1 }
 0x1aa   : > { %2408 = vst [vmem:[#allocation2 + $0x3e8] sm:$0xf] %v2300_v8  ;;  %2675 = vst [vmem:[#allocation2 + $0x338] sm:$0xf] %v2589_v43  ;;  %v5469_v61 = vld [vmem:[%s6822_s28 + $0xc0] sm:$0xf]  ;;  %v6018_v47 = vpop.f32.mrf.mxu0 }
 0x1ab   : > { %1913 = vst [vmem:[#allocation2 + $0x408] sm:$0xf] %v5423_v18  ;;  %1914 = vst [vmem:[#allocation2 + $0x42c] sm:$0xf] %v5424_v20  ;;  %v5470_v23 = vld [vmem:[%s6822_s28 + $0xc4] sm:$0xf]  ;;  %v2592_v57 = vsel %vm6997_vm5, %v2590_v22, %v2591_v63 }
 0x1ac   : > { %v5471_v19 = vld [vmem:[%s6822_s28 + $0xc8] sm:$0x1]  ;;  %v2302_v11 = vshrl.u32 %v5469_v61, 16  ;;  %v2305_v31 = vshll.u32 %v5469_v61, 16  ;;  %v2311_v7 = vshll.u32 %v5470_v23, 16  ;;  %v2315_v16 = vshrl.u32 %v5470_v23, 16  ;;  %v6019_v22 = vpop.f32.mrf.mxu0 }
 0x1ad   : > { %v5511_v52 = vld [vmem:[%s6822_s28 + $0xa8] sm:$0xe]  ;;  %2676 = vst [vmem:[#allocation2 + $0x35c] sm:$0xf] %v2592_v57  ;;  %v2321_v56 = vshll.u32 %v5471_v19, 16  ;;  %v7963_v23 = vadd.f32 %v6017_v60, %v7696_v0  ;;  %v6020_v6 = vadd.f32 %v6019_v22, %v6018_v47  ;;  %v5958_v19 = vpop.f32.mrf.mxu1 }
 0x1ae   : > { %v5512_v53 = vld [vmem:[%s6822_s28 + $0xac] sm:$0xf]  ;;  %v5513_v3 = vld [vmem:[%s6822_s28 + $0xb0] sm:$0x1]  ;;  %v2304_v10 = vrot.slane %v2302_v11, 4  ;;  %v2307_v34 = vrot.slane %v2305_v31, 5  ;;  %v5959_v0 = vadd.f32 %v5958_v19, %v5957_v21 }
 0x1af   : > { %v2313_v42 = vrot.slane %v2311_v7, 5  ;;  %v5535_v44 = vrot.slane %v5511_v52, 9  ;;  %v2317_v62 = vrot.slane %v2315_v16, 4  ;;  %v2323_v36 = vrot.slane %v2321_v56, 5  ;;  %v5514_v43 = vld [vmem:[%s6822_s28 + $0xb4] sm:$0xe] }
 0x1b0   : > { %v2595_v63 = vrot.slane %v5512_v53, 5  ;;  %v2598_v8 = vrot.slane %v5513_v3, 5  ;;  %v6614_v18 = vld [vmem:[#allocation2 + $0x2f0] ss:$36 sps:$4 sm:$0xff]   ;;  %v2308_v20 = vor.u32 %v2307_v34, %v2304_v10  ;;  %v5515_v61 = vld [vmem:[%s6822_s28 + $0xb8] sm:$0xf]  ;;  %v7969_v53 = vadd.f32 %v6020_v6, %v7711_v32  ;;  %v5960_v3 = vpop.f32.mrf.mxu1 }
 0x1b1   : > { %v2318_v35 = vor.u32 %v2317_v62, %v2313_v42  ;;  %v5516_v31 = vld [vmem:[%s6822_s28 + $0xbc] sm:$0x1]  ;;  %v5536_v7 = vrot.slane %v5514_v43, 9  ;;  %v6611_v52 = vld [vmem:[#allocation2 + $0x3c0] ss:$36 sps:$4 sm:$0xff]   ;;  %6271 = vmatprep.mubr.bf16.mxu0 %v6614_v18  ;;  %v2602_v10 = vrot.slane %v5515_v61, 5  ;;  %v7977_v32 = vadd.f32 %v5959_v0, %v7845_v9 }
 0x1b2   : > { %v2596_v57 = vsel %vm6997_vm5, %v5535_v44, %v2595_v63  ;;  %v2597_v11 = vrot.slane %v2595_v63, 4  ;;  %v6613_v16 = vld [vmem:[#allocation2 + $0x3c4] ss:$36 sps:$4 sm:$0xff]   ;;  %v2309_v56 = vrot.slane %v2308_v20, 4  ;;  %v2605_v34 = vrot.slane %v5516_v31, 5  ;;  %v5961_v21 = vpop.f32.mrf.mxu1  ;;  %v6021_v20 = vpop.f32.mrf.mxu0 }
 0x1b3   : > { %2677 = vst [vmem:[#allocation2 + $0x380] sm:$0xf] %v2596_v57  ;;  %v2319_v60 = vrot.slane %v2318_v35, 4  ;;  %4776 = vmatprep.mubr.bf16.mxu1 %v6613_v16  ;;  %v5425_v63 = vld [vmem:[%s6822_s28 + $0xcc] sm:$0xf]  ;;  %v2603_v43 = vsel %vm6997_vm5, %v5536_v7, %v2602_v10  ;;  %v2604_v22 = vrot.slane %v2602_v10, 4  ;;  %v5962_v61 = vadd.f32 %v5961_v21, %v5960_v3 }
 0x1b4   : > { %v2599_v47 = vsel %vm6997_vm5, %v2597_v11, %v2598_v8  ;;  %v6615_v44 = vld [vmem:[#allocation2 + $0x338] ss:$36 sps:$4 sm:$0xff]   ;;  %v2314_v62 = vsel %vm6854_vm2, %v2309_v56, %v2313_v42  ;;  %4777 = vmatmul.mubr.bf16.gmra.mxu1 %v6611_v52  ;;  %v5426_v18 = vld [vmem:[%s6822_s28 + $0xd0] sm:$0xf]  ;;  %1915 = vst [vmem:[#allocation2 + $0x450] sm:$0xf] %v5425_v63  ;;  %v5963_v35 = vpop.f32.mrf.mxu1  ;;  %v6022_v16 = vpop.f32.mrf.mxu0 }
 0x1b5   : > { %2678 = vst [vmem:[#allocation2 + $0x3a4] sm:$0xf] %v2599_v47  ;;  %v2324_v8 = vsel %vm6854_vm2, %v2319_v60, %v2323_v36  ;;  %2409 = vst [vmem:[#allocation2 + $0x40c] sm:$0xf] %v2314_v62  ;;  %v5472_v42 = vld [vmem:[%s6822_s28 + $0xcc] sm:$0xf]  ;;  %6272 = vmatmul.mubr.bf16.gmra.mxu0 %v6615_v44  ;;  %v2606_v57 = vsel %vm6997_vm5, %v2604_v22, %v2605_v34  ;;  %v6023_v47 = vadd.f32 %v6022_v16, %v6021_v20 }
 0x1b6   : > { %2410 = vst [vmem:[#allocation2 + $0x430] sm:$0xf] %v2324_v8  ;;  %2679 = vst [vmem:[#allocation2 + $0x3c8] sm:$0xf] %v2603_v43  ;;  %v5473_v9 = vld [vmem:[%s6822_s28 + $0xd0] sm:$0xf]  ;;  %v7993_v10 = vadd.f32 %v5962_v61, %v7860_v14  ;;  %v5964_v44 = vpop.f32.mrf.mxu1  ;;  %v6024_v8 = vpop.f32.mrf.mxu0  ;;  %v5856_v14 = vadd.f32 %v7447_v41, %v7430_v17 }
 0x1b7   : > { %1916 = vst [vmem:[#allocation2 + $0x474] sm:$0xf] %v5426_v18  ;;  %v5474_v6 = vld [vmem:[%s6822_s28 + $0xd4] sm:$0x1]  ;;  %v2326_v36 = vshrl.u32 %v5472_v42, 16  ;;  %v2329_v19 = vshll.u32 %v5472_v42, 16 }
 0x1b8   : > { %v2335_v11 = vshll.u32 %v5473_v9, 16  ;;  %v2339_v31 = vshrl.u32 %v5473_v9, 16  ;;  %v2345_v7 = vshll.u32 %v5474_v6, 16  ;;  %v5517_v52 = vld [vmem:[%s6822_s28 + $0xc0] sm:$0xe]  ;;  %v7998_v6 = vadd.f32 %v6023_v47, %v7734_v49 }
 0x1b9   : > { %2680 = vst [vmem:[#allocation2 + $0x3ec] sm:$0xf] %v2606_v57  ;;  %v2328_v56 = vrot.slane %v2326_v36, 4  ;;  %v2331_v0 = vrot.slane %v2329_v19, 5  ;;  %v5518_v3 = vld [vmem:[%s6822_s28 + $0xc4] sm:$0xf]  ;;  %v5966_v36 = vpop.f32.mrf.mxu1  ;;  %v6025_v57 = vpop.f32.mrf.mxu0 }
 0x1ba   : > { %v5519_v60 = vld [vmem:[%s6822_s28 + $0xc8] sm:$0x1]  ;;  %v2337_v62 = vrot.slane %v2335_v11, 5  ;;  %v2341_v34 = vrot.slane %v2339_v31, 4  ;;  %v2347_v63 = vrot.slane %v2345_v7, 5  ;;  %v5537_v21 = vrot.slane %v5517_v52, 9 }
 0x1bb   : > { %v2332_v43 = vor.u32 %v2331_v0, %v2328_v56  ;;  %v2609_v22 = vrot.slane %v5518_v3, 5  ;;  %v2612_v18 = vrot.slane %v5519_v60, 5  ;;  %v5520_v42 = vld [vmem:[%s6822_s28 + $0xcc] sm:$0xe]  ;;  %v5521_v9 = vld [vmem:[%s6822_s28 + $0xd0] sm:$0xf]  ;;  %v5965_v11 = vadd.f32 %v5964_v44, %v5963_v35  ;;  %v5967_v56 = vpop.f32.mrf.mxu1 }
 0x1bc   : > { %v6619_v20 = vld [vmem:[#allocation2 + $0x380] ss:$36 sps:$4 sm:$0xff]   ;;  %v2342_v61 = vor.u32 %v2341_v34, %v2337_v62  ;;  %v5522_v19 = vld [vmem:[%s6822_s28 + $0xd4] sm:$0x1]  ;;  %v5538_v16 = vrot.slane %v5520_v42, 9  ;;  %v6026_v60 = vadd.f32 %v6025_v57, %v6024_v8  ;;  %v5968_v41 = vadd.f32 %v5967_v56, %v5966_v36  ;;  %s8170_s28 = sand.u32 1, %s6708_s13  }
 0x1bd   : > { %v2333_v31 = vrot.slane %v2332_v43, 4  ;;  %v2610_v7 = vsel %vm6997_vm5, %v5537_v21, %v2609_v22  ;;  %v2611_v52 = vrot.slane %v2609_v22, 4  ;;  %v6616_v0 = vld [vmem:[#allocation2 + $0x408] ss:$36 sps:$4 sm:$0xff]   ;;  %6275 = vmatprep.mubr.bf16.mxu0 %v6619_v20  ;;  %v8006_v17 = vadd.f32 %v5965_v11, %v7426_v12  ;;  %v6027_v21 = vpop.f32.mrf.mxu0  ;;  %s5232_s9 = sshll.u32 %s8170_s28, 8  ;;  %s5103_s25 = scalar_lea.sflag [#allocation4], %s8170_s28 }
 0x1be   : > { %v6618_v3 = vld [vmem:[#allocation2 + $0x40c] ss:$36 sps:$4 sm:$0xff]   ;;  %v2343_v49 = vrot.slane %v2342_v61, 4  ;;  %2681 = vst [vmem:[#allocation2 + $0x410] sm:$0xf] %v2610_v7  ;;  %v2616_v44 = vrot.slane %v5521_v9, 5  ;;  %v8015_v12 = vadd.f32 %v6026_v60, %v7743_v37  ;;  %v8017_v8 = vadd.f32 %v5968_v41, %v5856_v14  ;;  %v5969_v14 = vpop.f32.mrf.mxu1 }
 0x1bf   : > { %v2338_v35 = vsel %vm6854_vm2, %v2333_v31, %v2337_v62  ;;  %v2613_v47 = vsel %vm6997_vm5, %v2611_v52, %v2612_v18  ;;  %v2619_v34 = vrot.slane %v5522_v19, 5  ;;  %4784 = vmatprep.mubr.bf16.mxu1 %v6618_v3  ;;  %v6028_v42 = vpop.f32.mrf.mxu0  ;;  %v6621_v57 = vld [vmem:[#allocation2 + $0x450] ss:$36 sps:$4 sm:$0xff]   ;;  %s8196_s10 = scalar_lea.vmem [#allocation3], %s5232_s9 }
 0x1c0   : > { %v6620_v43 = vld [vmem:[#allocation2 + $0x3c8] ss:$36 sps:$4 sm:$0xff]   ;;  %v2348_v22 = vsel %vm6854_vm2, %v2343_v49, %v2347_v63  ;;  %2411 = vst [vmem:[#allocation2 + $0x454] sm:$0xf] %v2338_v35  ;;  %2682 = vst [vmem:[#allocation2 + $0x434] sm:$0xf] %v2613_v47  ;;  %4785 = vmatmul.mubr.bf16.gmra.mxu1 %v6616_v0  ;;  %v2617_v62 = vsel %vm6997_vm5, %v5538_v16, %v2616_v44  ;;  %v6029_v9 = vadd.f32 %v6028_v42, %v6027_v21  ;;  %v5970_v19 = vpop.f32.mrf.mxu1 }
 0x1c1   : > { %2412 = vst [vmem:[#allocation2 + $0x478] sm:$0xf] %v2348_v22  ;;  %v2618_v18 = vrot.slane %v2616_v44, 4  ;;  %6276 = vmatmul.mubr.bf16.gmra.mxu0 %v6620_v43  ;;  %2683 = vst [vmem:[#allocation2 + $0x458] sm:$0xf] %v2617_v62  ;;  %v6030_v63 = vpop.f32.mrf.mxu0  ;;  %v5971_v7 = vadd.f32 %v5970_v19, %v5969_v14  ;;  %v5862_v0 = vadd.f32 %v7491_v13, %v7477_v51  ;;  %s5121_s17 = sshll.u32 %s8196_s10, 4  ;;  %s8326_s17 = int_to_ptr.vmem [resolvable:$true] %s5121_s17 }
 0x1c2   : > { %v8024_v37 = vadd.f32 %v6029_v9, %v7753_v27  ;;  %v5972_v52 = vpop.f32.mrf.mxu1  ;;  %v5868_v13 = vadd.f32 %v7524_v28, %v7514_v5  ;;  %s6626_s26 = scalar_lea.vmem %s8326_s17, 4096  ;;  %p6633_p0 = scmp.lt.s32.totalorder %s8326_s17, %s6631_s29 }
 0x1c3   : > { %v2620_v39 = vsel %vm6997_vm5, %v2618_v18, %v2619_v34  ;;  %v6031_v36 = vpop.f32.mrf.mxu0  ;;  %v8030_v48 = vadd.f32 %v5971_v7, %v7467_v26  ;;  %v8402_v7 = vld [vmem:[#allocation10_spill] sm:$0xff]  ;;  %p6627_p11 = scmp.ne.s32.totalorder %s8326_s17, %s6626_s26  ;;  %p6634_p1 = scmp.lt.s32.totalorder %s6632_s30, %s6626_s26 }
 0x1c4   : > { %2684 = vst [vmem:[#allocation2 + $0x47c] sm:$0xf] %v2620_v39  ;;  %v6032_v20 = vadd.f32 %v6031_v36, %v6030_v63  ;;  %v5973_v56 = vpop.f32.mrf.mxu1 }
 0x1c5   : > { %v6033_v16 = vpop.f32.mrf.mxu0  ;;  %v5974_v3 = vadd.f32 %v5973_v56, %v5972_v52  ;;  %v8403_v52 = vld [vmem:[#allocation11_spill] sm:$0xff]  ;;  %p6628_p12 = pnand %p6627_p11, %p6780_p5  ;;  %p6635_p2 = por %p6634_p1, %p6633_p0 }
 0x1c6   : > { %v8027_v31 = vadd.f32 %v6032_v20, %v7784_v46  ;;  %v5975_v60 = vpop.f32.mrf.mxu1 }
 0x1c7   : > { %v6624_v61 = vld [vmem:[#allocation2 + $0x410] ss:$36 sps:$4 sm:$0xff]   ;;  %v6034_v49 = vpop.f32.mrf.mxu0  ;;  %v8034_v41 = vadd.f32 %v5974_v3, %v5862_v0  ;;  %p6629_p13 = pneg %p6628_p12 }
 0x1c8   : > { %v6623_v11 = vld [vmem:[#allocation2 + $0x454] ss:$36 sps:$4 sm:$0xff]   ;;  %6279 = vmatprep.mubr.bf16.mxu0 %v6624_v61  ;;  %v6035_v46 = vadd.f32 %v6034_v49, %v6033_v16  ;;  %v5976_v47 = vpop.f32.mrf.mxu1 }
 0x1c9   : > { %4792 = vmatprep.mubr.bf16.mxu1 %v6623_v11  ;;  %v6036_v35 = vpop.f32.mrf.mxu0  ;;  %v5977_v26 = vadd.f32 %v5976_v47, %v5975_v60  ;;  %p6636_p3 = pnand %p6635_p2, %p6629_p13 }
 0x1ca   : > { %4793 = vmatmul.mubr.bf16.gmra.mxu1 %v6621_v57  ;;  %v8037_v44 = vadd.f32 %v6035_v46, %v7790_v24  ;;  %v5978_v21 = vpop.f32.mrf.mxu1 }
 0x1cb   : > { %v6625_v27 = vld [vmem:[#allocation2 + $0x458] ss:$36 sps:$4 sm:$0xff]   ;;  %v6037_v34 = vpop.f32.mrf.mxu0  ;;  %v8040_v22 = vadd.f32 %v5977_v26, %v7512_v4 }
 0x1cc   : > { %6280 = vmatmul.mubr.bf16.gmra.mxu0 %v6625_v27  ;;  %v6038_v43 = vadd.f32 %v6037_v34, %v6036_v35  ;;  %v5979_v51 = vpop.f32.mrf.mxu1  ;;  %v5874_v27 = vadd.f32 %v8403_v52, %v8402_v7 }
 0x1cd   : > { %v6039_v18 = vpop.f32.mrf.mxu0  ;;  %v5980_v42 = vadd.f32 %v5979_v51, %v5978_v21 }
 0x1ce   : > { %v8045_v62 = vadd.f32 %v6038_v43, %v7798_v55  ;;  %v5981_v4 = vpop.f32.mrf.mxu1  ;;  %v8401_v55 = vld [vmem:[#allocation9_spill] sm:$0xff] }
 0x1cf   : > { %v6040_v9 = vpop.f32.mrf.mxu0  ;;  %v8047_v39 = vadd.f32 %v5980_v42, %v5868_v13 }
 0x1d0   : > { %v6041_v24 = vadd.f32 %v6040_v9, %v6039_v18  ;;  %v5982_v61 = vpop.f32.mrf.mxu1 }
 0x1d1   : > { %v6042_v63 = vpop.f32.mrf.mxu0  ;;  %v5983_v5 = vadd.f32 %v5982_v61, %v5981_v4 }
 0x1d2   : > { %v8050_v36 = vadd.f32 %v6041_v24, %v7819_v2  ;;  %v5984_v28 = vpop.f32.mrf.mxu1 }
 0x1d3   : > { %v6043_v14 = vpop.f32.mrf.mxu0  ;;  %v8056_v57 = vadd.f32 %v5983_v5, %v8401_v55 }
 0x1d4   : > { %v6044_v20 = vadd.f32 %v6043_v14, %v6042_v63  ;;  %v5985_v11 = vpop.f32.mrf.mxu1 }
 0x1d5   : > { %v6045_v16 = vpop.f32.mrf.mxu0  ;;  %v5986_v56 = vadd.f32 %v5985_v11, %v5984_v28 }
 0x1d6   : > { %v8053_v19 = vadd.f32 %v6044_v20, %v7828_v40 }
 0x1d7   : > { %v6046_v2 = vpop.f32.mrf.mxu0  ;;  %v8060_v0 = vadd.f32 %v5986_v56, %v5874_v27 }
 0x1d8   : > { %v6047_v3 = vadd.f32 %v6046_v2, %v6045_v16 }
 0x1d9   : > { %v6048_v49 = vpop.f32.mrf.mxu0 }
 0x1da   : > { %v8063_v60 = vadd.f32 %v6047_v3, %v7848_v38 }
 0x1db   : > { %v6049_v40 = vpop.f32.mrf.mxu0  ;;  %v8068_v43 = vpop.f32.mrf.mxu1 }
 0x1dc   : > { %v6050_v46 = vadd.f32 %v6049_v40, %v6048_v49 }
 0x1dd   : > { %v6051_v35 = vpop.f32.mrf.mxu0  ;;  %v8073_v18 = vpop.f32.mrf.mxu1 }
 0x1de   : > { %v8066_v47 = vadd.f32 %v6050_v46, %v7862_v58 }
 0x1df   : > { %v6052_v26 = vpop.f32.mrf.mxu0  ;;  %v8075_v38 = vpop.f32.mrf.mxu1 }
 0x1e0   : > { %v6053_v34 = vadd.f32 %v6052_v26, %v6051_v35 }
 0x1e1   : > { %v6054_v21 = vpop.f32.mrf.mxu0  ;;  %v8080_v14 = vpop.f32.mrf.mxu1 }
 0x1e2   : > { %v8071_v51 = vadd.f32 %v6053_v34, %v7874_v1 }
 0x1e3   : > { %v6055_v13 = vpop.f32.mrf.mxu0 }
 0x1e4   : > { %v6056_v42 = vadd.f32 %v6055_v13, %v6054_v21 }
 0x1e5   : > { %v6057_v24 = vpop.f32.mrf.mxu0 }
 0x1e6   : > { %v8078_v9 = vadd.f32 %v6056_v42, %v7891_v59 }
 0x1e7   : > { %v6058_v58 = vpop.f32.mrf.mxu0 }
 0x1e8   : > { %v6059_v63 = vadd.f32 %v6058_v58, %v6057_v24  ;;  %v8085_v5 = vpop.f32.mrf.mxu1 }
 0x1e9   : > { %v6060_v4 = vpop.f32.mrf.mxu0 }
 0x1ea   : > { %v8083_v20 = vadd.f32 %v6059_v63, %v7907_v54  ;;  %v8090_v55 = vpop.f32.mrf.mxu1 }
 0x1eb   : > { %v6061_v1 = vpop.f32.mrf.mxu0 }
 0x1ec   : > { %v6062_v61 = vadd.f32 %v6061_v1, %v6060_v4  ;;  %v8092_v11 = vpop.f32.mrf.mxu1 }
 0x1ed   : > { %v6063_v59 = vpop.f32.mrf.mxu0 }
 0x1ee   : > { %v8088_v28 = vadd.f32 %v6062_v61, %v7922_v50  ;;  %v8094_v27 = vpop.f32.mrf.mxu1 }
 0x1ef   : > { %v6064_v7 = vpop.f32.mrf.mxu0 }
 0x1f0   : > { %v6065_v52 = vadd.f32 %v6064_v7, %v6063_v59 }
 0x1f1   : > { %v6066_v16 = vpop.f32.mrf.mxu0 }
 0x1f2   : > { %v8097_v54 = vadd.f32 %v6065_v52, %v7934_v33 }
 0x1f3   : > { %v6067_v56 = vpop.f32.mrf.mxu0 }
 0x1f4   : > { %v6068_v2 = vadd.f32 %v6067_v56, %v6066_v16 }
 0x1f5   : > { %v8099_v3 = vpop.f32.mrf.mxu1 }
 0x1f6   : > { %v8102_v50 = vadd.f32 %v6068_v2, %v7944_v29 }
 0x1f7   : > { %v8104_v49 = vpop.f32.mrf.mxu1 }
 0x1f8   : > { %8404 = vst [vmem:[#allocation9_spill] sm:$0xff] %v8102_v50 }
 0x1f9   : > { %v8106_v40 = vpop.f32.mrf.mxu1 }
 0x1fa   : > { %v6069_v46 = vpop.f32.mrf.mxu0 }
 0x1fb   : > { %v8108_v26 = vpop.f32.mrf.mxu1 }
 0x1fc   : > { %v6070_v35 = vpop.f32.mrf.mxu0 }
 0x1fd   : > { %v6071_v34 = vadd.f32 %v6070_v35, %v6069_v46 }
 0x1fe   : > { %v6072_v21 = vpop.f32.mrf.mxu0 }
 0x1ff   : > { %v8111_v33 = vadd.f32 %v6071_v34, %v7977_v32 }
 0x200   : > { %v6073_v13 = vpop.f32.mrf.mxu0 }
 0x201   : > { %v8113_v42 = vpop.f32.mrf.mxu1  ;;  %v6074_v24 = vadd.f32 %v6073_v13, %v6072_v21 }
 0x203   : > { %v8115_v58 = vpop.f32.mrf.mxu1  ;;  %v8118_v29 = vadd.f32 %v6074_v24, %v7993_v10 }
 0x205   : > { %8405 = vst [vmem:[#allocation10_spill] sm:$0xff] %v8118_v29  ;;  %v8120_v63 = vpop.f32.mrf.mxu1 }
 0x206   : > { %v6075_v4 = vpop.f32.mrf.mxu0 }
 0x207   : > { %v8122_v61 = vpop.f32.mrf.mxu1 }
 0x208   : > { %v6076_v1 = vpop.f32.mrf.mxu0 }
 0x209   : > { %v6077_v59 = vadd.f32 %v6076_v1, %v6075_v4 }
 0x20a   : > { %v6078_v7 = vpop.f32.mrf.mxu0 }
 0x20b   : > { %v8125_v32 = vadd.f32 %v6077_v59, %v8006_v17 }
 0x20c   : > { %v6079_v52 = vpop.f32.mrf.mxu0 }
 0x20d   : > { %8406 = vst [vmem:[#allocation11_spill] sm:$0xff] %v8125_v32  ;;  %v6080_v56 = vadd.f32 %v6079_v52, %v6078_v7 }
 0x20f   : > { %v8127_v16 = vpop.f32.mrf.mxu1  ;;  %v8132_v10 = vadd.f32 %v6080_v56, %v8017_v8 }
 0x211   : > { %v8129_v2 = vpop.f32.mrf.mxu1  ;;  %8407 = vst [vmem:[#allocation12_spill] sm:$0xff] %v8132_v10 }
 0x213   : > { %v8134_v46 = vpop.f32.mrf.mxu1  ;;  %v6081_v35 = vpop.f32.mrf.mxu0 }
 0x215   : > { %v6082_v34 = vpop.f32.mrf.mxu0  ;;  %v8136_v13 = vpop.f32.mrf.mxu1 }
 0x216   : > { %v6083_v21 = vadd.f32 %v6082_v34, %v6081_v35 }
 0x217   : > { %v6084_v24 = vpop.f32.mrf.mxu0 }
 0x218   : > { %v8139_v17 = vadd.f32 %v6083_v21, %v8030_v48 }
 0x219   : > { %v6085_v4 = vpop.f32.mrf.mxu0 }
 0x21a   : > { %8408 = vst [vmem:[#allocation13_spill] sm:$0xff] %v8139_v17  ;;  %v6086_v1 = vadd.f32 %v6085_v4, %v6084_v24 }
 0x21b   : > { %v8141_v59 = vpop.f32.mrf.mxu1 }
 0x21c   : > { %v8144_v7 = vadd.f32 %v6086_v1, %v8034_v41 }
 0x21d   : > { %v8146_v8 = vpop.f32.mrf.mxu1 }
 0x21e   : > { %8409 = vst [vmem:[#allocation14_spill] sm:$0xff] %v8144_v7 }
 0x21f   : > { %v6087_v52 = vpop.f32.mrf.mxu0  ;;  %v8148_v56 = vpop.f32.mrf.mxu1 }
 0x221   : > { %v6088_v10 = vpop.f32.mrf.mxu0  ;;  %v8150_v35 = vpop.f32.mrf.mxu1 }
 0x222   : > { %v6089_v34 = vadd.f32 %v6088_v10, %v6087_v52 }
 0x223   : > { %v6090_v32 = vpop.f32.mrf.mxu0 }
 0x224   : > { %v8153_v48 = vadd.f32 %v6089_v34, %v8040_v22 }
 0x225   : > { %v6091_v21 = vpop.f32.mrf.mxu0 }
 0x226   : > { %8410 = vst [vmem:[#allocation15_spill] sm:$0xff] %v8153_v48  ;;  %v6092_v4 = vadd.f32 %v6091_v21, %v6090_v32 }
 0x228   : > { %v8155_v24 = vpop.f32.mrf.mxu1  ;;  %v8160_v1 = vadd.f32 %v6092_v4, %v8047_v39  ;;  %v6123_v39 = vadd.f32 %v8090_v55, %v8085_v5  ;;  %v6120_v5 = vadd.f32 %v8080_v14, %v8075_v38 }
 0x22a   : > { %v8157_v41 = vpop.f32.mrf.mxu1  ;;  %v4683_v4 = vadd.f32 %v6123_v39, %v7929_v45 }
 0x22c   : > { %v8162_v7 = vpop.f32.mrf.mxu1  ;;  %v6093_v17 = vpop.f32.mrf.mxu0 }
 0x22e   : > { %v6094_v50 = vpop.f32.mrf.mxu0  ;;  %v8164_v10 = vpop.f32.mrf.mxu1 }
 0x22f   : > { %v6095_v29 = vadd.f32 %v6094_v50, %v6093_v17  ;;  %v6117_v50 = vadd.f32 %v8073_v18, %v8068_v43 }
 0x230   : > { %v6096_v52 = vpop.f32.mrf.mxu0 }
 0x231   : > { %v8167_v22 = vadd.f32 %v6095_v29, %v8056_v57  ;;  %v6126_v57 = vadd.f32 %v8094_v27, %v8092_v11 }
 0x232   : > { %v6097_v34 = vpop.f32.mrf.mxu0 }
 0x233   : > { %v6098_v48 = vadd.f32 %v6097_v34, %v6096_v52  ;;  %v4686_v11 = vadd.f32 %v6126_v57, %v7941_v25  ;;  %v6135_v34 = vadd.f32 %v8115_v58, %v8113_v42  ;;  %v6132_v58 = vadd.f32 %v8108_v26, %v8106_v40 }
 0x235   : > { %v8177_v21 = vadd.f32 %v6098_v48, %v8060_v0  ;;  %v4675_v48 = vadd.f32 %v6117_v50, %v7888_v15  ;;  %v4678_v15 = vadd.f32 %v6120_v5, %v7900_v30  ;;  %v6138_v30 = vadd.f32 %v8122_v61, %v8120_v63 }
 0x236   : > { %v4699_v42 = vadd.f32 %v6135_v34, %v7998_v6 }
 0x237   : > { %v8174_v32 = vpop.f32.mrf.mxu1  ;;  %8411 = vst [vmem:[#allocation16_spill] sm:$0xff] %v8177_v21  ;;  %v4702_v40 = vadd.f32 %v6138_v30, %v8015_v12 }
 0x239   : > { %v8181_v17 = vpop.f32.mrf.mxu1 }
 0x23b   : > { %v8186_v29 = vpop.f32.mrf.mxu1 }
 0x23c   : > { %v6253_v52 = vpop.f32.mrf.mxu0 }
 0x23d   : > { %v8191_v55 = vpop.f32.mrf.mxu1  ;;  %v4844_v0 = vadd.f32 %v6253_v52, %v4683_v4  ;;  %v6129_v52 = vadd.f32 %v8104_v49, %v8099_v3 }
 0x23e   : > { %v4835_v43 = vpop.f32.mrf.mxu0 }
 0x23f   : > { %v8194_v18 = vpop.f32.mrf.mxu1  ;;  %4964 = vst [vmem:[%s8196_s10 + $0x10] sm:$0xff] %v4844_v0  ;;  %v4836_v45 = vadd.f32 %v4835_v43, %v4675_v48  ;;  %v5034_v5 = vmul.f32 %v4844_v0, %v4844_v0 }
 0x240   : > { %v6254_v27 = vpop.f32.mrf.mxu0 }
 0x241   : > { %v8200_v38 = vpop.f32.mrf.mxu1  ;;  %4962 = vst [vmem:[%s8196_s10] sm:$0xff] %v4836_v45  ;;  %v4847_v14 = vadd.f32 %v6254_v27, %v4686_v11  ;;  %v5032_v48 = vmul.f32 %v4836_v45, %v4836_v45 }
 0x242   : > { %v4838_v39 = vpop.f32.mrf.mxu0 }
 0x243   : > { %v8206_v50 = vpop.f32.mrf.mxu1  ;;  %4965 = vst [vmem:[%s8196_s10 + $0x18] sm:$0xff] %v4847_v14  ;;  %v4839_v4 = vadd.f32 %v4838_v39, %v4678_v15  ;;  %v5035_v39 = vmul.f32 %v4847_v14, %v4847_v14 }
 0x245   : > { %v8211_v25 = vpop.f32.mrf.mxu1  ;;  %4963 = vst [vmem:[%s8196_s10 + $0x8] sm:$0xff] %v4839_v4  ;;  %v4994_v57 = vadd.f32 %v4839_v4, %v4836_v45  ;;  %v5033_v43 = vmul.f32 %v4839_v4, %v4839_v4  ;;  %v4691_v45 = vadd.f32 %v6129_v52, %v7963_v23  ;;  %v6147_v23 = vadd.f32 %v8146_v8, %v8141_v59 }
 0x247   : > { %v4995_v11 = vadd.f32 %v4994_v57, %v4844_v0  ;;  %v5064_v27 = vadd.f32 %v5033_v43, %v5032_v48  ;;  %v8219_v15 = vpop.f32.mrf.mxu1  ;;  %v6257_v3 = vpop.f32.mrf.mxu0  ;;  %v4694_v48 = vadd.f32 %v6132_v58, %v7969_v53  ;;  %v4715_v58 = vadd.f32 %v6147_v23, %v8037_v44 }
 0x248   : > { %v4860_v49 = vadd.f32 %v6257_v3, %v4699_v42 }
 0x249   : > { %v5065_v4 = vadd.f32 %v5064_v27, %v5034_v5  ;;  %v8222_v21 = vpop.f32.mrf.mxu1  ;;  %v4851_v63 = vpop.f32.mrf.mxu0  ;;  %v4996_v61 = vadd.f32 %v4995_v11, %v4847_v14  ;;  %v6141_v14 = vadd.f32 %v8129_v2, %v8127_v16  ;;  %v6150_v11 = vadd.f32 %v8150_v35, %v8148_v56 }
 0x24a   : > { %4968 = vst [vmem:[%s8196_s10 + $0x30] sm:$0xff] %v4860_v49  ;;  %v4852_v6 = vadd.f32 %v4851_v63, %v4691_v45  ;;  %v6144_v16 = vadd.f32 %v8136_v13, %v8134_v46  ;;  %v5038_v3 = vmul.f32 %v4860_v49, %v4860_v49 }
 0x24b   : > { %v5066_v26 = vadd.f32 %v5065_v4, %v5035_v39  ;;  %v8226_v0 = vpop.f32.mrf.mxu1  ;;  %v6258_v34 = vpop.f32.mrf.mxu0  ;;  %v4707_v27 = vadd.f32 %v6141_v14, %v8024_v37  ;;  %v4718_v63 = vadd.f32 %v6150_v11, %v8045_v62  ;;  %v6159_v62 = vadd.f32 %v8181_v17, %v8174_v32 }
 0x24c   : > { %4966 = vst [vmem:[%s8196_s10 + $0x20] sm:$0xff] %v4852_v6  ;;  %v4997_v52 = vadd.f32 %v4996_v61, %v4852_v6  ;;  %v5036_v57 = vmul.f32 %v4852_v6, %v4852_v6  ;;  %v4863_v43 = vadd.f32 %v6258_v34, %v4702_v40  ;;  %v4710_v13 = vadd.f32 %v6144_v16, %v8027_v31 }
 0x24d   : > { %v8234_v42 = vpop.f32.mrf.mxu1  ;;  %v4854_v12 = vpop.f32.mrf.mxu0  ;;  %v6153_v14 = vadd.f32 %v8157_v41, %v8155_v24  ;;  %v6156_v32 = vadd.f32 %v8164_v10, %v8162_v7 }
 0x24e   : > { %v5067_v30 = vadd.f32 %v5066_v26, %v5036_v57  ;;  %4969 = vst [vmem:[%s8196_s10 + $0x38] sm:$0xff] %v4863_v43  ;;  %v4855_v5 = vadd.f32 %v4854_v12, %v4694_v48  ;;  %v5039_v61 = vmul.f32 %v4863_v43, %v4863_v43 }
 0x24f   : > { %v4723_v24 = vadd.f32 %v6153_v14, %v8050_v36 }
 0x250   : > { %4967 = vst [vmem:[%s8196_s10 + $0x28] sm:$0xff] %v4855_v5  ;;  %v4998_v53 = vadd.f32 %v4997_v52, %v4855_v5  ;;  %v5037_v59 = vmul.f32 %v4855_v5, %v4855_v5  ;;  %v4731_v5 = vadd.f32 %v6159_v62, %v8063_v60 }
 0x252   : > { %v8240_v8 = vpop.f32.mrf.mxu1  ;;  %v4999_v45 = vadd.f32 %v4998_v53, %v4860_v49  ;;  %v5068_v39 = vadd.f32 %v5067_v30, %v5037_v59  ;;  %v6162_v30 = vadd.f32 %v8191_v55, %v8186_v29 }
 0x253   : > { %v6261_v2 = vpop.f32.mrf.mxu0 }
 0x254   : > { %v4876_v4 = vadd.f32 %v6261_v2, %v4715_v58  ;;  %v8246_v56 = vpop.f32.mrf.mxu1  ;;  %v5069_v6 = vadd.f32 %v5068_v39, %v5038_v3  ;;  %v5000_v40 = vadd.f32 %v4999_v45, %v4863_v43  ;;  %v4734_v29 = vadd.f32 %v6162_v30, %v8066_v47 }
 0x255   : > { %v4867_v35 = vpop.f32.mrf.mxu0  ;;  %v4726_v39 = vadd.f32 %v6156_v32, %v8053_v19 }
 0x256   : > { %4972 = vst [vmem:[%s8196_s10 + $0x50] sm:$0xff] %v4876_v4  ;;  %v4868_v44 = vadd.f32 %v4867_v35, %v4707_v27  ;;  %v8250_v46 = vpop.f32.mrf.mxu1  ;;  %v5070_v34 = vadd.f32 %v5069_v6, %v5039_v61  ;;  %v5042_v17 = vmul.f32 %v4876_v4, %v4876_v4  ;;  %v6165_v61 = vadd.f32 %v8200_v38, %v8194_v18 }
 0x257   : > { %v6262_v37 = vpop.f32.mrf.mxu0 }
 0x258   : > { %4970 = vst [vmem:[%s8196_s10 + $0x40] sm:$0xff] %v4868_v44  ;;  %v5001_v49 = vadd.f32 %v5000_v40, %v4868_v44  ;;  %v5040_v26 = vmul.f32 %v4868_v44, %v4868_v44  ;;  %v4879_v48 = vadd.f32 %v6262_v37, %v4718_v63  ;;  %v8257_v57 = vpop.f32.mrf.mxu1  ;;  %v6174_v37 = vadd.f32 %v8234_v42, %v8226_v0 }
 0x259   : > { %v4870_v23 = vpop.f32.mrf.mxu0  ;;  %v4739_v38 = vadd.f32 %v6165_v61, %v8071_v51 }
 0x25a   : > { %v5071_v52 = vadd.f32 %v5070_v34, %v5040_v26  ;;  %4973 = vst [vmem:[%s8196_s10 + $0x58] sm:$0xff] %v4879_v48  ;;  %v4871_v43 = vadd.f32 %v4870_v23, %v4710_v13  ;;  %v5043_v41 = vmul.f32 %v4879_v48, %v4879_v48  ;;  %v4750_v23 = vadd.f32 %v6174_v37, %v8088_v28 }
 0x25c   : > { %4971 = vst [vmem:[%s8196_s10 + $0x48] sm:$0xff] %v4871_v43  ;;  %v5002_v12 = vadd.f32 %v5001_v49, %v4871_v43  ;;  %v5041_v31 = vmul.f32 %v4871_v43, %v4871_v43  ;;  %v6168_v49 = vadd.f32 %v8211_v25, %v8206_v50 }
 0x25e   : > { %v5003_v11 = vadd.f32 %v5002_v12, %v4876_v4  ;;  %v5072_v53 = vadd.f32 %v5071_v52, %v5041_v31  ;;  %v6171_v4 = vadd.f32 %v8222_v21, %v8219_v15  ;;  %v4742_v51 = vadd.f32 %v6168_v49, %v8078_v9 }
 0x25f   : > { %v6181_v59 = vpop.f32.mrf.mxu1  ;;  %v6265_v58 = vpop.f32.mrf.mxu0 }
 0x260   : > { %v4892_v16 = vadd.f32 %v6265_v58, %v4731_v5  ;;  %v5073_v2 = vadd.f32 %v5072_v53, %v5042_v17  ;;  %v5004_v45 = vadd.f32 %v5003_v11, %v4879_v48  ;;  %v4747_v15 = vadd.f32 %v6171_v4, %v8083_v20 }
 0x261   : > { %v6182_v27 = vpop.f32.mrf.mxu1  ;;  %v4883_v3 = vpop.f32.mrf.mxu0  ;;  %v6177_v58 = vadd.f32 %v8246_v56, %v8240_v8 }
 0x262   : > { %4976 = vst [vmem:[%s8196_s10 + $0x70] sm:$0xff] %v4892_v16  ;;  %v4884_v60 = vadd.f32 %v4883_v3, %v4723_v24  ;;  %v5074_v7 = vadd.f32 %v5073_v2, %v5043_v41  ;;  %v5046_v26 = vmul.f32 %v4892_v16, %v4892_v16  ;;  %v6183_v32 = vadd.f32 %v6182_v27, %v6181_v59 }
 0x263   : > { %v6184_v10 = vpop.f32.mrf.mxu1  ;;  %v6266_v55 = vpop.f32.mrf.mxu0  ;;  %v6180_v27 = vadd.f32 %v8257_v57, %v8250_v46  ;;  %v4755_v8 = vadd.f32 %v6177_v58, %v8097_v54 }
 0x264   : > { %4974 = vst [vmem:[%s8196_s10 + $0x60] sm:$0xff] %v4884_v60  ;;  %v5005_v36 = vadd.f32 %v5004_v45, %v4884_v60  ;;  %v5044_v35 = vmul.f32 %v4884_v60, %v4884_v60  ;;  %v4895_v63 = vadd.f32 %v6266_v55, %v4734_v29  ;;  %v4763_v2 = vadd.f32 %v6183_v32, %v8111_v33  ;;  %v8416_v32 = vld [vmem:[#allocation14_spill] sm:$0xff] }
 0x265   : > { %v6185_v6 = vpop.f32.mrf.mxu1  ;;  %v4886_v44 = vpop.f32.mrf.mxu0 }
 0x266   : > { %v5075_v40 = vadd.f32 %v5074_v7, %v5044_v35  ;;  %4977 = vst [vmem:[%s8196_s10 + $0x78] sm:$0xff] %v4895_v63  ;;  %v4887_v47 = vadd.f32 %v4886_v44, %v4726_v39  ;;  %v5047_v52 = vmul.f32 %v4895_v63, %v4895_v63  ;;  %v6186_v41 = vadd.f32 %v6185_v6, %v6184_v10  ;;  %v8413_v44 = vld [vmem:[#allocation9_spill] sm:$0xff] }
 0x268   : > { %4975 = vst [vmem:[%s8196_s10 + $0x68] sm:$0xff] %v4887_v47  ;;  %v5006_v19 = vadd.f32 %v5005_v36, %v4887_v47  ;;  %v5045_v13 = vmul.f32 %v4887_v47, %v4887_v47  ;;  %v8412_v36 = vld [vmem:[#allocation10_spill] sm:$0xff] }
 0x269   : > { %v8280_v21 = vpop.f32.mrf.mxu1  ;;  %v6269_v18 = vpop.f32.mrf.mxu0  ;;  %v4766_v35 = vadd.f32 %v6186_v41, %v8412_v36 }
 0x26a   : > { %v5007_v34 = vadd.f32 %v5006_v19, %v4892_v16  ;;  %v5076_v48 = vadd.f32 %v5075_v40, %v5045_v13  ;;  %v4908_v62 = vadd.f32 %v6269_v18, %v4747_v15  ;;  %v4758_v40 = vadd.f32 %v6180_v27, %v8413_v44 }
 0x26b   : > { %v6188_v0 = vpop.f32.mrf.mxu1  ;;  %v4899_v42 = vpop.f32.mrf.mxu0 }
 0x26c   : > { %v5077_v43 = vadd.f32 %v5076_v48, %v5046_v26  ;;  %4980 = vst [vmem:[%s8196_s10 + $0x90] sm:$0xff] %v4908_v62  ;;  %v4900_v20 = vadd.f32 %v4899_v42, %v4739_v38  ;;  %v5008_v14 = vadd.f32 %v5007_v34, %v4895_v63  ;;  %v5050_v3 = vmul.f32 %v4908_v62, %v4908_v62  ;;  %v8414_v34 = vld [vmem:[#allocation13_spill] sm:$0xff] }
 0x26d   : > { %v6190_v50 = vpop.f32.mrf.mxu1  ;;  %v6270_v25 = vpop.f32.mrf.mxu0  ;;  %v6189_v15 = vadd.f32 %v6188_v0, %v8280_v21 }
 0x26e   : > { %4978 = vst [vmem:[%s8196_s10 + $0x80] sm:$0xff] %v4900_v20  ;;  %v5009_v12 = vadd.f32 %v5008_v14, %v4900_v20  ;;  %v5048_v31 = vmul.f32 %v4900_v20, %v4900_v20  ;;  %v5078_v30 = vadd.f32 %v5077_v43, %v5047_v52  ;;  %v4911_v5 = vadd.f32 %v6270_v25, %v4750_v23  ;;  %v8415_v25 = vld [vmem:[#allocation11_spill] sm:$0xff] }
 0x26f   : > { %v6191_v17 = vpop.f32.mrf.mxu1  ;;  %v4902_v11 = vpop.f32.mrf.mxu0 }
 0x270   : > { %v5079_v28 = vadd.f32 %v5078_v30, %v5048_v31  ;;  %4981 = vst [vmem:[%s8196_s10 + $0x98] sm:$0xff] %v4911_v5  ;;  %v4903_v53 = vadd.f32 %v4902_v11, %v4742_v51  ;;  %v5051_v56 = vmul.f32 %v4911_v5, %v4911_v5  ;;  %v6192_v43 = vadd.f32 %v6191_v17, %v6190_v50 }
 0x271   : > { %v4771_v51 = vadd.f32 %v6189_v15, %v8415_v25 }
 0x272   : > { %4979 = vst [vmem:[%s8196_s10 + $0x88] sm:$0xff] %v4903_v53  ;;  %v5010_v16 = vadd.f32 %v5009_v12, %v4903_v53  ;;  %v5049_v24 = vmul.f32 %v4903_v53, %v4903_v53 }
 0x274   : > { %v6193_v9 = vpop.f32.mrf.mxu1  ;;  %v5011_v45 = vadd.f32 %v5010_v16, %v4908_v62  ;;  %v5080_v60 = vadd.f32 %v5079_v28, %v5049_v24  ;;  %v8417_v24 = vld [vmem:[#allocation12_spill] sm:$0xff] }
 0x275   : > { %v6273_v59 = vpop.f32.mrf.mxu0  ;;  %v4774_v41 = vadd.f32 %v6192_v43, %v8417_v24 }
 0x276   : > { %v4924_v29 = vadd.f32 %v6273_v59, %v4763_v2  ;;  %v6194_v7 = vpop.f32.mrf.mxu1  ;;  %v5081_v55 = vadd.f32 %v5080_v60, %v5050_v3  ;;  %v5012_v4 = vadd.f32 %v5011_v45, %v4911_v5 }
 0x277   : > { %v4915_v39 = vpop.f32.mrf.mxu0  ;;  %v6195_v54 = vadd.f32 %v6194_v7, %v6193_v9 }
 0x278   : > { %4984 = vst [vmem:[%s8196_s10 + $0xb0] sm:$0xff] %v4924_v29  ;;  %v4916_v10 = vadd.f32 %v4915_v39, %v4755_v8  ;;  %v6196_v33 = vpop.f32.mrf.mxu1  ;;  %v5082_v63 = vadd.f32 %v5081_v55, %v5051_v56  ;;  %v5054_v62 = vmul.f32 %v4924_v29, %v4924_v29 }
 0x279   : > { %v6274_v61 = vpop.f32.mrf.mxu0  ;;  %v4779_v48 = vadd.f32 %v6195_v54, %v8414_v34 }
 0x27a   : > { %4982 = vst [vmem:[%s8196_s10 + $0xa0] sm:$0xff] %v4916_v10  ;;  %v5013_v6 = vadd.f32 %v5012_v4, %v4916_v10  ;;  %v5052_v46 = vmul.f32 %v4916_v10, %v4916_v10  ;;  %v4927_v57 = vadd.f32 %v6274_v61, %v4766_v35  ;;  %v6197_v47 = vpop.f32.mrf.mxu1  ;;  %v8418_v10 = vld [vmem:[#allocation15_spill] sm:$0xff] }
 0x27b   : > { %v4918_v37 = vpop.f32.mrf.mxu0  ;;  %v6198_v38 = vadd.f32 %v6197_v47, %v6196_v33 }
 0x27c   : > { %v5083_v19 = vadd.f32 %v5082_v63, %v5052_v46  ;;  %4985 = vst [vmem:[%s8196_s10 + $0xb8] sm:$0xff] %v4927_v57  ;;  %v4919_v13 = vadd.f32 %v4918_v37, %v4758_v40  ;;  %v5055_v12 = vmul.f32 %v4927_v57, %v4927_v57 }
 0x27d   : > { %v4782_v11 = vadd.f32 %v6198_v38, %v8416_v32 }
 0x27e   : > { %4983 = vst [vmem:[%s8196_s10 + $0xa8] sm:$0xff] %v4919_v13  ;;  %v5014_v49 = vadd.f32 %v5013_v6, %v4919_v13  ;;  %v5053_v18 = vmul.f32 %v4919_v13, %v4919_v13 }
 0x280   : > { %v6199_v26 = vpop.f32.mrf.mxu1  ;;  %v5015_v42 = vadd.f32 %v5014_v49, %v4924_v29  ;;  %v5084_v23 = vadd.f32 %v5083_v19, %v5053_v18 }
 0x281   : > { %v6277_v52 = vpop.f32.mrf.mxu0 }
 0x282   : > { %v4940_v20 = vadd.f32 %v6277_v52, %v4779_v48  ;;  %v6200_v14 = vpop.f32.mrf.mxu1  ;;  %v5085_v21 = vadd.f32 %v5084_v23, %v5054_v62  ;;  %v5016_v31 = vadd.f32 %v5015_v42, %v4927_v57 }
 0x283   : > { %v4931_v0 = vpop.f32.mrf.mxu0  ;;  %v6201_v45 = vadd.f32 %v6200_v14, %v6199_v26 }
 0x284   : > { %4988 = vst [vmem:[%s8196_s10 + $0xd0] sm:$0xff] %v4940_v20  ;;  %v4932_v30 = vadd.f32 %v4931_v0, %v4771_v51  ;;  %v6202_v5 = vpop.f32.mrf.mxu1  ;;  %v5086_v28 = vadd.f32 %v5085_v21, %v5055_v12  ;;  %v5058_v29 = vmul.f32 %v4940_v20, %v4940_v20 }
 0x285   : > { %v6278_v53 = vpop.f32.mrf.mxu0  ;;  %v4787_v33 = vadd.f32 %v6201_v45, %v8418_v10 }
 0x286   : > { %4986 = vst [vmem:[%s8196_s10 + $0xc0] sm:$0xff] %v4932_v30  ;;  %v5017_v58 = vadd.f32 %v5016_v31, %v4932_v30  ;;  %v5056_v50 = vmul.f32 %v4932_v30, %v4932_v30  ;;  %v4943_v17 = vadd.f32 %v6278_v53, %v4782_v11  ;;  %v6203_v16 = vpop.f32.mrf.mxu1 }
 0x287   : > { %v4934_v9 = vpop.f32.mrf.mxu0  ;;  %v6204_v7 = vadd.f32 %v6203_v16, %v6202_v5 }
 0x288   : > { %v5087_v2 = vadd.f32 %v5086_v28, %v5056_v50  ;;  %4989 = vst [vmem:[%s8196_s10 + $0xd8] sm:$0xff] %v4943_v17  ;;  %v4935_v3 = vadd.f32 %v4934_v9, %v4774_v41  ;;  %v5059_v36 = vmul.f32 %v4943_v17, %v4943_v17 }
 0x289   : > { %v4790_v47 = vadd.f32 %v6204_v7, %v8160_v1 }
 0x28a   : > { %4987 = vst [vmem:[%s8196_s10 + $0xc8] sm:$0xff] %v4935_v3  ;;  %v5018_v60 = vadd.f32 %v5017_v58, %v4935_v3  ;;  %v5057_v59 = vmul.f32 %v4935_v3, %v4935_v3  ;;  %v6205_v27 = vpop.f32.mrf.mxu1 }
 0x28c   : > { %v5019_v8 = vadd.f32 %v5018_v60, %v4940_v20  ;;  %v5088_v56 = vadd.f32 %v5087_v2, %v5057_v59  ;;  %v6281_v55 = vpop.f32.mrf.mxu0  ;;  %v6206_v39 = vpop.f32.mrf.mxu1 }
 0x28d   : > { %v6207_v4 = vadd.f32 %v6206_v39, %v6205_v27 }
 0x28e   : > { %v5089_v35 = vadd.f32 %v5088_v56, %v5058_v29  ;;  %v4947_v63 = vpop.f32.mrf.mxu0  ;;  %v5020_v61 = vadd.f32 %v5019_v8, %v4943_v17  ;;  %v6208_v6 = vpop.f32.mrf.mxu1 }
 0x28f   : > { %v4795_v46 = vadd.f32 %v6207_v4, %v8167_v22  ;;  %v4948_v57 = vadd.f32 %v4947_v63, %v4787_v33  ;;  %v8419_v22 = vld [vmem:[#allocation16_spill] sm:$0xff] }
 0x290   : > { %v5090_v44 = vadd.f32 %v5089_v35, %v5059_v36  ;;  %v6282_v40 = vpop.f32.mrf.mxu0  ;;  %v6209_v54 = vpop.f32.mrf.mxu1 }
 0x291   : > { %v4956_v37 = vadd.f32 %v6281_v55, %v4795_v46  ;;  %4990 = vst [vmem:[%s8196_s10 + $0xe0] sm:$0xff] %v4948_v57  ;;  %v5021_v19 = vadd.f32 %v5020_v61, %v4948_v57  ;;  %v5060_v13 = vmul.f32 %v4948_v57, %v4948_v57  ;;  %v6210_v15 = vadd.f32 %v6209_v54, %v6208_v6 }
 0x292   : > { %v4950_v49 = vpop.f32.mrf.mxu0 }
 0x293   : > { %4992 = vst [vmem:[%s8196_s10 + $0xf0] sm:$0xff] %v4956_v37  ;;  %v5091_v18 = vadd.f32 %v5090_v44, %v5060_v13  ;;  %v4798_v38 = vadd.f32 %v6210_v15, %v8419_v22  ;;  %v4951_v26 = vadd.f32 %v4950_v49, %v4790_v47  ;;  %v5062_v62 = vmul.f32 %v4956_v37, %v4956_v37 }
 0x295   : > { %v4959_v1 = vadd.f32 %v6282_v40, %v4798_v38  ;;  %4991 = vst [vmem:[%s8196_s10 + $0xe8] sm:$0xff] %v4951_v26  ;;  %v5022_v34 = vadd.f32 %v5021_v19, %v4951_v26  ;;  %v5061_v48 = vmul.f32 %v4951_v26, %v4951_v26 }
 0x297   : > { %4993 = vst [vmem:[%s8196_s10 + $0xf8] sm:$0xff] %v4959_v1  ;;  %v5063_v42 = vmul.f32 %v4959_v1, %v4959_v1  ;;  %v5023_v23 = vadd.f32 %v5022_v34, %v4956_v37  ;;  %v5092_v52 = vadd.f32 %v5091_v18, %v5061_v48 }
 0x298   : > { %6639 = shalt.err (!%p6636_p3)
}
 0x299   : > { %s6640_s4 = scalar_lea.hbm %s8324_s24, 4096  ;;  %s6644_s7 = scalar_lea.hbm %s8390_s2, 8192 }
 0x29a   : > { %p6641_p4 = scmp.ne.s32.totalorder %s8324_s24, %s6640_s4  ;;  %p6645_p9 = scmp.lt.s32.totalorder %s8324_s24, %s8390_s2 }
 0x29b   : > { %p6646_p10 = scmp.lt.s32.totalorder %s6644_s7, %s6640_s4 }
 0x29c   : > { %p6642_p7 = pnand %p6641_p4, %p6780_p5 }
 0x29d   : > { %p6647_p11 = por %p6646_p10, %p6645_p9 }
 0x29e   : > { %p6643_p8 = pneg %p6642_p7 }
 0x2a0   : > { %p6648_p12 = pnand %p6647_p11, %p6643_p8 }
 0x2a2   : > { %6651 = shalt.err (!%p6648_p12)
}
 0x2a3   : > { %s6719_s10 = smov 128   ;;  %s6720_s11 = smov 8   ;;  %v5024_v43 = vadd.f32 %v5023_v23, %v4959_v1  ;;  %v5093_v20 = vadd.f32 %v5092_v52, %v5062_v62 }
 0x2a4   : > { %6300 = dma.vmem_to_hbm [thread:$0]  (%p6780_p5), %s8326_s17, 4096, %s8324_s24, %s5103_s25, %s6719_s10, %s6719_s10, %s6720_s11  }
 0x2a5   : > { %v5025_v14 = vrot.slane %v5024_v43, 4  ;;  %v5094_v25 = vadd.f32 %v5093_v20, %v5063_v42  ;;  %s5233_s19 = sshll.u32 %s8170_s28, 1  ;;  %s5759_s20 = sshll.u32 %s6763_s16, 5 }
 0x2a6   : > { %s174_s26 = scalar_lea.vmem [#allocation5], %s5233_s19  ;;  %s5135_s25 = scalar_lea.hbm %s8391_s3, %s5759_s20 }
 0x2a7   : > { %v5026_v51 = vadd.f32 %v5025_v14, %v5024_v43  ;;  %v5095_v12 = vrot.slane %v5094_v25, 4  ;;  %s5137_s27 = sshll.u32 %s174_s26, 4  ;;  %s5108_s29 = scalar_lea.sflag [#allocation6], %s8170_s28  ;;  %s5138_s27 = int_to_ptr.vmem [resolvable:$true] %s5137_s27 }
 0x2a8   : > { %s6652_s30 = scalar_lea.vmem %s5138_s27, 32  ;;  %s6721_s4 = smov [#allocation5]  }
 0x2a9   : > { %v5027_v21 = vrot.slane %v5026_v51, 2  ;;  %v5096_v0 = vadd.f32 %v5095_v12, %v5094_v25  ;;  %p6653_p13 = scmp.ne.s32.totalorder %s5138_s27, %s6652_s30  ;;  %s6656_s16 = sshll.u32 %s6721_s4, 4  ;;  %s6657_s16 = int_to_ptr.vmem [resolvable:$false] %s6656_s16 }
 0x2aa   : > { %s6658_s5 = scalar_lea.vmem %s6657_s16, 64  ;;  %p6659_p2 = scmp.lt.s32.totalorder %s5138_s27, %s6657_s16 }
 0x2ab   : > { %v5028_v31 = vadd.f32 %v5027_v21, %v5026_v51  ;;  %v5097_v30 = vrot.slane %v5096_v0, 2  ;;  %p6654_p0 = pnand %p6653_p13, %p6780_p5  ;;  %p6660_p3 = scmp.lt.s32.totalorder %s6658_s5, %s6652_s30 }
 0x2ad   : > { %v5029_v5 = vrot.slane %v5028_v31, 1  ;;  %v5098_v32 = vadd.f32 %v5097_v30, %v5096_v0  ;;  %p6655_p1 = pneg %p6654_p0  ;;  %p6661_p4 = por %p6660_p3, %p6659_p2 }
 0x2af   : > { %v5030_v11 = vadd.f32 %v5029_v5, %v5028_v31  ;;  %v5099_v28 = vrot.slane %v5098_v32, 1  ;;  %p6662_p7 = pnand %p6661_p4, %p6655_p1 }
 0x2b1   : > { %5031 = vst [vmem:[%s174_s26] sm:$0x1] %v5030_v11  ;;  %v5100_v53 = vadd.f32 %v5099_v28, %v5098_v32 }
 0x2b3   : > { %5101 = vst [vmem:[%s174_s26 + $0x1] sm:$0x1] %v5100_v53 }
 0x2b4   : > { %6665 = shalt.err (!%p6662_p7)
}
 0x2b5   : > { %s6666_s6 = scalar_lea.hbm %s5135_s25, 32  ;;  %s6670_s8 = scalar_lea.hbm %s8391_s3, 64 }
 0x2b6   : > { %p6667_p8 = scmp.ne.s32.totalorder %s5135_s25, %s6666_s6  ;;  %p6671_p11 = scmp.lt.s32.totalorder %s5135_s25, %s8391_s3 }
 0x2b7   : > { %p6672_p12 = scmp.lt.s32.totalorder %s6670_s8, %s6666_s6 }
 0x2b8   : > { %p6668_p9 = pnand %p6667_p8, %p6780_p5 }
 0x2b9   : > { %p6673_p13 = por %p6672_p12, %p6671_p11 }
 0x2ba   : > { %p6669_p10 = pneg %p6668_p9 }
 0x2bc   : > { %p6674_p0 = pnand %p6673_p13, %p6669_p10 }
 0x2be   : > { %6677 = shalt.err (!%p6674_p0)
}
 0x2bf   : > { %6301 = dma.vmem_to_hbm [thread:$0]  (%p6780_p5), %s5138_s27, 32, %s5135_s25, %s5108_s29  }
 0x2c0 PF: > { %p6311_p1 = scmp.ge.s32.totalorder %s6716_s15, 2  ;;  %s5149_s11 = sand.u32 1, %s6704_s12  }
 0x2c1   : > { %s5150_s19 = scalar_lea.sflag [#allocation4], %s5149_s11 }
 0x2c2   : > { %p6305_p2 = pnand %p6311_p1, %p6784_p6 }
 0x2c4   : > { %p6306_p3 = pneg %p6305_p2 }
 0x2c6   : > { %6695 = dma.done.wait (%p6306_p3), %s5150_s19, 4096  }
 0x2c7   : > { %6697 = vsyncadd (%p6306_p3), %s5150_s19, 4294963200  ;;  %s5159_s20 = scalar_lea.sflag [#allocation6], %s5149_s11 }
 0x2c8   : > { %6699 = dma.done.wait (%p6306_p3), %s5159_s20, 32  }
 0x2c9   : > { %6701 = vsyncadd (%p6306_p3), %s5159_s20, 4294967264  ;;  %p17_p5 = scmp.ge.s32.totalorder %s6767_s18, 4   ;;  %s8420_s12 = smov %s6708_s13 }
 0x2ca   : > { %s8421_s13 = smov %s6712_s14  ;;  %s8422_s14 = smov %s6778_s21 }
 0x2cb   : > { %s8423_s15 = smov %s6767_s18  ;;  %19 = sbr.rel (!%p17_p5) target bundleno = 5 (0x5), region = 82 }
 0x2d0   :  { %5164 = vsyncpa [#allocation4], 1 }
 0x2d1   :  { %5166 = vsyncpa [#allocation4 + $0x1], 1 }
 0x2d2   :  { %5167 = vsyncpa [#allocation6], 1 }
 0x2d3   :  { %5169 = vsyncpa [#allocation6 + $0x1], 1 }

</bundles_post_ra>
